<compile_context>
chip_gen: v7x
topology: tpu7x:2x2x1
jax: 0.10.0
libtpu: 0.0.40
codegen_flags: <defaults>
</compile_context>

<pallas_src>
import functools

import jax
import jax.numpy as jnp
from jax import lax
from jax.experimental import pallas as pl
from jax.experimental.pallas import tpu as pltpu

EPS = 1e-5        # LayerNorm eps from the module (added to std, not var)
NEG_INF = -1e30


def _layer_norm(x, a2, b2):
    # Custom LayerNorm from the module: unbiased std (Bessel), eps added to std.
    mean = jnp.mean(x, axis=-1, keepdims=True)
    d = x - mean
    var = jnp.sum(d * d, axis=-1, keepdims=True) * (1.0 / (x.shape[-1] - 1))
    std = jnp.sqrt(var)
    return a2 * d / (std + EPS) + b2   # exact reciprocal (accuracy across layers)


def transformer_layer_kernel(
    x_ref, mask_ref,
    in_wt_ref, in_b_ref, out_wt_ref, out_b_ref,
    ln1_a_ref, ln1_b_ref,
    ff_w1t_ref, ff_b1_ref, ff_w2t_ref, ff_b2_ref,
    ln2_a_ref, ln2_b_ref,
    o_ref,
    emb_ref, emb_c_ref, acc_ref,
    *, num_heads, compute_dtype):
    f = pl.program_id(1)
    nf = pl.num_programs(1)

    TB, S, E = x_ref.shape
    Dh = E // num_heads
    M = TB * S

    # ---- attention + residual + LN1: once per batch block (first F step).
    #      Result kept in VMEM scratch for the whole F loop. ----
    @pl.when(f == 0)
    def _attention():
        x2 = x_ref[...].astype(jnp.float32).reshape(M, E)          # (M, E)
        # One batched in-projection for the whole (TB*S, E) block.
        qkv = jnp.dot(x2.astype(compute_dtype), in_wt_ref[...],
                      preferred_element_type=jnp.float32) + in_b_ref[...]  # (M,3E)

        # TODO(synk): replace the per-head lane-slice stack/concat with a
        # layout-aware reshape / pltpu.einshape split+merge (and pack two heads
        # per MXU pass for Dh < 256 on v6e/v7x); kept as static lane slices
        # here for lowering robustness at small / non-lane-aligned Dh.
        def split_heads(t):                       # (S, E) -> (H, S, Dh)
            return jnp.stack(
                [t[:, h * Dh:(h + 1) * Dh] for h in range(num_heads)], axis=0)

        for b in range(TB):                       # static unroll, TB is small
            sl = slice(b * S, (b + 1) * S)
            q = qkv[sl, :E] * (Dh ** -0.5)
            k = qkv[sl, E:2 * E]
            v = qkv[sl, 2 * E:]
            q3 = split_heads(q).astype(compute_dtype)
            k3 = split_heads(k).astype(compute_dtype)
            v3 = split_heads(v).astype(compute_dtype)

            # All heads in one batched MXU matmul (batch dim = heads).
            scores = lax.dot_general(q3, k3, (((2,), (2,)), ((0,), (0,))),
                                     preferred_element_type=jnp.float32)  # (H,S,S)
            neg = jnp.where(mask_ref[b] > 0.5, NEG_INF, 0.0)              # (1, S)
            scores = scores + neg[None, :, :]
            scores = scores - jnp.max(scores, axis=-1, keepdims=True)
            p = jnp.exp(scores)
            p = p * pl.reciprocal(jnp.sum(p, axis=-1, keepdims=True), approx=True)

            ctx = lax.dot_general(p.astype(compute_dtype), v3,
                                  (((2,), (1,)), ((0,), (0,))),
                                  preferred_element_type=jnp.float32)     # (H,S,Dh)
            attn = jnp.concatenate([ctx[h] for h in range(num_heads)], axis=-1)

            attn_out = jnp.dot(attn.astype(compute_dtype), out_wt_ref[...],
                               preferred_element_type=jnp.float32) + out_b_ref[...]

            emb_row = _layer_norm(attn_out + x2[sl], ln1_a_ref[...], ln1_b_ref[...])
            emb_ref[sl, :] = emb_row                     # f32 residual copy
            emb_c_ref[sl, :] = emb_row.astype(compute_dtype)  # matmul-ready copy

        acc_ref[...] = jnp.zeros_like(acc_ref)

    # ---- pointwise feed-forward: streamed over F in TF-wide chunks, applied
    #      to the whole (TB*S, E) block -> weights amortised over TB rows. ----
    h1 = jnp.dot(emb_c_ref[...], ff_w1t_ref[...],
                 preferred_element_type=jnp.float32) + ff_b1_ref[...]     # (M, TF)
    h1 = jnp.maximum(h1, 0.0)
    acc_ref[...] += jnp.dot(h1.astype(compute_dtype), ff_w2t_ref[...],
                            preferred_element_type=jnp.float32)           # (M, E)

    @pl.when(f == nf - 1)
    def _finalize():
        h2 = acc_ref[...] + ff_b2_ref[...]
        out = _layer_norm(h2 + emb_ref[...], ln2_a_ref[...], ln2_b_ref[...])
        o_ref[...] = out.reshape(o_ref.shape).astype(o_ref.dtype)


def _vmem_capacity_bytes():
    try:
        return int(pltpu.get_tpu_info().vmem_capacity_bytes)
    except Exception:
        return 64 << 20   # conservative fallback (v7x per-TensorCore)


def _estimate_vmem_bytes(TB, TF, S, E, F, H, abytes, wbytes):
    M = TB * S
    db = 2   # double-buffered pipeline blocks
    blocks = (
        db * M * E * abytes                        # x block
        + db * TB * S * 4                          # key-padding mask block
        + db * (3 * E * E + E * E) * wbytes        # resident attention weights
        + db * (E * TF + TF * E) * wbytes          # streamed FFN weight blocks
        + db * (8 * E + TF) * 4                    # biases / LN params (approx)
        + db * M * E * abytes                      # output block
    )
    scratch = M * E * (4 + 4 + wbytes)             # emb(f32) + acc(f32) + emb(ct)
    temps = (M * 3 * E * 4                         # qkv
             + 6 * S * E * 4                       # per-row head splits
             + 2 * H * S * S * 4                   # scores + probs (one row)
             + 2 * S * E * 4)                      # ctx / attn
    return blocks + scratch + temps


def _choose_tiles(B, S, E, F, H, abytes, wbytes, budget):
    # Prefer the largest batch block (weight-stream amortisation), then the
    # largest F tile, subject to the VMEM budget.  Keep >= 2 batch blocks so
    # the "parallel" grid axis can feed both TensorCores on megacore parts.
    tb_cands = [t for t in (8, 4, 2, 1)
                if t <= B and B % t == 0 and (B // t >= 2 or B == 1)]
    if not tb_cands:
        tb_cands = [1]
    tf_cands = [t for t in (2048, 1024, 512, 256, 128) if t <= F and F % t == 0]
    if not tf_cands:
        tf_cands = [F]
    for tb in tb_cands:
        for tf in tf_cands:
            if _estimate_vmem_bytes(tb, tf, S, E, F, H, abytes, wbytes) <= budget:
                return tb, tf
    return 1, tf_cands[-1]


def transformer_layer(x, mask3, p, num_heads, compute_dtype=jnp.bfloat16):
    B, S, E = x.shape
    F = p["ff_w1"].shape[0]
    abytes = jnp.dtype(x.dtype).itemsize
    wbytes = jnp.dtype(compute_dtype).itemsize

    cap = _vmem_capacity_bytes()
    TB, TF = _choose_tiles(B, S, E, F, num_heads, abytes, wbytes,
                           budget=int(0.8 * cap))
    NB, NF = B // TB, F // TF

    need = _estimate_vmem_bytes(TB, TF, S, E, F, num_heads, abytes, wbytes)
    vmem_limit = int(min(cap - (2 << 20), max(32 << 20, need + (16 << 20))))
    vmem_limit = max(vmem_limit, 16 << 20)

    def const_spec(shape):
        n = len(shape)
        # TODO(synk): mark constants pipeline_mode=pl.Buffered(1) (constant
        # block index -> second pipeline buffer is wasted VMEM; matters on v7x).
        return pl.BlockSpec(shape, lambda b, f, _n=n: (0,) * _n)

    kernel = functools.partial(transformer_layer_kernel,
                               num_heads=num_heads, compute_dtype=compute_dtype)

    # TODO(synk): flash-style (query-tile, KV-stream) attention for long S, and
    # streaming the in-projection over its 3E axis for very large E on v7x.
    return pl.pallas_call(
        kernel,
        out_shape=jax.ShapeDtypeStruct((B, S, E), x.dtype),
        grid=(NB, NF),
        in_specs=[
            pl.BlockSpec((TB, S, E), lambda b, f: (b, 0, 0)),   # x
            pl.BlockSpec((TB, 1, S), lambda b, f: (b, 0, 0)),   # key-padding mask
            const_spec((E, 3 * E)), const_spec((1, 3 * E)),     # in-proj W^T, b
            const_spec((E, E)), const_spec((1, E)),             # out-proj W^T, b
            const_spec((1, E)), const_spec((1, E)),             # ln1 a, b
            pl.BlockSpec((E, TF), lambda b, f: (0, f)),         # ff w1^T block
            pl.BlockSpec((1, TF), lambda b, f: (0, f)),         # ff b1 block
            pl.BlockSpec((TF, E), lambda b, f: (f, 0)),         # ff w2^T block
            const_spec((1, E)),                                 # ff b2
            const_spec((1, E)), const_spec((1, E)),             # ln2 a, b
        ],
        out_specs=pl.BlockSpec((TB, S, E), lambda b, f: (b, 0, 0)),
        scratch_shapes=[pltpu.VMEM((TB * S, E), jnp.float32),     # emb (post-LN1, f32)
                        pltpu.VMEM((TB * S, E), compute_dtype),   # emb (compute dtype)
                        pltpu.VMEM((TB * S, E), jnp.float32)],    # FFN accumulator
        compiler_params=pltpu.CompilerParams(
            dimension_semantics=("parallel", "arbitrary"),
            vmem_limit_bytes=vmem_limit),
    )(
        x, mask3,
        p["in_w"].T.astype(compute_dtype), p["in_b"].reshape(1, -1),
        p["out_w"].T.astype(compute_dtype), p["out_b"].reshape(1, -1),
        p["ln1_a"].reshape(1, -1), p["ln1_b"].reshape(1, -1),
        p["ff_w1"].T.astype(compute_dtype), p["ff_b1"].reshape(1, -1),
        p["ff_w2"].T.astype(compute_dtype), p["ff_b2"].reshape(1, -1),
        p["ln2_a"].reshape(1, -1), p["ln2_b"].reshape(1, -1),
    )


def tnn_forward(token_index, params, num_heads, pad_id=-1,
                compute_dtype=jnp.bfloat16):
    B, S = token_index.shape
    pad_mask = (token_index == pad_id)
    mask3 = pad_mask.astype(jnp.float32).reshape(B, 1, S)
    tok = params["token_embedding"][token_index]                 # (B, S, E)
    pos = params["posit_embedding"][jnp.arange(S)]               # (S, E)
    # dropout: eval mode -> identity.  Inter-layer activations are stored in
    # compute_dtype (bf16 by default) to halve the per-layer HBM round trip;
    # residual / LayerNorm math stays f32 inside the kernel.
    x = (tok + pos[None, :, :]).astype(compute_dtype)
    # TODO(synk): fuse all layers into one pallas_call (stacked weights + layer
    # grid axis with aliased activation carry) to drop per-layer launch overhead.
    for layer in params["layers"]:
        x = transformer_layer(x, mask3, layer, num_heads, compute_dtype)
    return x


# ---------------- pure-JAX reference (matching cast points) ----------------
def _ref_layer_norm(x, a2, b2):
    mean = jnp.mean(x, axis=-1, keepdims=True)
    d = x - mean
    var = jnp.sum(d * d, axis=-1, keepdims=True) / (x.shape[-1] - 1)
    return a2 * d / (jnp.sqrt(var) + EPS) + b2


def tnn_forward_ref(token_index, params, num_heads, pad_id=-1,
                    compute_dtype=jnp.float32):
    def mm(a, b):
        return jnp.dot(a.astype(compute_dtype), b.astype(compute_dtype),
                       preferred_element_type=jnp.float32)

    B, S = token_index.shape
    pad_mask = (token_index == pad_id)
    tok = params["token_embedding"][token_index]
    pos = params["posit_embedding"][jnp.arange(S)]
    # match the kernel's compute_dtype storage of inter-layer activations
    x = (tok + pos[None, :, :]).astype(compute_dtype).astype(jnp.float32)
    for p in params["layers"]:
        E = x.shape[-1]
        Dh = E // num_heads
        qkv = mm(x, p["in_w"].T) + p["in_b"]
        q = (qkv[..., :E] * (Dh ** -0.5)).reshape(B, S, num_heads, Dh)
        k = qkv[..., E:2 * E].reshape(B, S, num_heads, Dh)
        v = qkv[..., 2 * E:].reshape(B, S, num_heads, Dh)
        s = jnp.einsum("bqhd,bkhd->bhqk", q.astype(compute_dtype),
                       k.astype(compute_dtype),
                       preferred_element_type=jnp.float32)
        s = s + jnp.where(pad_mask[:, None, None, :], NEG_INF, 0.0)
        a = jax.nn.softmax(s, axis=-1)
        o = jnp.einsum("bhqk,bkhd->bqhd", a.astype(compute_dtype),
                       v.astype(compute_dtype),
                       preferred_element_type=jnp.float32).reshape(B, S, E)
        o = mm(o, p["out_w"].T) + p["out_b"]
        emb = _ref_layer_norm(o + x, p["ln1_a"], p["ln1_b"])
        h = jnp.maximum(mm(emb, p["ff_w1"].T) + p["ff_b1"], 0.0)
        h2 = mm(h, p["ff_w2"].T) + p["ff_b2"]
        x = _ref_layer_norm(h2 + emb, p["ln2_a"], p["ln2_b"])
        x = x.astype(compute_dtype).astype(jnp.float32)
    return x


def init_params(key, *, num_tokens, num_posits, embed_dim, fwd_dim, num_layers):
    keys = jax.random.split(key, 2 + 6 * num_layers)
    params = {
        "token_embedding": 0.1 * jax.random.normal(
            keys[0], (num_tokens, embed_dim), jnp.float32),
        "posit_embedding": 0.1 * jax.random.normal(
            keys[1], (num_posits, embed_dim), jnp.float32),
        "layers": [],
    }
    for i in range(num_layers):
        k = jax.random.split(keys[2 + i], 6)
        E, Fd = embed_dim, fwd_dim
        layer = {
            "in_w": 0.1 * jax.random.normal(k[0], (3 * E, E), jnp.float32),
            "in_b": jnp.zeros((3 * E,), jnp.float32),
            "out_w": 0.1 * jax.random.normal(k[1], (E, E), jnp.float32),
            "out_b": jnp.zeros((E,), jnp.float32),
            "ln1_a": jnp.ones((E,), jnp.float32),
            "ln1_b": jnp.zeros((E,), jnp.float32),
            "ff_w1": 0.1 * jax.random.normal(k[2], (Fd, E), jnp.float32),
            "ff_b1": 0.01 * jax.random.normal(k[3], (Fd,), jnp.float32),
            "ff_w2": 0.1 * jax.random.normal(k[4], (E, Fd), jnp.float32),
            "ff_b2": 0.01 * jax.random.normal(k[5], (E,), jnp.float32),
            "ln2_a": jnp.ones((E,), jnp.float32),
            "ln2_b": jnp.zeros((E,), jnp.float32),
        }
        params["layers"].append(layer)
    return params


if __name__ == "__main__":
    # B=4 so the batch-blocked path (TB=2, two parallel grid blocks) is exercised.
    B, S, E, H, Fd = 4, 8, 32, 4, 64
    num_tokens, num_posits, num_layers = 16, 8, 2

    key = jax.random.PRNGKey(0)
    k_tok, k_par = jax.random.split(key)
    token_index = jax.random.randint(k_tok, (B, S), 0, num_tokens, dtype=jnp.int32)
    token_index = token_index.at[0, S - 2:].set(-1)   # exercise key-padding mask
    params = init_params(k_par, num_tokens=num_tokens, num_posits=num_posits,
                         embed_dim=E, fwd_dim=Fd, num_layers=num_layers)

    # default path: bf16 matmuls + bf16 inter-layer activations; softmax /
    # residual / LayerNorm in f32 -> compare vs matching-precision reference.
    fwd_bf16 = jax.jit(functools.partial(tnn_forward, num_heads=H,
                                         compute_dtype=jnp.bfloat16))
    out_bf16 = jax.block_until_ready(fwd_bf16(token_index, params))
    ref_bf16 = tnn_forward_ref(token_index, params, H, compute_dtype=jnp.bfloat16)
    out_bf16_f = out_bf16.astype(jnp.float32)
    assert out_bf16.shape == (B, S, E)
    assert bool(jnp.all(jnp.isfinite(out_bf16_f)))
    assert bool(jnp.allclose(out_bf16_f, ref_bf16, rtol=3e-2, atol=3e-2)), \
        float(jnp.max(jnp.abs(out_bf16_f - ref_bf16)))

    # full-f32 path vs f32 reference.
    fwd_f32 = jax.jit(functools.partial(tnn_forward, num_heads=H,
                                        compute_dtype=jnp.float32))
    out_f32 = jax.block_until_ready(fwd_f32(token_index, params))
    ref_f32 = tnn_forward_ref(token_index, params, H, compute_dtype=jnp.float32)
    assert bool(jnp.allclose(out_f32, ref_f32, rtol=2e-2, atol=2e-2)), \
        float(jnp.max(jnp.abs(out_f32 - ref_f32)))

    print("KERNEL_OK")
</pallas_src>

<mosaic_0001>
module attributes {stable_mosaic.version = 11 : i64} {
  func.func @transformer_layer_kernel(%arg0: i32, %arg1: i32, %arg2: memref<2x8x32xbf16, #tpu.memory_space<vmem>>, %arg3: memref<2x1x8xf32, #tpu.memory_space<vmem>>, %arg4: memref<32x96xbf16, #tpu.memory_space<vmem>>, %arg5: memref<1x96xf32, #tpu.memory_space<vmem>>, %arg6: memref<32x32xbf16, #tpu.memory_space<vmem>>, %arg7: memref<1x32xf32, #tpu.memory_space<vmem>>, %arg8: memref<1x32xf32, #tpu.memory_space<vmem>>, %arg9: memref<1x32xf32, #tpu.memory_space<vmem>>, %arg10: memref<32x64xbf16, #tpu.memory_space<vmem>>, %arg11: memref<1x64xf32, #tpu.memory_space<vmem>>, %arg12: memref<64x32xbf16, #tpu.memory_space<vmem>>, %arg13: memref<1x32xf32, #tpu.memory_space<vmem>>, %arg14: memref<1x32xf32, #tpu.memory_space<vmem>>, %arg15: memref<1x32xf32, #tpu.memory_space<vmem>>, %arg16: memref<2x8x32xbf16, #tpu.memory_space<vmem>>, %arg17: memref<16x32xf32, #tpu.memory_space<vmem>>, %arg18: memref<16x32xbf16, #tpu.memory_space<vmem>>, %arg19: memref<16x32xf32, #tpu.memory_space<vmem>>) attributes {dimension_semantics = [#tpu.dimension_semantics<parallel>, #tpu.dimension_semantics<arbitrary>], iteration_bounds = array<i64: 2, 1>, scalar_prefetch = 0 : i64, scratch_operands = 3 : i64, tpu.core_type = #tpu.core_type<tc>, window_params = [{transform_indices = @transform_0, window_bounds = array<i64: 2, 8, 32>}, {transform_indices = @transform_1, window_bounds = array<i64: 2, 1, 8>}, {pipeline_mode = #tpu.pipeline_mode<synchronous>, transform_indices = @transform_2, window_bounds = array<i64: 32, 96>}, {pipeline_mode = #tpu.pipeline_mode<synchronous>, transform_indices = @transform_3, window_bounds = array<i64: 1, 96>}, {pipeline_mode = #tpu.pipeline_mode<synchronous>, transform_indices = @transform_4, window_bounds = array<i64: 32, 32>}, {pipeline_mode = #tpu.pipeline_mode<synchronous>, transform_indices = @transform_5, window_bounds = array<i64: 1, 32>}, {pipeline_mode = #tpu.pipeline_mode<synchronous>, transform_indices = @transform_6, window_bounds = array<i64: 1, 32>}, {pipeline_mode = #tpu.pipeline_mode<synchronous>, transform_indices = @transform_7, window_bounds = array<i64: 1, 32>}, {transform_indices = @transform_8, window_bounds = array<i64: 32, 64>}, {transform_indices = @transform_9, window_bounds = array<i64: 1, 64>}, {transform_indices = @transform_10, window_bounds = array<i64: 64, 32>}, {pipeline_mode = #tpu.pipeline_mode<synchronous>, transform_indices = @transform_11, window_bounds = array<i64: 1, 32>}, {pipeline_mode = #tpu.pipeline_mode<synchronous>, transform_indices = @transform_12, window_bounds = array<i64: 1, 32>}, {pipeline_mode = #tpu.pipeline_mode<synchronous>, transform_indices = @transform_13, window_bounds = array<i64: 1, 32>}, {transform_indices = @transform_14, window_bounds = array<i64: 2, 8, 32>}]} {
    %c0_i32 = arith.constant 0 : i32
    %0 = arith.cmpi eq, %arg1, %c0_i32 : i32
    %1 = arith.extui %0 : i1 to i32
    %c0_i32_0 = arith.constant 0 : i32
    %2 = arith.cmpi ne, %1, %c0_i32_0 : i32
    scf.if %2 {
      %c0_16 = arith.constant 0 : index
      %c0_17 = arith.constant 0 : index
      %c0_18 = arith.constant 0 : index
      %20 = vector.load %arg2[%c0_16, %c0_17, %c0_18] : memref<2x8x32xbf16, #tpu.memory_space<vmem>>, vector<2x8x32xbf16>
      %21 = arith.extf %20 : vector<2x8x32xbf16> to vector<2x8x32xf32>
      %22 = vector.shape_cast %21 : vector<2x8x32xf32> to vector<16x32xf32>
      %23 = arith.truncf %22 : vector<16x32xf32> to vector<16x32xbf16>
      %c0_19 = arith.constant 0 : index
      %c0_20 = arith.constant 0 : index
      %24 = vector.load %arg4[%c0_19, %c0_20] : memref<32x96xbf16, #tpu.memory_space<vmem>>, vector<32x96xbf16>
      %cst_21 = arith.constant dense<0.000000e+00> : vector<16x96xf32>
      %25 = tpu.matmul %23, %24, %cst_21 {dimension_numbers = #tpu.dot_dimension_numbers<[1], [0], [0], [1], [0, 0, 1, 1], [], []>} : vector<16x32xbf16>, vector<32x96xbf16>, vector<16x96xf32> -> vector<16x96xf32>
      %c0_22 = arith.constant 0 : index
      %c0_23 = arith.constant 0 : index
      %26 = vector.load %arg5[%c0_22, %c0_23] : memref<1x96xf32, #tpu.memory_space<vmem>>, vector<1x96xf32>
      %27 = vector.broadcast %26 : vector<1x96xf32> to vector<16x96xf32>
      %28 = arith.addf %25, %27 : vector<16x96xf32>
      %29 = vector.extract_strided_slice %28 {offsets = [0, 0], sizes = [8, 32], strides = [1, 1]} : vector<16x96xf32> to vector<8x32xf32>
      %cst_24 = arith.constant 0.353553385 : f32
      %30 = vector.broadcast %cst_24 : f32 to vector<8x32xf32>
      %31 = arith.mulf %29, %30 : vector<8x32xf32>
      %32 = vector.extract_strided_slice %28 {offsets = [0, 32], sizes = [8, 32], strides = [1, 1]} : vector<16x96xf32> to vector<8x32xf32>
      %33 = vector.extract_strided_slice %28 {offsets = [0, 64], sizes = [8, 32], strides = [1, 1]} : vector<16x96xf32> to vector<8x32xf32>
      %34 = vector.extract_strided_slice %31 {offsets = [0, 0], sizes = [8, 8], strides = [1, 1]} : vector<8x32xf32> to vector<8x8xf32>
      %35 = vector.extract_strided_slice %31 {offsets = [0, 8], sizes = [8, 8], strides = [1, 1]} : vector<8x32xf32> to vector<8x8xf32>
      %36 = vector.extract_strided_slice %31 {offsets = [0, 16], sizes = [8, 8], strides = [1, 1]} : vector<8x32xf32> to vector<8x8xf32>
      %37 = vector.extract_strided_slice %31 {offsets = [0, 24], sizes = [8, 8], strides = [1, 1]} : vector<8x32xf32> to vector<8x8xf32>
      %38 = vector.shape_cast %34 : vector<8x8xf32> to vector<1x8x8xf32>
      %39 = vector.shape_cast %35 : vector<8x8xf32> to vector<1x8x8xf32>
      %40 = vector.shape_cast %36 : vector<8x8xf32> to vector<1x8x8xf32>
      %41 = vector.shape_cast %37 : vector<8x8xf32> to vector<1x8x8xf32>
      %42 = tpu.concatenate %38, %39, %40, %41 in 0 : vector<1x8x8xf32>, vector<1x8x8xf32>, vector<1x8x8xf32>, vector<1x8x8xf32> -> vector<4x8x8xf32>
      %43 = arith.truncf %42 : vector<4x8x8xf32> to vector<4x8x8xbf16>
      %44 = vector.extract_strided_slice %32 {offsets = [0, 0], sizes = [8, 8], strides = [1, 1]} : vector<8x32xf32> to vector<8x8xf32>
      %45 = vector.extract_strided_slice %32 {offsets = [0, 8], sizes = [8, 8], strides = [1, 1]} : vector<8x32xf32> to vector<8x8xf32>
      %46 = vector.extract_strided_slice %32 {offsets = [0, 16], sizes = [8, 8], strides = [1, 1]} : vector<8x32xf32> to vector<8x8xf32>
      %47 = vector.extract_strided_slice %32 {offsets = [0, 24], sizes = [8, 8], strides = [1, 1]} : vector<8x32xf32> to vector<8x8xf32>
      %48 = vector.shape_cast %44 : vector<8x8xf32> to vector<1x8x8xf32>
      %49 = vector.shape_cast %45 : vector<8x8xf32> to vector<1x8x8xf32>
      %50 = vector.shape_cast %46 : vector<8x8xf32> to vector<1x8x8xf32>
      %51 = vector.shape_cast %47 : vector<8x8xf32> to vector<1x8x8xf32>
      %52 = tpu.concatenate %48, %49, %50, %51 in 0 : vector<1x8x8xf32>, vector<1x8x8xf32>, vector<1x8x8xf32>, vector<1x8x8xf32> -> vector<4x8x8xf32>
      %53 = arith.truncf %52 : vector<4x8x8xf32> to vector<4x8x8xbf16>
      %54 = vector.extract_strided_slice %33 {offsets = [0, 0], sizes = [8, 8], strides = [1, 1]} : vector<8x32xf32> to vector<8x8xf32>
      %55 = vector.extract_strided_slice %33 {offsets = [0, 8], sizes = [8, 8], strides = [1, 1]} : vector<8x32xf32> to vector<8x8xf32>
      %56 = vector.extract_strided_slice %33 {offsets = [0, 16], sizes = [8, 8], strides = [1, 1]} : vector<8x32xf32> to vector<8x8xf32>
      %57 = vector.extract_strided_slice %33 {offsets = [0, 24], sizes = [8, 8], strides = [1, 1]} : vector<8x32xf32> to vector<8x8xf32>
      %58 = vector.shape_cast %54 : vector<8x8xf32> to vector<1x8x8xf32>
      %59 = vector.shape_cast %55 : vector<8x8xf32> to vector<1x8x8xf32>
      %60 = vector.shape_cast %56 : vector<8x8xf32> to vector<1x8x8xf32>
      %61 = vector.shape_cast %57 : vector<8x8xf32> to vector<1x8x8xf32>
      %62 = tpu.concatenate %58, %59, %60, %61 in 0 : vector<1x8x8xf32>, vector<1x8x8xf32>, vector<1x8x8xf32>, vector<1x8x8xf32> -> vector<4x8x8xf32>
      %63 = arith.truncf %62 : vector<4x8x8xf32> to vector<4x8x8xbf16>
      %cst_25 = arith.constant dense<0.000000e+00> : vector<4x8x8xf32>
      %64 = tpu.matmul %43, %53, %cst_25 {dimension_numbers = #tpu.dot_dimension_numbers<[2], [2], [1], [1], [0, 0, 0, 1, 1, 1], [0], [0]>} : vector<4x8x8xbf16>, vector<4x8x8xbf16>, vector<4x8x8xf32> -> vector<4x8x8xf32>
      %c0_26 = arith.constant 0 : index
      %c0_27 = arith.constant 0 : index
      %c0_28 = arith.constant 0 : index
      %65 = vector.load %arg3[%c0_26, %c0_27, %c0_28] : memref<2x1x8xf32, #tpu.memory_space<vmem>>, vector<1x1x8xf32>
      %66 = vector.shape_cast %65 : vector<1x1x8xf32> to vector<1x8xf32>
      %cst_29 = arith.constant 5.000000e-01 : f32
      %67 = vector.broadcast %cst_29 : f32 to vector<1x8xf32>
      %68 = arith.cmpf ogt, %66, %67 : vector<1x8xf32>
      %cst_30 = arith.constant -1.000000e+30 : f32
      %cst_31 = arith.constant 0.000000e+00 : f32
      %69 = vector.broadcast %cst_30 : f32 to vector<1x8xf32>
      %70 = vector.broadcast %cst_31 : f32 to vector<1x8xf32>
      %71 = arith.select %68, %69, %70 : vector<1x8xi1>, vector<1x8xf32>
      %72 = vector.shape_cast %71 : vector<1x8xf32> to vector<1x1x8xf32>
      %73 = vector.broadcast %72 : vector<1x1x8xf32> to vector<4x8x8xf32>
      %74 = arith.addf %64, %73 : vector<4x8x8xf32>
      %cst_32 = arith.constant dense<0xFF800000> : vector<4x8xf32>
      %75 = vector.multi_reduction <maximumf>, %74, %cst_32 [2] : vector<4x8x8xf32> to vector<4x8xf32>
      %76 = vector.shape_cast %75 : vector<4x8xf32> to vector<4x8x1xf32>
      %77 = vector.broadcast %76 : vector<4x8x1xf32> to vector<4x8x8xf32>
      %78 = arith.subf %74, %77 : vector<4x8x8xf32>
      %79 = math.exp %78 : vector<4x8x8xf32>
      %cst_33 = arith.constant dense<0.000000e+00> : vector<4x8xf32>
      %80 = vector.multi_reduction <add>, %79, %cst_33 [2] : vector<4x8x8xf32> to vector<4x8xf32>
      %81 = vector.shape_cast %80 : vector<4x8xf32> to vector<4x8x1xf32>
      %82 = tpu.reciprocal %81 {approx = true} : vector<4x8x1xf32> -> vector<4x8x1xf32>
      %83 = vector.broadcast %82 : vector<4x8x1xf32> to vector<4x8x8xf32>
      %84 = arith.mulf %79, %83 : vector<4x8x8xf32>
      %85 = arith.truncf %84 : vector<4x8x8xf32> to vector<4x8x8xbf16>
      %cst_34 = arith.constant dense<0.000000e+00> : vector<4x8x8xf32>
      %86 = tpu.matmul %85, %63, %cst_34 {dimension_numbers = #tpu.dot_dimension_numbers<[2], [1], [1], [2], [0, 0, 0, 1, 1, 2], [0], [0]>} : vector<4x8x8xbf16>, vector<4x8x8xbf16>, vector<4x8x8xf32> -> vector<4x8x8xf32>
      %87 = vector.extract_strided_slice %86 {offsets = [0, 0, 0], sizes = [1, 8, 8], strides = [1, 1, 1]} : vector<4x8x8xf32> to vector<1x8x8xf32>
      %88 = vector.shape_cast %87 : vector<1x8x8xf32> to vector<8x8xf32>
      %89 = vector.extract_strided_slice %86 {offsets = [1, 0, 0], sizes = [1, 8, 8], strides = [1, 1, 1]} : vector<4x8x8xf32> to vector<1x8x8xf32>
      %90 = vector.shape_cast %89 : vector<1x8x8xf32> to vector<8x8xf32>
      %91 = vector.extract_strided_slice %86 {offsets = [2, 0, 0], sizes = [1, 8, 8], strides = [1, 1, 1]} : vector<4x8x8xf32> to vector<1x8x8xf32>
      %92 = vector.shape_cast %91 : vector<1x8x8xf32> to vector<8x8xf32>
      %93 = vector.extract_strided_slice %86 {offsets = [3, 0, 0], sizes = [1, 8, 8], strides = [1, 1, 1]} : vector<4x8x8xf32> to vector<1x8x8xf32>
      %94 = vector.shape_cast %93 : vector<1x8x8xf32> to vector<8x8xf32>
      %95 = tpu.concatenate %88, %90, %92, %94 in 1 : vector<8x8xf32>, vector<8x8xf32>, vector<8x8xf32>, vector<8x8xf32> -> vector<8x32xf32>
      %96 = arith.truncf %95 : vector<8x32xf32> to vector<8x32xbf16>
      %c0_35 = arith.constant 0 : index
      %c0_36 = arith.constant 0 : index
      %97 = vector.load %arg6[%c0_35, %c0_36] : memref<32x32xbf16, #tpu.memory_space<vmem>>, vector<32x32xbf16>
      %cst_37 = arith.constant dense<0.000000e+00> : vector<8x32xf32>
      %98 = tpu.matmul %96, %97, %cst_37 {dimension_numbers = #tpu.dot_dimension_numbers<[1], [0], [0], [1], [0, 0, 1, 1], [], []>} : vector<8x32xbf16>, vector<32x32xbf16>, vector<8x32xf32> -> vector<8x32xf32>
      %c0_38 = arith.constant 0 : index
      %c0_39 = arith.constant 0 : index
      %99 = vector.load %arg7[%c0_38, %c0_39] : memref<1x32xf32, #tpu.memory_space<vmem>>, vector<1x32xf32>
      %100 = vector.broadcast %99 : vector<1x32xf32> to vector<8x32xf32>
      %101 = arith.addf %98, %100 : vector<8x32xf32>
      %102 = vector.extract_strided_slice %22 {offsets = [0, 0], sizes = [8, 32], strides = [1, 1]} : vector<16x32xf32> to vector<8x32xf32>
      %103 = arith.addf %101, %102 : vector<8x32xf32>
      %c0_40 = arith.constant 0 : index
      %c0_41 = arith.constant 0 : index
      %104 = vector.load %arg8[%c0_40, %c0_41] : memref<1x32xf32, #tpu.memory_space<vmem>>, vector<1x32xf32>
      %c0_42 = arith.constant 0 : index
      %c0_43 = arith.constant 0 : index
      %105 = vector.load %arg9[%c0_42, %c0_43] : memref<1x32xf32, #tpu.memory_space<vmem>>, vector<1x32xf32>
      %cst_44 = arith.constant dense<0.000000e+00> : vector<8xf32>
      %106 = vector.multi_reduction <add>, %103, %cst_44 [1] : vector<8x32xf32> to vector<8xf32>
      %107 = vector.shape_cast %106 : vector<8xf32> to vector<8x1xf32>
      %cst_45 = arith.constant 3.200000e+01 : f32
      %108 = vector.broadcast %cst_45 : f32 to vector<8x1xf32>
      %109 = arith.divf %107, %108 : vector<8x1xf32>
      %110 = vector.broadcast %109 : vector<8x1xf32> to vector<8x32xf32>
      %111 = arith.subf %103, %110 : vector<8x32xf32>
      %112 = arith.mulf %111, %111 : vector<8x32xf32>
      %cst_46 = arith.constant dense<0.000000e+00> : vector<8xf32>
      %113 = vector.multi_reduction <add>, %112, %cst_46 [1] : vector<8x32xf32> to vector<8xf32>
      %114 = vector.shape_cast %113 : vector<8xf32> to vector<8x1xf32>
      %cst_47 = arith.constant 0.0322580636 : f32
      %115 = vector.broadcast %cst_47 : f32 to vector<8x1xf32>
      %116 = arith.mulf %114, %115 : vector<8x1xf32>
      %117 = math.sqrt %116 : vector<8x1xf32>
      %118 = vector.broadcast %104 : vector<1x32xf32> to vector<8x32xf32>
      %119 = arith.mulf %118, %111 : vector<8x32xf32>
      %cst_48 = arith.constant 9.99999974E-6 : f32
      %120 = vector.broadcast %cst_48 : f32 to vector<8x1xf32>
      %121 = arith.addf %117, %120 : vector<8x1xf32>
      %122 = vector.broadcast %121 : vector<8x1xf32> to vector<8x32xf32>
      %123 = arith.divf %119, %122 : vector<8x32xf32>
      %124 = vector.broadcast %105 : vector<1x32xf32> to vector<8x32xf32>
      %125 = arith.addf %123, %124 : vector<8x32xf32>
      %c0_49 = arith.constant 0 : index
      %c0_50 = arith.constant 0 : index
      %126 = vector.load %arg17[%c0_49, %c0_50] : memref<16x32xf32, #tpu.memory_space<vmem>>, vector<8x32xf32>
      tpu.vector_store %arg17[%c0_49, %c0_50], %125 {strides = array<i32>} : memref<16x32xf32, #tpu.memory_space<vmem>>, vector<8x32xf32>,
      %127 = arith.truncf %125 : vector<8x32xf32> to vector<8x32xbf16>
      %c0_51 = arith.constant 0 : index
      %c0_52 = arith.constant 0 : index
      %128 = vector.load %arg18[%c0_51, %c0_52] : memref<16x32xbf16, #tpu.memory_space<vmem>>, vector<8x32xbf16>
      tpu.vector_store %arg18[%c0_51, %c0_52], %127 {strides = array<i32>} : memref<16x32xbf16, #tpu.memory_space<vmem>>, vector<8x32xbf16>,
      %129 = vector.extract_strided_slice %28 {offsets = [8, 0], sizes = [8, 32], strides = [1, 1]} : vector<16x96xf32> to vector<8x32xf32>
      %cst_53 = arith.constant 0.353553385 : f32
      %130 = vector.broadcast %cst_53 : f32 to vector<8x32xf32>
      %131 = arith.mulf %129, %130 : vector<8x32xf32>
      %132 = vector.extract_strided_slice %28 {offsets = [8, 32], sizes = [8, 32], strides = [1, 1]} : vector<16x96xf32> to vector<8x32xf32>
      %133 = vector.extract_strided_slice %28 {offsets = [8, 64], sizes = [8, 32], strides = [1, 1]} : vector<16x96xf32> to vector<8x32xf32>
      %134 = vector.extract_strided_slice %131 {offsets = [0, 0], sizes = [8, 8], strides = [1, 1]} : vector<8x32xf32> to vector<8x8xf32>
      %135 = vector.extract_strided_slice %131 {offsets = [0, 8], sizes = [8, 8], strides = [1, 1]} : vector<8x32xf32> to vector<8x8xf32>
      %136 = vector.extract_strided_slice %131 {offsets = [0, 16], sizes = [8, 8], strides = [1, 1]} : vector<8x32xf32> to vector<8x8xf32>
      %137 = vector.extract_strided_slice %131 {offsets = [0, 24], sizes = [8, 8], strides = [1, 1]} : vector<8x32xf32> to vector<8x8xf32>
      %138 = vector.shape_cast %134 : vector<8x8xf32> to vector<1x8x8xf32>
      %139 = vector.shape_cast %135 : vector<8x8xf32> to vector<1x8x8xf32>
      %140 = vector.shape_cast %136 : vector<8x8xf32> to vector<1x8x8xf32>
      %141 = vector.shape_cast %137 : vector<8x8xf32> to vector<1x8x8xf32>
      %142 = tpu.concatenate %138, %139, %140, %141 in 0 : vector<1x8x8xf32>, vector<1x8x8xf32>, vector<1x8x8xf32>, vector<1x8x8xf32> -> vector<4x8x8xf32>
      %143 = arith.truncf %142 : vector<4x8x8xf32> to vector<4x8x8xbf16>
      %144 = vector.extract_strided_slice %132 {offsets = [0, 0], sizes = [8, 8], strides = [1, 1]} : vector<8x32xf32> to vector<8x8xf32>
      %145 = vector.extract_strided_slice %132 {offsets = [0, 8], sizes = [8, 8], strides = [1, 1]} : vector<8x32xf32> to vector<8x8xf32>
      %146 = vector.extract_strided_slice %132 {offsets = [0, 16], sizes = [8, 8], strides = [1, 1]} : vector<8x32xf32> to vector<8x8xf32>
      %147 = vector.extract_strided_slice %132 {offsets = [0, 24], sizes = [8, 8], strides = [1, 1]} : vector<8x32xf32> to vector<8x8xf32>
      %148 = vector.shape_cast %144 : vector<8x8xf32> to vector<1x8x8xf32>
      %149 = vector.shape_cast %145 : vector<8x8xf32> to vector<1x8x8xf32>
      %150 = vector.shape_cast %146 : vector<8x8xf32> to vector<1x8x8xf32>
      %151 = vector.shape_cast %147 : vector<8x8xf32> to vector<1x8x8xf32>
      %152 = tpu.concatenate %148, %149, %150, %151 in 0 : vector<1x8x8xf32>, vector<1x8x8xf32>, vector<1x8x8xf32>, vector<1x8x8xf32> -> vector<4x8x8xf32>
      %153 = arith.truncf %152 : vector<4x8x8xf32> to vector<4x8x8xbf16>
      %154 = vector.extract_strided_slice %133 {offsets = [0, 0], sizes = [8, 8], strides = [1, 1]} : vector<8x32xf32> to vector<8x8xf32>
      %155 = vector.extract_strided_slice %133 {offsets = [0, 8], sizes = [8, 8], strides = [1, 1]} : vector<8x32xf32> to vector<8x8xf32>
      %156 = vector.extract_strided_slice %133 {offsets = [0, 16], sizes = [8, 8], strides = [1, 1]} : vector<8x32xf32> to vector<8x8xf32>
      %157 = vector.extract_strided_slice %133 {offsets = [0, 24], sizes = [8, 8], strides = [1, 1]} : vector<8x32xf32> to vector<8x8xf32>
      %158 = vector.shape_cast %154 : vector<8x8xf32> to vector<1x8x8xf32>
      %159 = vector.shape_cast %155 : vector<8x8xf32> to vector<1x8x8xf32>
      %160 = vector.shape_cast %156 : vector<8x8xf32> to vector<1x8x8xf32>
      %161 = vector.shape_cast %157 : vector<8x8xf32> to vector<1x8x8xf32>
      %162 = tpu.concatenate %158, %159, %160, %161 in 0 : vector<1x8x8xf32>, vector<1x8x8xf32>, vector<1x8x8xf32>, vector<1x8x8xf32> -> vector<4x8x8xf32>
      %163 = arith.truncf %162 : vector<4x8x8xf32> to vector<4x8x8xbf16>
      %cst_54 = arith.constant dense<0.000000e+00> : vector<4x8x8xf32>
      %164 = tpu.matmul %143, %153, %cst_54 {dimension_numbers = #tpu.dot_dimension_numbers<[2], [2], [1], [1], [0, 0, 0, 1, 1, 1], [0], [0]>} : vector<4x8x8xbf16>, vector<4x8x8xbf16>, vector<4x8x8xf32> -> vector<4x8x8xf32>
      %c1 = arith.constant 1 : index
      %c0_55 = arith.constant 0 : index
      %c0_56 = arith.constant 0 : index
      %165 = vector.load %arg3[%c1, %c0_55, %c0_56] : memref<2x1x8xf32, #tpu.memory_space<vmem>>, vector<1x1x8xf32>
      %166 = vector.shape_cast %165 : vector<1x1x8xf32> to vector<1x8xf32>
      %cst_57 = arith.constant 5.000000e-01 : f32
      %167 = vector.broadcast %cst_57 : f32 to vector<1x8xf32>
      %168 = arith.cmpf ogt, %166, %167 : vector<1x8xf32>
      %cst_58 = arith.constant -1.000000e+30 : f32
      %cst_59 = arith.constant 0.000000e+00 : f32
      %169 = vector.broadcast %cst_58 : f32 to vector<1x8xf32>
      %170 = vector.broadcast %cst_59 : f32 to vector<1x8xf32>
      %171 = arith.select %168, %169, %170 : vector<1x8xi1>, vector<1x8xf32>
      %172 = vector.shape_cast %171 : vector<1x8xf32> to vector<1x1x8xf32>
      %173 = vector.broadcast %172 : vector<1x1x8xf32> to vector<4x8x8xf32>
      %174 = arith.addf %164, %173 : vector<4x8x8xf32>
      %cst_60 = arith.constant dense<0xFF800000> : vector<4x8xf32>
      %175 = vector.multi_reduction <maximumf>, %174, %cst_60 [2] : vector<4x8x8xf32> to vector<4x8xf32>
      %176 = vector.shape_cast %175 : vector<4x8xf32> to vector<4x8x1xf32>
      %177 = vector.broadcast %176 : vector<4x8x1xf32> to vector<4x8x8xf32>
      %178 = arith.subf %174, %177 : vector<4x8x8xf32>
      %179 = math.exp %178 : vector<4x8x8xf32>
      %cst_61 = arith.constant dense<0.000000e+00> : vector<4x8xf32>
      %180 = vector.multi_reduction <add>, %179, %cst_61 [2] : vector<4x8x8xf32> to vector<4x8xf32>
      %181 = vector.shape_cast %180 : vector<4x8xf32> to vector<4x8x1xf32>
      %182 = tpu.reciprocal %181 {approx = true} : vector<4x8x1xf32> -> vector<4x8x1xf32>
      %183 = vector.broadcast %182 : vector<4x8x1xf32> to vector<4x8x8xf32>
      %184 = arith.mulf %179, %183 : vector<4x8x8xf32>
      %185 = arith.truncf %184 : vector<4x8x8xf32> to vector<4x8x8xbf16>
      %cst_62 = arith.constant dense<0.000000e+00> : vector<4x8x8xf32>
      %186 = tpu.matmul %185, %163, %cst_62 {dimension_numbers = #tpu.dot_dimension_numbers<[2], [1], [1], [2], [0, 0, 0, 1, 1, 2], [0], [0]>} : vector<4x8x8xbf16>, vector<4x8x8xbf16>, vector<4x8x8xf32> -> vector<4x8x8xf32>
      %187 = vector.extract_strided_slice %186 {offsets = [0, 0, 0], sizes = [1, 8, 8], strides = [1, 1, 1]} : vector<4x8x8xf32> to vector<1x8x8xf32>
      %188 = vector.shape_cast %187 : vector<1x8x8xf32> to vector<8x8xf32>
      %189 = vector.extract_strided_slice %186 {offsets = [1, 0, 0], sizes = [1, 8, 8], strides = [1, 1, 1]} : vector<4x8x8xf32> to vector<1x8x8xf32>
      %190 = vector.shape_cast %189 : vector<1x8x8xf32> to vector<8x8xf32>
      %191 = vector.extract_strided_slice %186 {offsets = [2, 0, 0], sizes = [1, 8, 8], strides = [1, 1, 1]} : vector<4x8x8xf32> to vector<1x8x8xf32>
      %192 = vector.shape_cast %191 : vector<1x8x8xf32> to vector<8x8xf32>
      %193 = vector.extract_strided_slice %186 {offsets = [3, 0, 0], sizes = [1, 8, 8], strides = [1, 1, 1]} : vector<4x8x8xf32> to vector<1x8x8xf32>
      %194 = vector.shape_cast %193 : vector<1x8x8xf32> to vector<8x8xf32>
      %195 = tpu.concatenate %188, %190, %192, %194 in 1 : vector<8x8xf32>, vector<8x8xf32>, vector<8x8xf32>, vector<8x8xf32> -> vector<8x32xf32>
      %196 = arith.truncf %195 : vector<8x32xf32> to vector<8x32xbf16>
      %c0_63 = arith.constant 0 : index
      %c0_64 = arith.constant 0 : index
      %197 = vector.load %arg6[%c0_63, %c0_64] : memref<32x32xbf16, #tpu.memory_space<vmem>>, vector<32x32xbf16>
      %cst_65 = arith.constant dense<0.000000e+00> : vector<8x32xf32>
      %198 = tpu.matmul %196, %197, %cst_65 {dimension_numbers = #tpu.dot_dimension_numbers<[1], [0], [0], [1], [0, 0, 1, 1], [], []>} : vector<8x32xbf16>, vector<32x32xbf16>, vector<8x32xf32> -> vector<8x32xf32>
      %c0_66 = arith.constant 0 : index
      %c0_67 = arith.constant 0 : index
      %199 = vector.load %arg7[%c0_66, %c0_67] : memref<1x32xf32, #tpu.memory_space<vmem>>, vector<1x32xf32>
      %200 = vector.broadcast %199 : vector<1x32xf32> to vector<8x32xf32>
      %201 = arith.addf %198, %200 : vector<8x32xf32>
      %202 = vector.extract_strided_slice %22 {offsets = [8, 0], sizes = [8, 32], strides = [1, 1]} : vector<16x32xf32> to vector<8x32xf32>
      %203 = arith.addf %201, %202 : vector<8x32xf32>
      %c0_68 = arith.constant 0 : index
      %c0_69 = arith.constant 0 : index
      %204 = vector.load %arg8[%c0_68, %c0_69] : memref<1x32xf32, #tpu.memory_space<vmem>>, vector<1x32xf32>
      %c0_70 = arith.constant 0 : index
      %c0_71 = arith.constant 0 : index
      %205 = vector.load %arg9[%c0_70, %c0_71] : memref<1x32xf32, #tpu.memory_space<vmem>>, vector<1x32xf32>
      %cst_72 = arith.constant dense<0.000000e+00> : vector<8xf32>
      %206 = vector.multi_reduction <add>, %203, %cst_72 [1] : vector<8x32xf32> to vector<8xf32>
      %207 = vector.shape_cast %206 : vector<8xf32> to vector<8x1xf32>
      %cst_73 = arith.constant 3.200000e+01 : f32
      %208 = vector.broadcast %cst_73 : f32 to vector<8x1xf32>
      %209 = arith.divf %207, %208 : vector<8x1xf32>
      %210 = vector.broadcast %209 : vector<8x1xf32> to vector<8x32xf32>
      %211 = arith.subf %203, %210 : vector<8x32xf32>
      %212 = arith.mulf %211, %211 : vector<8x32xf32>
      %cst_74 = arith.constant dense<0.000000e+00> : vector<8xf32>
      %213 = vector.multi_reduction <add>, %212, %cst_74 [1] : vector<8x32xf32> to vector<8xf32>
      %214 = vector.shape_cast %213 : vector<8xf32> to vector<8x1xf32>
      %cst_75 = arith.constant 0.0322580636 : f32
      %215 = vector.broadcast %cst_75 : f32 to vector<8x1xf32>
      %216 = arith.mulf %214, %215 : vector<8x1xf32>
      %217 = math.sqrt %216 : vector<8x1xf32>
      %218 = vector.broadcast %204 : vector<1x32xf32> to vector<8x32xf32>
      %219 = arith.mulf %218, %211 : vector<8x32xf32>
      %cst_76 = arith.constant 9.99999974E-6 : f32
      %220 = vector.broadcast %cst_76 : f32 to vector<8x1xf32>
      %221 = arith.addf %217, %220 : vector<8x1xf32>
      %222 = vector.broadcast %221 : vector<8x1xf32> to vector<8x32xf32>
      %223 = arith.divf %219, %222 : vector<8x32xf32>
      %224 = vector.broadcast %205 : vector<1x32xf32> to vector<8x32xf32>
      %225 = arith.addf %223, %224 : vector<8x32xf32>
      %c8 = arith.constant 8 : index
      %c0_77 = arith.constant 0 : index
      %226 = vector.load %arg17[%c8, %c0_77] : memref<16x32xf32, #tpu.memory_space<vmem>>, vector<8x32xf32>
      tpu.vector_store %arg17[%c8, %c0_77], %225 {strides = array<i32>} : memref<16x32xf32, #tpu.memory_space<vmem>>, vector<8x32xf32>,
      %227 = arith.truncf %225 : vector<8x32xf32> to vector<8x32xbf16>
      %c8_78 = arith.constant 8 : index
      %c0_79 = arith.constant 0 : index
      %228 = vector.load %arg18[%c8_78, %c0_79] : memref<16x32xbf16, #tpu.memory_space<vmem>>, vector<8x32xbf16>
      tpu.vector_store %arg18[%c8_78, %c0_79], %227 {strides = array<i32>} : memref<16x32xbf16, #tpu.memory_space<vmem>>, vector<8x32xbf16>,
      %cst_80 = arith.constant 0.000000e+00 : f32
      %229 = vector.broadcast %cst_80 : f32 to vector<16x32xf32>
      %c0_81 = arith.constant 0 : index
      %c0_82 = arith.constant 0 : index
      %230 = vector.load %arg19[%c0_81, %c0_82] : memref<16x32xf32, #tpu.memory_space<vmem>>, vector<16x32xf32>
      tpu.vector_store %arg19[%c0_81, %c0_82], %229 {strides = array<i32>} : memref<16x32xf32, #tpu.memory_space<vmem>>, vector<16x32xf32>,
    } else {
    }
    %c0 = arith.constant 0 : index
    %c0_1 = arith.constant 0 : index
    %3 = vector.load %arg18[%c0, %c0_1] : memref<16x32xbf16, #tpu.memory_space<vmem>>, vector<16x32xbf16>
    %c0_2 = arith.constant 0 : index
    %c0_3 = arith.constant 0 : index
    %4 = vector.load %arg10[%c0_2, %c0_3] : memref<32x64xbf16, #tpu.memory_space<vmem>>, vector<32x64xbf16>
    %cst = arith.constant dense<0.000000e+00> : vector<16x64xf32>
    %5 = tpu.matmul %3, %4, %cst {dimension_numbers = #tpu.dot_dimension_numbers<[1], [0], [0], [1], [0, 0, 1, 1], [], []>} : vector<16x32xbf16>, vector<32x64xbf16>, vector<16x64xf32> -> vector<16x64xf32>
    %c0_4 = arith.constant 0 : index
    %c0_5 = arith.constant 0 : index
    %6 = vector.load %arg11[%c0_4, %c0_5] : memref<1x64xf32, #tpu.memory_space<vmem>>, vector<1x64xf32>
    %7 = vector.broadcast %6 : vector<1x64xf32> to vector<16x64xf32>
    %8 = arith.addf %5, %7 : vector<16x64xf32>
    %cst_6 = arith.constant 0.000000e+00 : f32
    %9 = vector.broadcast %cst_6 : f32 to vector<16x64xf32>
    %10 = arith.maximumf %8, %9 : vector<16x64xf32>
    %c0_7 = arith.constant 0 : index
    %c0_8 = arith.constant 0 : index
    %11 = vector.load %arg19[%c0_7, %c0_8] : memref<16x32xf32, #tpu.memory_space<vmem>>, vector<16x32xf32>
    %12 = arith.truncf %10 : vector<16x64xf32> to vector<16x64xbf16>
    %c0_9 = arith.constant 0 : index
    %c0_10 = arith.constant 0 : index
    %13 = vector.load %arg12[%c0_9, %c0_10] : memref<64x32xbf16, #tpu.memory_space<vmem>>, vector<64x32xbf16>
    %cst_11 = arith.constant dense<0.000000e+00> : vector<16x32xf32>
    %14 = tpu.matmul %12, %13, %cst_11 {dimension_numbers = #tpu.dot_dimension_numbers<[1], [0], [0], [1], [0, 0, 1, 1], [], []>} : vector<16x64xbf16>, vector<64x32xbf16>, vector<16x32xf32> -> vector<16x32xf32>
    %15 = arith.addf %11, %14 : vector<16x32xf32>
    %c0_12 = arith.constant 0 : index
    %c0_13 = arith.constant 0 : index
    %16 = vector.load %arg19[%c0_12, %c0_13] : memref<16x32xf32, #tpu.memory_space<vmem>>, vector<16x32xf32>
    tpu.vector_store %arg19[%c0_12, %c0_13], %15 {strides = array<i32>} : memref<16x32xf32, #tpu.memory_space<vmem>>, vector<16x32xf32>,
    %c0_i32_14 = arith.constant 0 : i32
    %17 = arith.cmpi eq, %arg1, %c0_i32_14 : i32
    %18 = arith.extui %17 : i1 to i32
    %c0_i32_15 = arith.constant 0 : i32
    %19 = arith.cmpi ne, %18, %c0_i32_15 : i32
    scf.if %19 {
      %c0_16 = arith.constant 0 : index
      %c0_17 = arith.constant 0 : index
      %20 = vector.load %arg19[%c0_16, %c0_17] : memref<16x32xf32, #tpu.memory_space<vmem>>, vector<16x32xf32>
      %c0_18 = arith.constant 0 : index
      %c0_19 = arith.constant 0 : index
      %21 = vector.load %arg13[%c0_18, %c0_19] : memref<1x32xf32, #tpu.memory_space<vmem>>, vector<1x32xf32>
      %22 = vector.broadcast %21 : vector<1x32xf32> to vector<16x32xf32>
      %23 = arith.addf %20, %22 : vector<16x32xf32>
      %c0_20 = arith.constant 0 : index
      %c0_21 = arith.constant 0 : index
      %24 = vector.load %arg17[%c0_20, %c0_21] : memref<16x32xf32, #tpu.memory_space<vmem>>, vector<16x32xf32>
      %25 = arith.addf %23, %24 : vector<16x32xf32>
      %c0_22 = arith.constant 0 : index
      %c0_23 = arith.constant 0 : index
      %26 = vector.load %arg14[%c0_22, %c0_23] : memref<1x32xf32, #tpu.memory_space<vmem>>, vector<1x32xf32>
      %c0_24 = arith.constant 0 : index
      %c0_25 = arith.constant 0 : index
      %27 = vector.load %arg15[%c0_24, %c0_25] : memref<1x32xf32, #tpu.memory_space<vmem>>, vector<1x32xf32>
      %cst_26 = arith.constant dense<0.000000e+00> : vector<16xf32>
      %28 = vector.multi_reduction <add>, %25, %cst_26 [1] : vector<16x32xf32> to vector<16xf32>
      %29 = vector.shape_cast %28 : vector<16xf32> to vector<16x1xf32>
      %cst_27 = arith.constant 3.200000e+01 : f32
      %30 = vector.broadcast %cst_27 : f32 to vector<16x1xf32>
      %31 = arith.divf %29, %30 : vector<16x1xf32>
      %32 = vector.broadcast %31 : vector<16x1xf32> to vector<16x32xf32>
      %33 = arith.subf %25, %32 : vector<16x32xf32>
      %34 = arith.mulf %33, %33 : vector<16x32xf32>
      %cst_28 = arith.constant dense<0.000000e+00> : vector<16xf32>
      %35 = vector.multi_reduction <add>, %34, %cst_28 [1] : vector<16x32xf32> to vector<16xf32>
      %36 = vector.shape_cast %35 : vector<16xf32> to vector<16x1xf32>
      %cst_29 = arith.constant 0.0322580636 : f32
      %37 = vector.broadcast %cst_29 : f32 to vector<16x1xf32>
      %38 = arith.mulf %36, %37 : vector<16x1xf32>
      %39 = math.sqrt %38 : vector<16x1xf32>
      %40 = vector.broadcast %26 : vector<1x32xf32> to vector<16x32xf32>
      %41 = arith.mulf %40, %33 : vector<16x32xf32>
      %cst_30 = arith.constant 9.99999974E-6 : f32
      %42 = vector.broadcast %cst_30 : f32 to vector<16x1xf32>
      %43 = arith.addf %39, %42 : vector<16x1xf32>
      %44 = vector.broadcast %43 : vector<16x1xf32> to vector<16x32xf32>
      %45 = arith.divf %41, %44 : vector<16x32xf32>
      %46 = vector.broadcast %27 : vector<1x32xf32> to vector<16x32xf32>
      %47 = arith.addf %45, %46 : vector<16x32xf32>
      %48 = vector.shape_cast %47 : vector<16x32xf32> to vector<2x8x32xf32>
      %49 = arith.truncf %48 : vector<2x8x32xf32> to vector<2x8x32xbf16>
      %c0_31 = arith.constant 0 : index
      %c0_32 = arith.constant 0 : index
      %c0_33 = arith.constant 0 : index
      %50 = vector.load %arg16[%c0_31, %c0_32, %c0_33] : memref<2x8x32xbf16, #tpu.memory_space<vmem>>, vector<2x8x32xbf16>
      tpu.vector_store %arg16[%c0_31, %c0_32, %c0_33], %49 {strides = array<i32>} : memref<2x8x32xbf16, #tpu.memory_space<vmem>>, vector<2x8x32xbf16>,
    } else {
    }
    return
  }
  func.func @transform_0(%arg0: i32, %arg1: i32) -> (i32, i32, i32) {
    %c0_i32 = arith.constant 0 : i32
    %c0_i32_0 = arith.constant 0 : i32
    %c0_i32_1 = arith.constant 0 : i32
    return %arg0, %c0_i32, %c0_i32_0 : i32, i32, i32
  }
  func.func @transform_1(%arg0: i32, %arg1: i32) -> (i32, i32, i32) {
    %c0_i32 = arith.constant 0 : i32
    %c0_i32_0 = arith.constant 0 : i32
    %c0_i32_1 = arith.constant 0 : i32
    return %arg0, %c0_i32, %c0_i32_0 : i32, i32, i32
  }
  func.func @transform_2(%arg0: i32, %arg1: i32) -> (i32, i32) {
    %c0_i32 = arith.constant 0 : i32
    %c0_i32_0 = arith.constant 0 : i32
    %c0_i32_1 = arith.constant 0 : i32
    return %c0_i32, %c0_i32_0 : i32, i32
  }
  func.func @transform_3(%arg0: i32, %arg1: i32) -> (i32, i32) {
    %c0_i32 = arith.constant 0 : i32
    %c0_i32_0 = arith.constant 0 : i32
    %c0_i32_1 = arith.constant 0 : i32
    return %c0_i32, %c0_i32_0 : i32, i32
  }
  func.func @transform_4(%arg0: i32, %arg1: i32) -> (i32, i32) {
    %c0_i32 = arith.constant 0 : i32
    %c0_i32_0 = arith.constant 0 : i32
    %c0_i32_1 = arith.constant 0 : i32
    return %c0_i32, %c0_i32_0 : i32, i32
  }
  func.func @transform_5(%arg0: i32, %arg1: i32) -> (i32, i32) {
    %c0_i32 = arith.constant 0 : i32
    %c0_i32_0 = arith.constant 0 : i32
    %c0_i32_1 = arith.constant 0 : i32
    return %c0_i32, %c0_i32_0 : i32, i32
  }
  func.func @transform_6(%arg0: i32, %arg1: i32) -> (i32, i32) {
    %c0_i32 = arith.constant 0 : i32
    %c0_i32_0 = arith.constant 0 : i32
    %c0_i32_1 = arith.constant 0 : i32
    return %c0_i32, %c0_i32_0 : i32, i32
  }
  func.func @transform_7(%arg0: i32, %arg1: i32) -> (i32, i32) {
    %c0_i32 = arith.constant 0 : i32
    %c0_i32_0 = arith.constant 0 : i32
    %c0_i32_1 = arith.constant 0 : i32
    return %c0_i32, %c0_i32_0 : i32, i32
  }
  func.func @transform_8(%arg0: i32, %arg1: i32) -> (i32, i32) {
    %c0_i32 = arith.constant 0 : i32
    %c0_i32_0 = arith.constant 0 : i32
    return %c0_i32, %arg1 : i32, i32
  }
  func.func @transform_9(%arg0: i32, %arg1: i32) -> (i32, i32) {
    %c0_i32 = arith.constant 0 : i32
    %c0_i32_0 = arith.constant 0 : i32
    return %c0_i32, %arg1 : i32, i32
  }
  func.func @transform_10(%arg0: i32, %arg1: i32) -> (i32, i32) {
    %c0_i32 = arith.constant 0 : i32
    %c0_i32_0 = arith.constant 0 : i32
    return %arg1, %c0_i32 : i32, i32
  }
  func.func @transform_11(%arg0: i32, %arg1: i32) -> (i32, i32) {
    %c0_i32 = arith.constant 0 : i32
    %c0_i32_0 = arith.constant 0 : i32
    %c0_i32_1 = arith.constant 0 : i32
    return %c0_i32, %c0_i32_0 : i32, i32
  }
  func.func @transform_12(%arg0: i32, %arg1: i32) -> (i32, i32) {
    %c0_i32 = arith.constant 0 : i32
    %c0_i32_0 = arith.constant 0 : i32
    %c0_i32_1 = arith.constant 0 : i32
    return %c0_i32, %c0_i32_0 : i32, i32
  }
  func.func @transform_13(%arg0: i32, %arg1: i32) -> (i32, i32) {
    %c0_i32 = arith.constant 0 : i32
    %c0_i32_0 = arith.constant 0 : i32
    %c0_i32_1 = arith.constant 0 : i32
    return %c0_i32, %c0_i32_0 : i32, i32
  }
  func.func @transform_14(%arg0: i32, %arg1: i32) -> (i32, i32, i32) {
    %c0_i32 = arith.constant 0 : i32
    %c0_i32_0 = arith.constant 0 : i32
    %c0_i32_1 = arith.constant 0 : i32
    return %arg0, %c0_i32, %c0_i32_0 : i32, i32, i32
  }
}

module attributes {stable_mosaic.version = 11 : i64} {
  func.func @transformer_layer_kernel(%arg0: i32, %arg1: i32, %arg2: memref<2x8x32xbf16, #tpu.memory_space<vmem>>, %arg3: memref<2x1x8xf32, #tpu.memory_space<vmem>>, %arg4: memref<32x96xbf16, #tpu.memory_space<vmem>>, %arg5: memref<1x96xf32, #tpu.memory_space<vmem>>, %arg6: memref<32x32xbf16, #tpu.memory_space<vmem>>, %arg7: memref<1x32xf32, #tpu.memory_space<vmem>>, %arg8: memref<1x32xf32, #tpu.memory_space<vmem>>, %arg9: memref<1x32xf32, #tpu.memory_space<vmem>>, %arg10: memref<32x64xbf16, #tpu.memory_space<vmem>>, %arg11: memref<1x64xf32, #tpu.memory_space<vmem>>, %arg12: memref<64x32xbf16, #tpu.memory_space<vmem>>, %arg13: memref<1x32xf32, #tpu.memory_space<vmem>>, %arg14: memref<1x32xf32, #tpu.memory_space<vmem>>, %arg15: memref<1x32xf32, #tpu.memory_space<vmem>>, %arg16: memref<2x8x32xbf16, #tpu.memory_space<vmem>>, %arg17: memref<16x32xf32, #tpu.memory_space<vmem>>, %arg18: memref<16x32xbf16, #tpu.memory_space<vmem>>, %arg19: memref<16x32xf32, #tpu.memory_space<vmem>>) attributes {dimension_semantics = [#tpu.dimension_semantics<parallel>, #tpu.dimension_semantics<arbitrary>], iteration_bounds = array<i64: 2, 1>, scalar_prefetch = 0 : i64, scratch_operands = 3 : i64, tpu.core_type = #tpu.core_type<tc>, window_params = [{transform_indices = @transform_0, window_bounds = array<i64: 2, 8, 32>}, {transform_indices = @transform_1, window_bounds = array<i64: 2, 1, 8>}, {pipeline_mode = #tpu.pipeline_mode<synchronous>, transform_indices = @transform_2, window_bounds = array<i64: 32, 96>}, {pipeline_mode = #tpu.pipeline_mode<synchronous>, transform_indices = @transform_3, window_bounds = array<i64: 1, 96>}, {pipeline_mode = #tpu.pipeline_mode<synchronous>, transform_indices = @transform_4, window_bounds = array<i64: 32, 32>}, {pipeline_mode = #tpu.pipeline_mode<synchronous>, transform_indices = @transform_5, window_bounds = array<i64: 1, 32>}, {pipeline_mode = #tpu.pipeline_mode<synchronous>, transform_indices = @transform_6, window_bounds = array<i64: 1, 32>}, {pipeline_mode = #tpu.pipeline_mode<synchronous>, transform_indices = @transform_7, window_bounds = array<i64: 1, 32>}, {transform_indices = @transform_8, window_bounds = array<i64: 32, 64>}, {transform_indices = @transform_9, window_bounds = array<i64: 1, 64>}, {transform_indices = @transform_10, window_bounds = array<i64: 64, 32>}, {pipeline_mode = #tpu.pipeline_mode<synchronous>, transform_indices = @transform_11, window_bounds = array<i64: 1, 32>}, {pipeline_mode = #tpu.pipeline_mode<synchronous>, transform_indices = @transform_12, window_bounds = array<i64: 1, 32>}, {pipeline_mode = #tpu.pipeline_mode<synchronous>, transform_indices = @transform_13, window_bounds = array<i64: 1, 32>}, {transform_indices = @transform_14, window_bounds = array<i64: 2, 8, 32>}]} {
    %c0_i32 = arith.constant 0 : i32
    %0 = arith.cmpi eq, %arg1, %c0_i32 : i32
    %1 = arith.extui %0 : i1 to i32
    %c0_i32_0 = arith.constant 0 : i32
    %2 = arith.cmpi ne, %1, %c0_i32_0 : i32
    scf.if %2 {
      %c0_16 = arith.constant 0 : index
      %c0_17 = arith.constant 0 : index
      %c0_18 = arith.constant 0 : index
      %20 = vector.load %arg2[%c0_16, %c0_17, %c0_18] : memref<2x8x32xbf16, #tpu.memory_space<vmem>>, vector<2x8x32xbf16>
      %21 = arith.extf %20 : vector<2x8x32xbf16> to vector<2x8x32xf32>
      %22 = vector.shape_cast %21 : vector<2x8x32xf32> to vector<16x32xf32>
      %23 = arith.truncf %22 : vector<16x32xf32> to vector<16x32xbf16>
      %c0_19 = arith.constant 0 : index
      %c0_20 = arith.constant 0 : index
      %24 = vector.load %arg4[%c0_19, %c0_20] : memref<32x96xbf16, #tpu.memory_space<vmem>>, vector<32x96xbf16>
      %cst_21 = arith.constant dense<0.000000e+00> : vector<16x96xf32>
      %25 = tpu.matmul %23, %24, %cst_21 {dimension_numbers = #tpu.dot_dimension_numbers<[1], [0], [0], [1], [0, 0, 1, 1], [], []>} : vector<16x32xbf16>, vector<32x96xbf16>, vector<16x96xf32> -> vector<16x96xf32>
      %c0_22 = arith.constant 0 : index
      %c0_23 = arith.constant 0 : index
      %26 = vector.load %arg5[%c0_22, %c0_23] : memref<1x96xf32, #tpu.memory_space<vmem>>, vector<1x96xf32>
      %27 = vector.broadcast %26 : vector<1x96xf32> to vector<16x96xf32>
      %28 = arith.addf %25, %27 : vector<16x96xf32>
      %29 = vector.extract_strided_slice %28 {offsets = [0, 0], sizes = [8, 32], strides = [1, 1]} : vector<16x96xf32> to vector<8x32xf32>
      %cst_24 = arith.constant 0.353553385 : f32
      %30 = vector.broadcast %cst_24 : f32 to vector<8x32xf32>
      %31 = arith.mulf %29, %30 : vector<8x32xf32>
      %32 = vector.extract_strided_slice %28 {offsets = [0, 32], sizes = [8, 32], strides = [1, 1]} : vector<16x96xf32> to vector<8x32xf32>
      %33 = vector.extract_strided_slice %28 {offsets = [0, 64], sizes = [8, 32], strides = [1, 1]} : vector<16x96xf32> to vector<8x32xf32>
      %34 = vector.extract_strided_slice %31 {offsets = [0, 0], sizes = [8, 8], strides = [1, 1]} : vector<8x32xf32> to vector<8x8xf32>
      %35 = vector.extract_strided_slice %31 {offsets = [0, 8], sizes = [8, 8], strides = [1, 1]} : vector<8x32xf32> to vector<8x8xf32>
      %36 = vector.extract_strided_slice %31 {offsets = [0, 16], sizes = [8, 8], strides = [1, 1]} : vector<8x32xf32> to vector<8x8xf32>
      %37 = vector.extract_strided_slice %31 {offsets = [0, 24], sizes = [8, 8], strides = [1, 1]} : vector<8x32xf32> to vector<8x8xf32>
      %38 = vector.shape_cast %34 : vector<8x8xf32> to vector<1x8x8xf32>
      %39 = vector.shape_cast %35 : vector<8x8xf32> to vector<1x8x8xf32>
      %40 = vector.shape_cast %36 : vector<8x8xf32> to vector<1x8x8xf32>
      %41 = vector.shape_cast %37 : vector<8x8xf32> to vector<1x8x8xf32>
      %42 = tpu.concatenate %38, %39, %40, %41 in 0 : vector<1x8x8xf32>, vector<1x8x8xf32>, vector<1x8x8xf32>, vector<1x8x8xf32> -> vector<4x8x8xf32>
      %43 = arith.truncf %42 : vector<4x8x8xf32> to vector<4x8x8xbf16>
      %44 = vector.extract_strided_slice %32 {offsets = [0, 0], sizes = [8, 8], strides = [1, 1]} : vector<8x32xf32> to vector<8x8xf32>
      %45 = vector.extract_strided_slice %32 {offsets = [0, 8], sizes = [8, 8], strides = [1, 1]} : vector<8x32xf32> to vector<8x8xf32>
      %46 = vector.extract_strided_slice %32 {offsets = [0, 16], sizes = [8, 8], strides = [1, 1]} : vector<8x32xf32> to vector<8x8xf32>
      %47 = vector.extract_strided_slice %32 {offsets = [0, 24], sizes = [8, 8], strides = [1, 1]} : vector<8x32xf32> to vector<8x8xf32>
      %48 = vector.shape_cast %44 : vector<8x8xf32> to vector<1x8x8xf32>
      %49 = vector.shape_cast %45 : vector<8x8xf32> to vector<1x8x8xf32>
      %50 = vector.shape_cast %46 : vector<8x8xf32> to vector<1x8x8xf32>
      %51 = vector.shape_cast %47 : vector<8x8xf32> to vector<1x8x8xf32>
      %52 = tpu.concatenate %48, %49, %50, %51 in 0 : vector<1x8x8xf32>, vector<1x8x8xf32>, vector<1x8x8xf32>, vector<1x8x8xf32> -> vector<4x8x8xf32>
      %53 = arith.truncf %52 : vector<4x8x8xf32> to vector<4x8x8xbf16>
      %54 = vector.extract_strided_slice %33 {offsets = [0, 0], sizes = [8, 8], strides = [1, 1]} : vector<8x32xf32> to vector<8x8xf32>
      %55 = vector.extract_strided_slice %33 {offsets = [0, 8], sizes = [8, 8], strides = [1, 1]} : vector<8x32xf32> to vector<8x8xf32>
      %56 = vector.extract_strided_slice %33 {offsets = [0, 16], sizes = [8, 8], strides = [1, 1]} : vector<8x32xf32> to vector<8x8xf32>
      %57 = vector.extract_strided_slice %33 {offsets = [0, 24], sizes = [8, 8], strides = [1, 1]} : vector<8x32xf32> to vector<8x8xf32>
      %58 = vector.shape_cast %54 : vector<8x8xf32> to vector<1x8x8xf32>
      %59 = vector.shape_cast %55 : vector<8x8xf32> to vector<1x8x8xf32>
      %60 = vector.shape_cast %56 : vector<8x8xf32> to vector<1x8x8xf32>
      %61 = vector.shape_cast %57 : vector<8x8xf32> to vector<1x8x8xf32>
      %62 = tpu.concatenate %58, %59, %60, %61 in 0 : vector<1x8x8xf32>, vector<1x8x8xf32>, vector<1x8x8xf32>, vector<1x8x8xf32> -> vector<4x8x8xf32>
      %63 = arith.truncf %62 : vector<4x8x8xf32> to vector<4x8x8xbf16>
      %cst_25 = arith.constant dense<0.000000e+00> : vector<4x8x8xf32>
      %64 = tpu.matmul %43, %53, %cst_25 {dimension_numbers = #tpu.dot_dimension_numbers<[2], [2], [1], [1], [0, 0, 0, 1, 1, 1], [0], [0]>} : vector<4x8x8xbf16>, vector<4x8x8xbf16>, vector<4x8x8xf32> -> vector<4x8x8xf32>
      %c0_26 = arith.constant 0 : index
      %c0_27 = arith.constant 0 : index
      %c0_28 = arith.constant 0 : index
      %65 = vector.load %arg3[%c0_26, %c0_27, %c0_28] : memref<2x1x8xf32, #tpu.memory_space<vmem>>, vector<1x1x8xf32>
      %66 = vector.shape_cast %65 : vector<1x1x8xf32> to vector<1x8xf32>
      %cst_29 = arith.constant 5.000000e-01 : f32
      %67 = vector.broadcast %cst_29 : f32 to vector<1x8xf32>
      %68 = arith.cmpf ogt, %66, %67 : vector<1x8xf32>
      %cst_30 = arith.constant -1.000000e+30 : f32
      %cst_31 = arith.constant 0.000000e+00 : f32
      %69 = vector.broadcast %cst_30 : f32 to vector<1x8xf32>
      %70 = vector.broadcast %cst_31 : f32 to vector<1x8xf32>
      %71 = arith.select %68, %69, %70 : vector<1x8xi1>, vector<1x8xf32>
      %72 = vector.shape_cast %71 : vector<1x8xf32> to vector<1x1x8xf32>
      %73 = vector.broadcast %72 : vector<1x1x8xf32> to vector<4x8x8xf32>
      %74 = arith.addf %64, %73 : vector<4x8x8xf32>
      %cst_32 = arith.constant dense<0xFF800000> : vector<4x8xf32>
      %75 = vector.multi_reduction <maximumf>, %74, %cst_32 [2] : vector<4x8x8xf32> to vector<4x8xf32>
      %76 = vector.shape_cast %75 : vector<4x8xf32> to vector<4x8x1xf32>
      %77 = vector.broadcast %76 : vector<4x8x1xf32> to vector<4x8x8xf32>
      %78 = arith.subf %74, %77 : vector<4x8x8xf32>
      %79 = math.exp %78 : vector<4x8x8xf32>
      %cst_33 = arith.constant dense<0.000000e+00> : vector<4x8xf32>
      %80 = vector.multi_reduction <add>, %79, %cst_33 [2] : vector<4x8x8xf32> to vector<4x8xf32>
      %81 = vector.shape_cast %80 : vector<4x8xf32> to vector<4x8x1xf32>
      %82 = tpu.reciprocal %81 {approx = true} : vector<4x8x1xf32> -> vector<4x8x1xf32>
      %83 = vector.broadcast %82 : vector<4x8x1xf32> to vector<4x8x8xf32>
      %84 = arith.mulf %79, %83 : vector<4x8x8xf32>
      %85 = arith.truncf %84 : vector<4x8x8xf32> to vector<4x8x8xbf16>
      %cst_34 = arith.constant dense<0.000000e+00> : vector<4x8x8xf32>
      %86 = tpu.matmul %85, %63, %cst_34 {dimension_numbers = #tpu.dot_dimension_numbers<[2], [1], [1], [2], [0, 0, 0, 1, 1, 2], [0], [0]>} : vector<4x8x8xbf16>, vector<4x8x8xbf16>, vector<4x8x8xf32> -> vector<4x8x8xf32>
      %87 = vector.extract_strided_slice %86 {offsets = [0, 0, 0], sizes = [1, 8, 8], strides = [1, 1, 1]} : vector<4x8x8xf32> to vector<1x8x8xf32>
      %88 = vector.shape_cast %87 : vector<1x8x8xf32> to vector<8x8xf32>
      %89 = vector.extract_strided_slice %86 {offsets = [1, 0, 0], sizes = [1, 8, 8], strides = [1, 1, 1]} : vector<4x8x8xf32> to vector<1x8x8xf32>
      %90 = vector.shape_cast %89 : vector<1x8x8xf32> to vector<8x8xf32>
      %91 = vector.extract_strided_slice %86 {offsets = [2, 0, 0], sizes = [1, 8, 8], strides = [1, 1, 1]} : vector<4x8x8xf32> to vector<1x8x8xf32>
      %92 = vector.shape_cast %91 : vector<1x8x8xf32> to vector<8x8xf32>
      %93 = vector.extract_strided_slice %86 {offsets = [3, 0, 0], sizes = [1, 8, 8], strides = [1, 1, 1]} : vector<4x8x8xf32> to vector<1x8x8xf32>
      %94 = vector.shape_cast %93 : vector<1x8x8xf32> to vector<8x8xf32>
      %95 = tpu.concatenate %88, %90, %92, %94 in 1 : vector<8x8xf32>, vector<8x8xf32>, vector<8x8xf32>, vector<8x8xf32> -> vector<8x32xf32>
      %96 = arith.truncf %95 : vector<8x32xf32> to vector<8x32xbf16>
      %c0_35 = arith.constant 0 : index
      %c0_36 = arith.constant 0 : index
      %97 = vector.load %arg6[%c0_35, %c0_36] : memref<32x32xbf16, #tpu.memory_space<vmem>>, vector<32x32xbf16>
      %cst_37 = arith.constant dense<0.000000e+00> : vector<8x32xf32>
      %98 = tpu.matmul %96, %97, %cst_37 {dimension_numbers = #tpu.dot_dimension_numbers<[1], [0], [0], [1], [0, 0, 1, 1], [], []>} : vector<8x32xbf16>, vector<32x32xbf16>, vector<8x32xf32> -> vector<8x32xf32>
      %c0_38 = arith.constant 0 : index
      %c0_39 = arith.constant 0 : index
      %99 = vector.load %arg7[%c0_38, %c0_39] : memref<1x32xf32, #tpu.memory_space<vmem>>, vector<1x32xf32>
      %100 = vector.broadcast %99 : vector<1x32xf32> to vector<8x32xf32>
      %101 = arith.addf %98, %100 : vector<8x32xf32>
      %102 = vector.extract_strided_slice %22 {offsets = [0, 0], sizes = [8, 32], strides = [1, 1]} : vector<16x32xf32> to vector<8x32xf32>
      %103 = arith.addf %101, %102 : vector<8x32xf32>
      %c0_40 = arith.constant 0 : index
      %c0_41 = arith.constant 0 : index
      %104 = vector.load %arg8[%c0_40, %c0_41] : memref<1x32xf32, #tpu.memory_space<vmem>>, vector<1x32xf32>
      %c0_42 = arith.constant 0 : index
      %c0_43 = arith.constant 0 : index
      %105 = vector.load %arg9[%c0_42, %c0_43] : memref<1x32xf32, #tpu.memory_space<vmem>>, vector<1x32xf32>
      %cst_44 = arith.constant dense<0.000000e+00> : vector<8xf32>
      %106 = vector.multi_reduction <add>, %103, %cst_44 [1] : vector<8x32xf32> to vector<8xf32>
      %107 = vector.shape_cast %106 : vector<8xf32> to vector<8x1xf32>
      %cst_45 = arith.constant 3.200000e+01 : f32
      %108 = vector.broadcast %cst_45 : f32 to vector<8x1xf32>
      %109 = arith.divf %107, %108 : vector<8x1xf32>
      %110 = vector.broadcast %109 : vector<8x1xf32> to vector<8x32xf32>
      %111 = arith.subf %103, %110 : vector<8x32xf32>
      %112 = arith.mulf %111, %111 : vector<8x32xf32>
      %cst_46 = arith.constant dense<0.000000e+00> : vector<8xf32>
      %113 = vector.multi_reduction <add>, %112, %cst_46 [1] : vector<8x32xf32> to vector<8xf32>
      %114 = vector.shape_cast %113 : vector<8xf32> to vector<8x1xf32>
      %cst_47 = arith.constant 0.0322580636 : f32
      %115 = vector.broadcast %cst_47 : f32 to vector<8x1xf32>
      %116 = arith.mulf %114, %115 : vector<8x1xf32>
      %117 = math.sqrt %116 : vector<8x1xf32>
      %118 = vector.broadcast %104 : vector<1x32xf32> to vector<8x32xf32>
      %119 = arith.mulf %118, %111 : vector<8x32xf32>
      %cst_48 = arith.constant 9.99999974E-6 : f32
      %120 = vector.broadcast %cst_48 : f32 to vector<8x1xf32>
      %121 = arith.addf %117, %120 : vector<8x1xf32>
      %122 = vector.broadcast %121 : vector<8x1xf32> to vector<8x32xf32>
      %123 = arith.divf %119, %122 : vector<8x32xf32>
      %124 = vector.broadcast %105 : vector<1x32xf32> to vector<8x32xf32>
      %125 = arith.addf %123, %124 : vector<8x32xf32>
      %c0_49 = arith.constant 0 : index
      %c0_50 = arith.constant 0 : index
      %126 = vector.load %arg17[%c0_49, %c0_50] : memref<16x32xf32, #tpu.memory_space<vmem>>, vector<8x32xf32>
      tpu.vector_store %arg17[%c0_49, %c0_50], %125 {strides = array<i32>} : memref<16x32xf32, #tpu.memory_space<vmem>>, vector<8x32xf32>,
      %127 = arith.truncf %125 : vector<8x32xf32> to vector<8x32xbf16>
      %c0_51 = arith.constant 0 : index
      %c0_52 = arith.constant 0 : index
      %128 = vector.load %arg18[%c0_51, %c0_52] : memref<16x32xbf16, #tpu.memory_space<vmem>>, vector<8x32xbf16>
      tpu.vector_store %arg18[%c0_51, %c0_52], %127 {strides = array<i32>} : memref<16x32xbf16, #tpu.memory_space<vmem>>, vector<8x32xbf16>,
      %129 = vector.extract_strided_slice %28 {offsets = [8, 0], sizes = [8, 32], strides = [1, 1]} : vector<16x96xf32> to vector<8x32xf32>
      %cst_53 = arith.constant 0.353553385 : f32
      %130 = vector.broadcast %cst_53 : f32 to vector<8x32xf32>
      %131 = arith.mulf %129, %130 : vector<8x32xf32>
      %132 = vector.extract_strided_slice %28 {offsets = [8, 32], sizes = [8, 32], strides = [1, 1]} : vector<16x96xf32> to vector<8x32xf32>
      %133 = vector.extract_strided_slice %28 {offsets = [8, 64], sizes = [8, 32], strides = [1, 1]} : vector<16x96xf32> to vector<8x32xf32>
      %134 = vector.extract_strided_slice %131 {offsets = [0, 0], sizes = [8, 8], strides = [1, 1]} : vector<8x32xf32> to vector<8x8xf32>
      %135 = vector.extract_strided_slice %131 {offsets = [0, 8], sizes = [8, 8], strides = [1, 1]} : vector<8x32xf32> to vector<8x8xf32>
      %136 = vector.extract_strided_slice %131 {offsets = [0, 16], sizes = [8, 8], strides = [1, 1]} : vector<8x32xf32> to vector<8x8xf32>
      %137 = vector.extract_strided_slice %131 {offsets = [0, 24], sizes = [8, 8], strides = [1, 1]} : vector<8x32xf32> to vector<8x8xf32>
      %138 = vector.shape_cast %134 : vector<8x8xf32> to vector<1x8x8xf32>
      %139 = vector.shape_cast %135 : vector<8x8xf32> to vector<1x8x8xf32>
      %140 = vector.shape_cast %136 : vector<8x8xf32> to vector<1x8x8xf32>
      %141 = vector.shape_cast %137 : vector<8x8xf32> to vector<1x8x8xf32>
      %142 = tpu.concatenate %138, %139, %140, %141 in 0 : vector<1x8x8xf32>, vector<1x8x8xf32>, vector<1x8x8xf32>, vector<1x8x8xf32> -> vector<4x8x8xf32>
      %143 = arith.truncf %142 : vector<4x8x8xf32> to vector<4x8x8xbf16>
      %144 = vector.extract_strided_slice %132 {offsets = [0, 0], sizes = [8, 8], strides = [1, 1]} : vector<8x32xf32> to vector<8x8xf32>
      %145 = vector.extract_strided_slice %132 {offsets = [0, 8], sizes = [8, 8], strides = [1, 1]} : vector<8x32xf32> to vector<8x8xf32>
      %146 = vector.extract_strided_slice %132 {offsets = [0, 16], sizes = [8, 8], strides = [1, 1]} : vector<8x32xf32> to vector<8x8xf32>
      %147 = vector.extract_strided_slice %132 {offsets = [0, 24], sizes = [8, 8], strides = [1, 1]} : vector<8x32xf32> to vector<8x8xf32>
      %148 = vector.shape_cast %144 : vector<8x8xf32> to vector<1x8x8xf32>
      %149 = vector.shape_cast %145 : vector<8x8xf32> to vector<1x8x8xf32>
      %150 = vector.shape_cast %146 : vector<8x8xf32> to vector<1x8x8xf32>
      %151 = vector.shape_cast %147 : vector<8x8xf32> to vector<1x8x8xf32>
      %152 = tpu.concatenate %148, %149, %150, %151 in 0 : vector<1x8x8xf32>, vector<1x8x8xf32>, vector<1x8x8xf32>, vector<1x8x8xf32> -> vector<4x8x8xf32>
      %153 = arith.truncf %152 : vector<4x8x8xf32> to vector<4x8x8xbf16>
      %154 = vector.extract_strided_slice %133 {offsets = [0, 0], sizes = [8, 8], strides = [1, 1]} : vector<8x32xf32> to vector<8x8xf32>
      %155 = vector.extract_strided_slice %133 {offsets = [0, 8], sizes = [8, 8], strides = [1, 1]} : vector<8x32xf32> to vector<8x8xf32>
      %156 = vector.extract_strided_slice %133 {offsets = [0, 16], sizes = [8, 8], strides = [1, 1]} : vector<8x32xf32> to vector<8x8xf32>
      %157 = vector.extract_strided_slice %133 {offsets = [0, 24], sizes = [8, 8], strides = [1, 1]} : vector<8x32xf32> to vector<8x8xf32>
      %158 = vector.shape_cast %154 : vector<8x8xf32> to vector<1x8x8xf32>
      %159 = vector.shape_cast %155 : vector<8x8xf32> to vector<1x8x8xf32>
      %160 = vector.shape_cast %156 : vector<8x8xf32> to vector<1x8x8xf32>
      %161 = vector.shape_cast %157 : vector<8x8xf32> to vector<1x8x8xf32>
      %162 = tpu.concatenate %158, %159, %160, %161 in 0 : vector<1x8x8xf32>, vector<1x8x8xf32>, vector<1x8x8xf32>, vector<1x8x8xf32> -> vector<4x8x8xf32>
      %163 = arith.truncf %162 : vector<4x8x8xf32> to vector<4x8x8xbf16>
      %cst_54 = arith.constant dense<0.000000e+00> : vector<4x8x8xf32>
      %164 = tpu.matmul %143, %153, %cst_54 {dimension_numbers = #tpu.dot_dimension_numbers<[2], [2], [1], [1], [0, 0, 0, 1, 1, 1], [0], [0]>} : vector<4x8x8xbf16>, vector<4x8x8xbf16>, vector<4x8x8xf32> -> vector<4x8x8xf32>
      %c1 = arith.constant 1 : index
      %c0_55 = arith.constant 0 : index
      %c0_56 = arith.constant 0 : index
      %165 = vector.load %arg3[%c1, %c0_55, %c0_56] : memref<2x1x8xf32, #tpu.memory_space<vmem>>, vector<1x1x8xf32>
      %166 = vector.shape_cast %165 : vector<1x1x8xf32> to vector<1x8xf32>
      %cst_57 = arith.constant 5.000000e-01 : f32
      %167 = vector.broadcast %cst_57 : f32 to vector<1x8xf32>
      %168 = arith.cmpf ogt, %166, %167 : vector<1x8xf32>
      %cst_58 = arith.constant -1.000000e+30 : f32
      %cst_59 = arith.constant 0.000000e+00 : f32
      %169 = vector.broadcast %cst_58 : f32 to vector<1x8xf32>
      %170 = vector.broadcast %cst_59 : f32 to vector<1x8xf32>
      %171 = arith.select %168, %169, %170 : vector<1x8xi1>, vector<1x8xf32>
      %172 = vector.shape_cast %171 : vector<1x8xf32> to vector<1x1x8xf32>
      %173 = vector.broadcast %172 : vector<1x1x8xf32> to vector<4x8x8xf32>
      %174 = arith.addf %164, %173 : vector<4x8x8xf32>
      %cst_60 = arith.constant dense<0xFF800000> : vector<4x8xf32>
      %175 = vector.multi_reduction <maximumf>, %174, %cst_60 [2] : vector<4x8x8xf32> to vector<4x8xf32>
      %176 = vector.shape_cast %175 : vector<4x8xf32> to vector<4x8x1xf32>
      %177 = vector.broadcast %176 : vector<4x8x1xf32> to vector<4x8x8xf32>
      %178 = arith.subf %174, %177 : vector<4x8x8xf32>
      %179 = math.exp %178 : vector<4x8x8xf32>
      %cst_61 = arith.constant dense<0.000000e+00> : vector<4x8xf32>
      %180 = vector.multi_reduction <add>, %179, %cst_61 [2] : vector<4x8x8xf32> to vector<4x8xf32>
      %181 = vector.shape_cast %180 : vector<4x8xf32> to vector<4x8x1xf32>
      %182 = tpu.reciprocal %181 {approx = true} : vector<4x8x1xf32> -> vector<4x8x1xf32>
      %183 = vector.broadcast %182 : vector<4x8x1xf32> to vector<4x8x8xf32>
      %184 = arith.mulf %179, %183 : vector<4x8x8xf32>
      %185 = arith.truncf %184 : vector<4x8x8xf32> to vector<4x8x8xbf16>
      %cst_62 = arith.constant dense<0.000000e+00> : vector<4x8x8xf32>
      %186 = tpu.matmul %185, %163, %cst_62 {dimension_numbers = #tpu.dot_dimension_numbers<[2], [1], [1], [2], [0, 0, 0, 1, 1, 2], [0], [0]>} : vector<4x8x8xbf16>, vector<4x8x8xbf16>, vector<4x8x8xf32> -> vector<4x8x8xf32>
      %187 = vector.extract_strided_slice %186 {offsets = [0, 0, 0], sizes = [1, 8, 8], strides = [1, 1, 1]} : vector<4x8x8xf32> to vector<1x8x8xf32>
      %188 = vector.shape_cast %187 : vector<1x8x8xf32> to vector<8x8xf32>
      %189 = vector.extract_strided_slice %186 {offsets = [1, 0, 0], sizes = [1, 8, 8], strides = [1, 1, 1]} : vector<4x8x8xf32> to vector<1x8x8xf32>
      %190 = vector.shape_cast %189 : vector<1x8x8xf32> to vector<8x8xf32>
      %191 = vector.extract_strided_slice %186 {offsets = [2, 0, 0], sizes = [1, 8, 8], strides = [1, 1, 1]} : vector<4x8x8xf32> to vector<1x8x8xf32>
      %192 = vector.shape_cast %191 : vector<1x8x8xf32> to vector<8x8xf32>
      %193 = vector.extract_strided_slice %186 {offsets = [3, 0, 0], sizes = [1, 8, 8], strides = [1, 1, 1]} : vector<4x8x8xf32> to vector<1x8x8xf32>
      %194 = vector.shape_cast %193 : vector<1x8x8xf32> to vector<8x8xf32>
      %195 = tpu.concatenate %188, %190, %192, %194 in 1 : vector<8x8xf32>, vector<8x8xf32>, vector<8x8xf32>, vector<8x8xf32> -> vector<8x32xf32>
      %196 = arith.truncf %195 : vector<8x32xf32> to vector<8x32xbf16>
      %c0_63 = arith.constant 0 : index
      %c0_64 = arith.constant 0 : index
      %197 = vector.load %arg6[%c0_63, %c0_64] : memref<32x32xbf16, #tpu.memory_space<vmem>>, vector<32x32xbf16>
      %cst_65 = arith.constant dense<0.000000e+00> : vector<8x32xf32>
      %198 = tpu.matmul %196, %197, %cst_65 {dimension_numbers = #tpu.dot_dimension_numbers<[1], [0], [0], [1], [0, 0, 1, 1], [], []>} : vector<8x32xbf16>, vector<32x32xbf16>, vector<8x32xf32> -> vector<8x32xf32>
      %c0_66 = arith.constant 0 : index
      %c0_67 = arith.constant 0 : index
      %199 = vector.load %arg7[%c0_66, %c0_67] : memref<1x32xf32, #tpu.memory_space<vmem>>, vector<1x32xf32>
      %200 = vector.broadcast %199 : vector<1x32xf32> to vector<8x32xf32>
      %201 = arith.addf %198, %200 : vector<8x32xf32>
      %202 = vector.extract_strided_slice %22 {offsets = [8, 0], sizes = [8, 32], strides = [1, 1]} : vector<16x32xf32> to vector<8x32xf32>
      %203 = arith.addf %201, %202 : vector<8x32xf32>
      %c0_68 = arith.constant 0 : index
      %c0_69 = arith.constant 0 : index
      %204 = vector.load %arg8[%c0_68, %c0_69] : memref<1x32xf32, #tpu.memory_space<vmem>>, vector<1x32xf32>
      %c0_70 = arith.constant 0 : index
      %c0_71 = arith.constant 0 : index
      %205 = vector.load %arg9[%c0_70, %c0_71] : memref<1x32xf32, #tpu.memory_space<vmem>>, vector<1x32xf32>
      %cst_72 = arith.constant dense<0.000000e+00> : vector<8xf32>
      %206 = vector.multi_reduction <add>, %203, %cst_72 [1] : vector<8x32xf32> to vector<8xf32>
      %207 = vector.shape_cast %206 : vector<8xf32> to vector<8x1xf32>
      %cst_73 = arith.constant 3.200000e+01 : f32
      %208 = vector.broadcast %cst_73 : f32 to vector<8x1xf32>
      %209 = arith.divf %207, %208 : vector<8x1xf32>
      %210 = vector.broadcast %209 : vector<8x1xf32> to vector<8x32xf32>
      %211 = arith.subf %203, %210 : vector<8x32xf32>
      %212 = arith.mulf %211, %211 : vector<8x32xf32>
      %cst_74 = arith.constant dense<0.000000e+00> : vector<8xf32>
      %213 = vector.multi_reduction <add>, %212, %cst_74 [1] : vector<8x32xf32> to vector<8xf32>
      %214 = vector.shape_cast %213 : vector<8xf32> to vector<8x1xf32>
      %cst_75 = arith.constant 0.0322580636 : f32
      %215 = vector.broadcast %cst_75 : f32 to vector<8x1xf32>
      %216 = arith.mulf %214, %215 : vector<8x1xf32>
      %217 = math.sqrt %216 : vector<8x1xf32>
      %218 = vector.broadcast %204 : vector<1x32xf32> to vector<8x32xf32>
      %219 = arith.mulf %218, %211 : vector<8x32xf32>
      %cst_76 = arith.constant 9.99999974E-6 : f32
      %220 = vector.broadcast %cst_76 : f32 to vector<8x1xf32>
      %221 = arith.addf %217, %220 : vector<8x1xf32>
      %222 = vector.broadcast %221 : vector<8x1xf32> to vector<8x32xf32>
      %223 = arith.divf %219, %222 : vector<8x32xf32>
      %224 = vector.broadcast %205 : vector<1x32xf32> to vector<8x32xf32>
      %225 = arith.addf %223, %224 : vector<8x32xf32>
      %c8 = arith.constant 8 : index
      %c0_77 = arith.constant 0 : index
      %226 = vector.load %arg17[%c8, %c0_77] : memref<16x32xf32, #tpu.memory_space<vmem>>, vector<8x32xf32>
      tpu.vector_store %arg17[%c8, %c0_77], %225 {strides = array<i32>} : memref<16x32xf32, #tpu.memory_space<vmem>>, vector<8x32xf32>,
      %227 = arith.truncf %225 : vector<8x32xf32> to vector<8x32xbf16>
      %c8_78 = arith.constant 8 : index
      %c0_79 = arith.constant 0 : index
      %228 = vector.load %arg18[%c8_78, %c0_79] : memref<16x32xbf16, #tpu.memory_space<vmem>>, vector<8x32xbf16>
      tpu.vector_store %arg18[%c8_78, %c0_79], %227 {strides = array<i32>} : memref<16x32xbf16, #tpu.memory_space<vmem>>, vector<8x32xbf16>,
      %cst_80 = arith.constant 0.000000e+00 : f32
      %229 = vector.broadcast %cst_80 : f32 to vector<16x32xf32>
      %c0_81 = arith.constant 0 : index
      %c0_82 = arith.constant 0 : index
      %230 = vector.load %arg19[%c0_81, %c0_82] : memref<16x32xf32, #tpu.memory_space<vmem>>, vector<16x32xf32>
      tpu.vector_store %arg19[%c0_81, %c0_82], %229 {strides = array<i32>} : memref<16x32xf32, #tpu.memory_space<vmem>>, vector<16x32xf32>,
    } else {
    }
    %c0 = arith.constant 0 : index
    %c0_1 = arith.constant 0 : index
    %3 = vector.load %arg18[%c0, %c0_1] : memref<16x32xbf16, #tpu.memory_space<vmem>>, vector<16x32xbf16>
    %c0_2 = arith.constant 0 : index
    %c0_3 = arith.constant 0 : index
    %4 = vector.load %arg10[%c0_2, %c0_3] : memref<32x64xbf16, #tpu.memory_space<vmem>>, vector<32x64xbf16>
    %cst = arith.constant dense<0.000000e+00> : vector<16x64xf32>
    %5 = tpu.matmul %3, %4, %cst {dimension_numbers = #tpu.dot_dimension_numbers<[1], [0], [0], [1], [0, 0, 1, 1], [], []>} : vector<16x32xbf16>, vector<32x64xbf16>, vector<16x64xf32> -> vector<16x64xf32>
    %c0_4 = arith.constant 0 : index
    %c0_5 = arith.constant 0 : index
    %6 = vector.load %arg11[%c0_4, %c0_5] : memref<1x64xf32, #tpu.memory_space<vmem>>, vector<1x64xf32>
    %7 = vector.broadcast %6 : vector<1x64xf32> to vector<16x64xf32>
    %8 = arith.addf %5, %7 : vector<16x64xf32>
    %cst_6 = arith.constant 0.000000e+00 : f32
    %9 = vector.broadcast %cst_6 : f32 to vector<16x64xf32>
    %10 = arith.maximumf %8, %9 : vector<16x64xf32>
    %c0_7 = arith.constant 0 : index
    %c0_8 = arith.constant 0 : index
    %11 = vector.load %arg19[%c0_7, %c0_8] : memref<16x32xf32, #tpu.memory_space<vmem>>, vector<16x32xf32>
    %12 = arith.truncf %10 : vector<16x64xf32> to vector<16x64xbf16>
    %c0_9 = arith.constant 0 : index
    %c0_10 = arith.constant 0 : index
    %13 = vector.load %arg12[%c0_9, %c0_10] : memref<64x32xbf16, #tpu.memory_space<vmem>>, vector<64x32xbf16>
    %cst_11 = arith.constant dense<0.000000e+00> : vector<16x32xf32>
    %14 = tpu.matmul %12, %13, %cst_11 {dimension_numbers = #tpu.dot_dimension_numbers<[1], [0], [0], [1], [0, 0, 1, 1], [], []>} : vector<16x64xbf16>, vector<64x32xbf16>, vector<16x32xf32> -> vector<16x32xf32>
    %15 = arith.addf %11, %14 : vector<16x32xf32>
    %c0_12 = arith.constant 0 : index
    %c0_13 = arith.constant 0 : index
    %16 = vector.load %arg19[%c0_12, %c0_13] : memref<16x32xf32, #tpu.memory_space<vmem>>, vector<16x32xf32>
    tpu.vector_store %arg19[%c0_12, %c0_13], %15 {strides = array<i32>} : memref<16x32xf32, #tpu.memory_space<vmem>>, vector<16x32xf32>,
    %c0_i32_14 = arith.constant 0 : i32
    %17 = arith.cmpi eq, %arg1, %c0_i32_14 : i32
    %18 = arith.extui %17 : i1 to i32
    %c0_i32_15 = arith.constant 0 : i32
    %19 = arith.cmpi ne, %18, %c0_i32_15 : i32
    scf.if %19 {
      %c0_16 = arith.constant 0 : index
      %c0_17 = arith.constant 0 : index
      %20 = vector.load %arg19[%c0_16, %c0_17] : memref<16x32xf32, #tpu.memory_space<vmem>>, vector<16x32xf32>
      %c0_18 = arith.constant 0 : index
      %c0_19 = arith.constant 0 : index
      %21 = vector.load %arg13[%c0_18, %c0_19] : memref<1x32xf32, #tpu.memory_space<vmem>>, vector<1x32xf32>
      %22 = vector.broadcast %21 : vector<1x32xf32> to vector<16x32xf32>
      %23 = arith.addf %20, %22 : vector<16x32xf32>
      %c0_20 = arith.constant 0 : index
      %c0_21 = arith.constant 0 : index
      %24 = vector.load %arg17[%c0_20, %c0_21] : memref<16x32xf32, #tpu.memory_space<vmem>>, vector<16x32xf32>
      %25 = arith.addf %23, %24 : vector<16x32xf32>
      %c0_22 = arith.constant 0 : index
      %c0_23 = arith.constant 0 : index
      %26 = vector.load %arg14[%c0_22, %c0_23] : memref<1x32xf32, #tpu.memory_space<vmem>>, vector<1x32xf32>
      %c0_24 = arith.constant 0 : index
      %c0_25 = arith.constant 0 : index
      %27 = vector.load %arg15[%c0_24, %c0_25] : memref<1x32xf32, #tpu.memory_space<vmem>>, vector<1x32xf32>
      %cst_26 = arith.constant dense<0.000000e+00> : vector<16xf32>
      %28 = vector.multi_reduction <add>, %25, %cst_26 [1] : vector<16x32xf32> to vector<16xf32>
      %29 = vector.shape_cast %28 : vector<16xf32> to vector<16x1xf32>
      %cst_27 = arith.constant 3.200000e+01 : f32
      %30 = vector.broadcast %cst_27 : f32 to vector<16x1xf32>
      %31 = arith.divf %29, %30 : vector<16x1xf32>
      %32 = vector.broadcast %31 : vector<16x1xf32> to vector<16x32xf32>
      %33 = arith.subf %25, %32 : vector<16x32xf32>
      %34 = arith.mulf %33, %33 : vector<16x32xf32>
      %cst_28 = arith.constant dense<0.000000e+00> : vector<16xf32>
      %35 = vector.multi_reduction <add>, %34, %cst_28 [1] : vector<16x32xf32> to vector<16xf32>
      %36 = vector.shape_cast %35 : vector<16xf32> to vector<16x1xf32>
      %cst_29 = arith.constant 0.0322580636 : f32
      %37 = vector.broadcast %cst_29 : f32 to vector<16x1xf32>
      %38 = arith.mulf %36, %37 : vector<16x1xf32>
      %39 = math.sqrt %38 : vector<16x1xf32>
      %40 = vector.broadcast %26 : vector<1x32xf32> to vector<16x32xf32>
      %41 = arith.mulf %40, %33 : vector<16x32xf32>
      %cst_30 = arith.constant 9.99999974E-6 : f32
      %42 = vector.broadcast %cst_30 : f32 to vector<16x1xf32>
      %43 = arith.addf %39, %42 : vector<16x1xf32>
      %44 = vector.broadcast %43 : vector<16x1xf32> to vector<16x32xf32>
      %45 = arith.divf %41, %44 : vector<16x32xf32>
      %46 = vector.broadcast %27 : vector<1x32xf32> to vector<16x32xf32>
      %47 = arith.addf %45, %46 : vector<16x32xf32>
      %48 = vector.shape_cast %47 : vector<16x32xf32> to vector<2x8x32xf32>
      %49 = arith.truncf %48 : vector<2x8x32xf32> to vector<2x8x32xbf16>
      %c0_31 = arith.constant 0 : index
      %c0_32 = arith.constant 0 : index
      %c0_33 = arith.constant 0 : index
      %50 = vector.load %arg16[%c0_31, %c0_32, %c0_33] : memref<2x8x32xbf16, #tpu.memory_space<vmem>>, vector<2x8x32xbf16>
      tpu.vector_store %arg16[%c0_31, %c0_32, %c0_33], %49 {strides = array<i32>} : memref<2x8x32xbf16, #tpu.memory_space<vmem>>, vector<2x8x32xbf16>,
    } else {
    }
    return
  }
  func.func @transform_0(%arg0: i32, %arg1: i32) -> (i32, i32, i32) {
    %c0_i32 = arith.constant 0 : i32
    %c0_i32_0 = arith.constant 0 : i32
    %c0_i32_1 = arith.constant 0 : i32
    return %arg0, %c0_i32, %c0_i32_0 : i32, i32, i32
  }
  func.func @transform_1(%arg0: i32, %arg1: i32) -> (i32, i32, i32) {
    %c0_i32 = arith.constant 0 : i32
    %c0_i32_0 = arith.constant 0 : i32
    %c0_i32_1 = arith.constant 0 : i32
    return %arg0, %c0_i32, %c0_i32_0 : i32, i32, i32
  }
  func.func @transform_2(%arg0: i32, %arg1: i32) -> (i32, i32) {
    %c0_i32 = arith.constant 0 : i32
    %c0_i32_0 = arith.constant 0 : i32
    %c0_i32_1 = arith.constant 0 : i32
    return %c0_i32, %c0_i32_0 : i32, i32
  }
  func.func @transform_3(%arg0: i32, %arg1: i32) -> (i32, i32) {
    %c0_i32 = arith.constant 0 : i32
    %c0_i32_0 = arith.constant 0 : i32
    %c0_i32_1 = arith.constant 0 : i32
    return %c0_i32, %c0_i32_0 : i32, i32
  }
  func.func @transform_4(%arg0: i32, %arg1: i32) -> (i32, i32) {
    %c0_i32 = arith.constant 0 : i32
    %c0_i32_0 = arith.constant 0 : i32
    %c0_i32_1 = arith.constant 0 : i32
    return %c0_i32, %c0_i32_0 : i32, i32
  }
  func.func @transform_5(%arg0: i32, %arg1: i32) -> (i32, i32) {
    %c0_i32 = arith.constant 0 : i32
    %c0_i32_0 = arith.constant 0 : i32
    %c0_i32_1 = arith.constant 0 : i32
    return %c0_i32, %c0_i32_0 : i32, i32
  }
  func.func @transform_6(%arg0: i32, %arg1: i32) -> (i32, i32) {
    %c0_i32 = arith.constant 0 : i32
    %c0_i32_0 = arith.constant 0 : i32
    %c0_i32_1 = arith.constant 0 : i32
    return %c0_i32, %c0_i32_0 : i32, i32
  }
  func.func @transform_7(%arg0: i32, %arg1: i32) -> (i32, i32) {
    %c0_i32 = arith.constant 0 : i32
    %c0_i32_0 = arith.constant 0 : i32
    %c0_i32_1 = arith.constant 0 : i32
    return %c0_i32, %c0_i32_0 : i32, i32
  }
  func.func @transform_8(%arg0: i32, %arg1: i32) -> (i32, i32) {
    %c0_i32 = arith.constant 0 : i32
    %c0_i32_0 = arith.constant 0 : i32
    return %c0_i32, %arg1 : i32, i32
  }
  func.func @transform_9(%arg0: i32, %arg1: i32) -> (i32, i32) {
    %c0_i32 = arith.constant 0 : i32
    %c0_i32_0 = arith.constant 0 : i32
    return %c0_i32, %arg1 : i32, i32
  }
  func.func @transform_10(%arg0: i32, %arg1: i32) -> (i32, i32) {
    %c0_i32 = arith.constant 0 : i32
    %c0_i32_0 = arith.constant 0 : i32
    return %arg1, %c0_i32 : i32, i32
  }
  func.func @transform_11(%arg0: i32, %arg1: i32) -> (i32, i32) {
    %c0_i32 = arith.constant 0 : i32
    %c0_i32_0 = arith.constant 0 : i32
    %c0_i32_1 = arith.constant 0 : i32
    return %c0_i32, %c0_i32_0 : i32, i32
  }
  func.func @transform_12(%arg0: i32, %arg1: i32) -> (i32, i32) {
    %c0_i32 = arith.constant 0 : i32
    %c0_i32_0 = arith.constant 0 : i32
    %c0_i32_1 = arith.constant 0 : i32
    return %c0_i32, %c0_i32_0 : i32, i32
  }
  func.func @transform_13(%arg0: i32, %arg1: i32) -> (i32, i32) {
    %c0_i32 = arith.constant 0 : i32
    %c0_i32_0 = arith.constant 0 : i32
    %c0_i32_1 = arith.constant 0 : i32
    return %c0_i32, %c0_i32_0 : i32, i32
  }
  func.func @transform_14(%arg0: i32, %arg1: i32) -> (i32, i32, i32) {
    %c0_i32 = arith.constant 0 : i32
    %c0_i32_0 = arith.constant 0 : i32
    %c0_i32_1 = arith.constant 0 : i32
    return %arg0, %c0_i32, %c0_i32_0 : i32, i32, i32
  }
}

</mosaic_0001>

<bundles_post_ra>
// kernel: tnn_forward.2
= control target key start
LH: loop header
LB: loop body
LE: loop exit
PB: predicated region body
PF: predicated region fallthrough
CT: control target
= control target key end

     0   :  { %s2646_s29 = smov 0   ;;  %s2648_s30 = smov 0   ;;  %s2992_s0 = inlined_call_operand.vmem [shape: bf16[4,8,32], index: 0, kind: input, shape index: {}]   ;;  %s2993_s1 = inlined_call_operand.vmem [shape: f32[4,1,8], index: 1, kind: input, shape index: {}]   ;;  %s2994_s2 = inlined_call_operand.vmem [shape: bf16[32,96], index: 2, kind: input, shape index: {}]   ;;  %s2995_s3 = inlined_call_operand.vmem [shape: f32[1,96], index: 3, kind: input, shape index: {}]   ;;  %s2996_s4 = inlined_call_operand.vmem [shape: bf16[32,32], index: 4, kind: input, shape index: {}]   ;;  %s2997_s5 = inlined_call_operand.vmem [shape: f32[1,32], index: 5, kind: input, shape index: {}]   ;;  %s2998_s6 = inlined_call_operand.vmem [shape: f32[1,32], index: 6, kind: input, shape index: {}]   ;;  %s2999_s7 = inlined_call_operand.vmem [shape: f32[1,32], index: 7, kind: input, shape index: {}]   ;;  %s3000_s8 = inlined_call_operand.vmem [shape: bf16[32,64], index: 8, kind: input, shape index: {}]   ;;  %s3001_s9 = inlined_call_operand.vmem [shape: f32[1,64], index: 9, kind: input, shape index: {}]   ;;  %s3002_s10 = inlined_call_operand.vmem [shape: bf16[64,32], index: 10, kind: input, shape index: {}]   ;;  %s3003_s11 = inlined_call_operand.vmem [shape: f32[1,32], index: 11, kind: input, shape index: {}]   ;;  %s3004_s12 = inlined_call_operand.vmem [shape: f32[1,32], index: 12, kind: input, shape index: {}]   ;;  %s3005_s13 = inlined_call_operand.vmem [shape: f32[1,32], index: 13, kind: input, shape index: {}]   ;;  %s3006_s14 = inlined_call_operand.vmem [shape: bf16[4,8,32], index: 14, kind: output, shape index: {}]  }
   0x1   :  { %s2650_s15 = smov 0  }
   0x2 LB: > { %s36_s16 = sadd.s32 1, %s2555_s30  ;;  %p2198_p0 = scmp.ge.s32.totalorder %s2559_s15, 1  ;;  %s2559_s15 = sphi %s2650_s15, %s24_s15   ;;  %s2555_s30 = sphi %s2648_s30, %s3008_s30   ;;  %s2551_s29 = sphi %s2646_s29, %s3007_s29  }
   0x3   : > { %p38_p1 = scmp.ge.s32.totalorder %s36_s16, 2  ;;  %p463_p2 = scmp.lt.s32.totalorder %s2559_s15, 3 }
   0x5   : > { %s3010_s16 = smov (%p38_p1, %s36_s16), 0  ;;  %p464_p3 = pnand %p2198_p0, %p463_p2 }
   0x6   : > { %v2475_v0 = vld [vmem:[%s2994_s2] sm:$0xff] (!%p464_p3)   ;;  %v2561_v1 = vmov (!%p464_p3), 0.0   ;;  %v2476_v2 = vld [vmem:[%s2994_s2 + $0x8] sm:$0xff] (!%p464_p3)   ;;  %vm2562_vm0 = vmmov (!%p464_p3), 0   ;;  %s2199_s21 = sshll.u32 (!%p464_p3), %s2551_s29, 1  ;;  %vm588_vm1 = vcmask (!%p464_p3), 261120   ;;  %v666_v34 = vlaneseq (!%p464_p3) }
   0x7   : > { %467 = sbr.rel (%p464_p3) target bundleno = 3551 (0xddf), region = 76  ;;  %2301 = vmatprep.subr.bf16.mxu1 (!%p464_p3), %v2561_v1  ;;  %2315 = vmatprep.subr.bf16.mxu0 (!%p464_p3), %v2561_v1  ;;  %p526_p4 = scmp.lt.s32.totalorder (!%p464_p3), %s2199_s21, 3  ;;  %1836 = vst.msk [vmem:[#allocation4] sm:$0xff] (!%p464_p3), %vm588_vm1, %v2561_v1  ;;  %1837 = vst.msk [vmem:[#allocation4 + $0x8] sm:$0xff] (!%p464_p3), %vm588_vm1, %v2561_v1  ;;  %v2205_v4 = vld [vmem:[%s2995_s3] ss:$0 sm:$0xff] (!%p464_p3) }
   0x8   : > { %2302 = vmatpush3.bf16.msra.mxu1 (!%p464_p3), %v2475_v0  ;;  %2305 = vmatprep.mubr.msk.bf16.mxu1 (!%p464_p3), %vm2562_vm0, %v2561_v1  ;;  %s2563_s28 = smov (!%p464_p3), 104   ;;  %s2564_s29 = smov (!%p464_p3), 120   ;;  %vm674_vm2 = vcmask (!%p464_p3), 64512   ;;  %v2750_v36 = vshrl.u32 (!%p464_p3), %v666_v34, 7  ;;  %vm921_vm4 = vcmask (!%p464_p3), 1043456   ;;  %vm1122_vm5 = vcmask (!%p464_p3), 130048  }
   0x9   : > { %2303 = vmatprep.subr.bf16.mxu1 (!%p464_p3), %v2561_v1  ;;  %2317 = vmatprep.mubr.msk.bf16.mxu0 (!%p464_p3), %vm2562_vm0, %v2561_v1  ;;  %s2565_s17 = smov (!%p464_p3), 112   ;;  %s2566_s18 = smov (!%p464_p3), 96   ;;  %vm1124_vm6 = vcmask (!%p464_p3), 195584   ;;  %vm1834_vm12 = vcmask (!%p464_p3), 261124   ;;  %vm1233_vm13 = vcmask (!%p464_p3), 257024   ;;  %vm1944_vm14 = vcmask (!%p464_p3), 523264  }
   0xa   : > { %v668_v37 = vsub.s32 (!%p464_p3), 0, %v2750_v36  ;;  %s2567_s24 = smov (!%p464_p3), 64   ;;  %s2568_s20 = smov (!%p464_p3), 8  }
   0xb   : > { %s2570_s26 = smov (!%p464_p3), 24  }
   0xc   : > { %2304 = vmatpush3.bf16.msra.mxu1 (!%p464_p3), %v2476_v2 }
   0xd   : > { %2309 = vmatprep.subr.bf16.mxu1 (!%p464_p3), %v2561_v1 }
   0xe   : > { %s3012_s21 = smov (!%p526_p4, %s2199_s21), 3 }
   0xf   : > { %s2200_s22 = sshll.u32 %s3012_s21, 2  ;;  %s2747_s23 = scalar_lea.vmem %s2993_s1, %s3012_s21 }
  0x10   : > { %s529_s25 = scalar_lea.vmem %s2992_s0, %s2200_s22  ;;  %v662_v35 = vld [vmem:[%s2747_s23] sm:$0x1] }
  0x11   : > { %v2690_v3 = vld [vmem:[%s529_s25] sm:$0xff]   ;;  %vm663_vm3 = vcmp.gt.f32.partialorder %v662_v35, 0.5  ;;  %s2569_s25 = smov 16  }
  0x12   : > { %2306 = vmatmul.mubr.msk.bf16.vlgmr.msra.gmra.mrb[0].mxu1 %vm588_vm1, %v2690_v3  ;;  %v664_v38 = vsel %vm663_vm3, -1e+30, %v2561_v1 }
  0x13   : > { %2311 = vmatprep.mubr.msk.bf16.mxu1 %vm2562_vm0, %v2561_v1  ;;  %v669_v39 = vrot.slane %v664_v38, %v668_v37 }
  0xe5   : > { %v626_v5 = vpop.f32.mrb[0].mxu1 }
  0xe6   : > { %v627_v6 = vadd.f32 %v2205_v4, %v626_v5  ;;  %v2307_v7 = vpop.f32.mrb[1].mxu1 }
  0xe7   : > { %v629_v8 = vpop.f32.mrb[2].mxu1 }
  0xe8   : > { %v2699_v9 = vadd.f32 %v2205_v4, %v629_v8  ;;  %655 = vrot.lane.b32.xlu1 %v627_v6, %s2563_s28  ;;  %649 = vrot.lane.b32.xlu0 %v627_v6, %s2564_s29  ;;  %v2308_v10 = vpop.f32.mrb[3].mxu1  ;;  %v2703_v11 = vpack.c.bf16 %v627_v6, %v627_v6  ;;  %v633_v12 = vmul.f32 0.35355338, %v627_v6 }
  0xea   : > { %v644_v21 = vpack.c.bf16 %v633_v12, %v633_v12 }
  0xec   : > { %652 = vrot.lane.b32.xlu0 %v627_v6, %s2565_s17  ;;  %672 = vrot.lane.b32.xlu1 %v2703_v11, %s2566_s18 }
  0xf0   : > { %635 = vrot.lane.b32.xlu1 %v633_v12, %s2564_s29 }
 0x15a   : > { %v656_v13 = vpop.permute.xlu1 %655  ;;  %v650_v14 = vpop.permute.xlu0 %649 }
 0x15b   : > { %v2709_v15 = vpack.c.bf16 %v656_v13, %v656_v13  ;;  %v2711_v16 = vpack.c.bf16 %v650_v14, %v650_v14 }
 0x15d   : > { %722 = vrot.lane.b32.xlu0 %v2711_v16, %s2566_s18  ;;  %820 = vrot.lane.b32.xlu1 %v2709_v15, %s2566_s18 }
 0x15e   : > { %v653_v17 = vpop.permute.xlu0 %652  ;;  %v673_v18 = vpop.permute.xlu1 %672 }
 0x15f   : > { %v2717_v19 = vpack.c.bf16 %v653_v17, %v653_v17  ;;  %v679_v20 = vsel %vm674_vm2, %v673_v18, 0 }
 0x160   : > { %2310 = vmatpush3.bf16.xpose.msra.mxu1 %v679_v20 }
 0x161   : > { %771 = vrot.lane.b32.xlu0 %v2717_v19, %s2566_s18  ;;  %641 = vrot.lane.b32.xlu1 %v633_v12, %s2563_s28 }
 0x162   : > { %2321 = vmatprep.subr.bf16.mxu1 %v2561_v1  ;;  %v636_v24 = vpop.permute.xlu1 %635 }
 0x163   : > { %v645_v28 = vpack.c.bf16 %v636_v24, %v636_v24 }
 0x165   : > { %638 = vrot.lane.b32.xlu0 %v633_v12, %s2565_s17 }
 0x167   : > { %2312 = vmatmul.mubr.msk.bf16.vlgmr.msra.gmra.mrb[4].mxu1 %vm674_vm2, %v644_v21 }
 0x168   : > { %2323 = vmatprep.mubr.msk.bf16.mxu1 %vm2562_vm0, %v2561_v1 }
 0x1cf   : > { %v723_v22 = vpop.permute.xlu0 %722  ;;  %v821_v27 = vpop.permute.xlu1 %820 }
 0x1d0   : > { %v728_v23 = vsel %vm674_vm2, %v723_v22, 0  ;;  %v826_v30 = vsel %vm674_vm2, %v821_v27, 0 }
 0x1d1   : > { %2316 = vmatpush3.bf16.xpose.msra.mxu0 %v728_v23 }
 0x1d2   : > { %2327 = vmatprep.subr.bf16.mxu0 %v2561_v1 }
 0x1d3   : > { %v772_v25 = vpop.permute.xlu0 %771  ;;  %v642_v32 = vpop.permute.xlu1 %641 }
 0x1d4   : > { %v777_v26 = vsel %vm674_vm2, %v772_v25, 0  ;;  %v647_v33 = vpack.c.bf16 %v642_v32, %v642_v32 }
 0x1d5   : > { %2322 = vmatpush3.bf16.xpose.msra.mxu1 %v777_v26 }
 0x1d6   : > { %2333 = vmatprep.subr.bf16.mxu1 %v2561_v1 }
 0x1d7   : > { %v639_v29 = vpop.permute.xlu0 %638 }
 0x1d8   : > { %2318 = vmatmul.mubr.msk.bf16.vlgmr.msra.gmra.mrb[0].mxu0 %vm674_vm2, %v645_v28  ;;  %v646_v31 = vpack.c.bf16 %v639_v29, %v639_v29 }
 0x1d9   : > { %2328 = vmatpush3.bf16.xpose.msra.mxu0 %v826_v30  ;;  %2329 = vmatprep.mubr.msk.bf16.mxu0 %vm2562_vm0, %v2561_v1 }
 0x1da   : > { %2339 = vmatprep.subr.bf16.mxu0 %v2561_v1 }
 0x1dc   : > { %2324 = vmatmul.mubr.msk.bf16.vlgmr.msra.gmra.mrb[8].mxu1 %vm674_vm2, %v646_v31 }
 0x1dd   : > { %2335 = vmatprep.mubr.msk.bf16.mxu1 %vm2562_vm0, %v2561_v1 }
 0x1e0   : > { %2330 = vmatmul.mubr.msk.bf16.vlgmr.msra.gmra.mrb[4].mxu0 %vm674_vm2, %v647_v33 }
 0x1e1   : > { %2341 = vmatprep.mubr.msk.bf16.mxu0 %vm2562_vm0, %v2561_v1 }
 0x23a   : > { %v715_v40 = vpop.f32.mrb[4].mxu1 }
 0x23b   : > { %v716_v41 = vadd.f32 %v715_v40, %v669_v39  ;;  %v2313_v42 = vpop.f32.mrb[5].mxu1 }
 0x23c   : > { %v718_v43 = vpop.f32.mrb[6].mxu1 }
 0x23d   : > { %v2314_v44 = vpop.f32.mrb[7].mxu1  ;;  %v868_v45 = vsel %vm674_vm2, %v716_v41, -inf }
 0x23e   : > { %869 = vmax.xlane.f32.xlu0 %v868_v45 }
 0x2ab   : > { %v764_v46 = vpop.f32.mrb[0].mxu0 }
 0x2ac   : > { %v765_v47 = vadd.f32 %v764_v46, %v669_v39  ;;  %v2319_v48 = vpop.f32.mrb[1].mxu0 }
 0x2ad   : > { %v767_v49 = vpop.f32.mrb[2].mxu0 }
 0x2ae   : > { %v2320_v50 = vpop.f32.mrb[3].mxu0  ;;  %v871_v51 = vsel %vm674_vm2, %v765_v47, -inf }
 0x2af   : > { %872 = vmax.xlane.f32.xlu1 %v871_v51  ;;  %v813_v52 = vpop.f32.mrb[8].mxu1 }
 0x2b0   : > { %v814_v53 = vadd.f32 %v813_v52, %v669_v39  ;;  %v2325_v54 = vpop.f32.mrb[9].mxu1 }
 0x2b1   : > { %v816_v55 = vpop.f32.mrb[10].mxu1  ;;  %v2479_v54 = vld [vmem:[%s2996_s4 + $0x8] sm:$0xff]  }
 0x2b2   : > { %v2326_v56 = vpop.f32.mrb[11].mxu1  ;;  %v874_v57 = vsel %vm674_vm2, %v814_v53, -inf }
 0x2b3   : > { %v862_v58 = vpop.f32.mrb[4].mxu0  ;;  %875 = vmax.xlane.f32.xlu0 %v874_v57 }
 0x2b4   : > { %v863_v59 = vadd.f32 %v862_v58, %v669_v39  ;;  %v2331_v60 = vpop.f32.mrb[5].mxu0 }
 0x2b5   : > { %v865_v61 = vpop.f32.mrb[6].mxu0 }
 0x2b6   : > { %v2332_v62 = vpop.f32.mrb[7].mxu0  ;;  %v877_v63 = vsel %vm674_vm2, %v863_v59, -inf }
 0x2b7   : > { %878 = vmax.xlane.f32.xlu0 %v877_v63 }
 0x2c0   : > { %916 = vrot.lane.b32.xlu1 %v2703_v11, %s2567_s24 }
 0x2cb   : > { %v870_v0 = vpop.xlane.xlu0 %869 }
 0x2cc   : > { %v880_v2 = vsub.f32 %v716_v41, %v870_v0  ;;  %v2810_v0 = vpack.c.bf16 %v2699_v9, %v2699_v9 }
 0x2ce   : > { %v884_v4 = vmul.f32 1.442695, %v880_v2 }
 0x2d0   : > { %2489 = vpow2.f32 %v884_v4 }
 0x2da   : > { %v2490_v5 = vpop.eup %2489 }
 0x2db   : > { %v892_v6 = vsel %vm674_vm2, %v2490_v5, 0.0 }
 0x2e4   : > { %893 = vadd.xlane.f32.xlu1 %v892_v6  ;;  %v1235_v6 = vmul.f32 0.35355338, %v2699_v9 }
 0x33c   : > { %v873_v7 = vpop.xlane.xlu1 %872 }
 0x33d   : > { %v881_v8 = vsub.f32 %v765_v47, %v873_v7 }
 0x33f   : > { %v886_v10 = vmul.f32 1.442695, %v881_v8 }
 0x340   : > { %v917_v12 = vpop.permute.xlu1 %916  ;;  %v876_v13 = vpop.xlane.xlu0 %875 }
 0x341   : > { %2491 = vpow2.f32 %v886_v10  ;;  %v923_v14 = vsel %vm921_vm4, %v917_v12, 0  ;;  %v882_v17 = vsub.f32 %v814_v53, %v876_v13  ;;  %v2478_v53 = vld [vmem:[%s2996_s4] sm:$0xff]  }
 0x342   : > { %2334 = vmatpush3.bf16.msra.mxu1 %v923_v14 }
 0x343   : > { %v888_v11 = vmul.f32 1.442695, %v882_v17  ;;  %2345 = vmatprep.subr.bf16.mxu1 %v2561_v1 }
 0x344   : > { %v879_v18 = vpop.xlane.xlu0 %878 }
 0x345   : > { %2493 = vpow2.f32 %v888_v11  ;;  %v883_v20 = vsub.f32 %v863_v59, %v879_v18 }
 0x347   : > { %v890_v21 = vmul.f32 1.442695, %v883_v20 }
 0x349   : > { %2495 = vpow2.f32 %v890_v21 }
 0x34b   : > { %v2492_v22 = vpop.eup %2491 }
 0x34c   : > { %v895_v23 = vsel %vm674_vm2, %v2492_v22, 0.0 }
 0x34d   : > { %896 = vadd.xlane.f32.xlu0 %v895_v23 }
 0x34f   : > { %v2494_v24 = vpop.eup %2493 }
 0x350   : > { %v898_v25 = vsel %vm674_vm2, %v2494_v24, 0.0 }
 0x351   : > { %899 = vadd.xlane.f32.xlu1 %v898_v25 }
 0x353   : > { %v2496_v26 = vpop.eup %2495 }
 0x354   : > { %v901_v27 = vsel %vm674_vm2, %v2496_v26, 0.0 }
 0x355   : > { %902 = vadd.xlane.f32.xlu0 %v901_v27 }
 0x362   : > { %1013 = vrot.lane.b32.xlu1 %v2717_v19, %s2567_s24 }
 0x366   : > { %1061 = vrot.lane.b32.xlu1 %v2709_v15, %s2567_s24 }
 0x36a   : > { %1254 = vrot.lane.b32.xlu1 %v2699_v9, %s2565_s17 }
 0x36b   : > { %965 = vrot.lane.b32.xlu0 %v2711_v16, %s2567_s24 }
 0x36f   : > { %1251 = vrot.lane.b32.xlu0 %v2699_v9, %s2564_s29 }
 0x371   : > { %v894_v28 = vpop.xlane.xlu1 %893 }
 0x372   : > { %2497 = vrcp.f32 %v894_v28  ;;  %v1246_v28 = vpack.c.bf16 %v1235_v6, %v1235_v6 }
 0x373   : > { %1257 = vrot.lane.b32.xlu0 %v2699_v9, %s2563_s28 }
 0x37c   : > { %v2498_v29 = vpop.eup %2497 }
 0x37d   : > { %v908_v30 = vmul.f32 %v2498_v29, %v2490_v5 }
 0x37f   : > { %v912_v19 = vpack.c.bf16 %v908_v30, %v908_v30 }
 0x381   : > { %2336 = vmatmul.mubr.msk.bf16.vlgmr.msra.gmra.mrb[12].mxu1 %vm674_vm2, %v912_v19 }
 0x382   : > { %2347 = vmatprep.mubr.msk.bf16.mxu1 %vm2562_vm0, %v2561_v1 }
 0x3da   : > { %v897_v15 = vpop.xlane.xlu0 %896 }
 0x3db   : > { %2499 = vrcp.f32 %v897_v15 }
 0x3de   : > { %v900_v31 = vpop.xlane.xlu1 %899 }
 0x3df   : > { %2501 = vrcp.f32 %v900_v31 }
 0x3e2   : > { %v1014_v16 = vpop.permute.xlu1 %1013  ;;  %v903_v32 = vpop.xlane.xlu0 %902 }
 0x3e3   : > { %v1019_v33 = vsel %vm921_vm4, %v1014_v16, 0  ;;  %2503 = vrcp.f32 %v903_v32 }
 0x3e4   : > { %2346 = vmatpush3.bf16.msra.mxu1 %v1019_v33 }
 0x3e5   : > { %v2500_v34 = vpop.eup %2499  ;;  %2357 = vmatprep.subr.bf16.mxu1 %v2561_v1 }
 0x3e6   : > { %v909_v35 = vmul.f32 %v2500_v34, %v2492_v22  ;;  %v966_v38 = vpop.permute.xlu0 %965  ;;  %v1062_v40 = vpop.permute.xlu1 %1061 }
 0x3e7   : > { %v971_v39 = vsel %vm921_vm4, %v966_v38, 0  ;;  %v1067_v44 = vsel %vm921_vm4, %v1062_v40, 0 }
 0x3e8   : > { %2340 = vmatpush3.bf16.msra.mxu0 %v971_v39  ;;  %v913_v41 = vpack.c.bf16 %v909_v35, %v909_v35  ;;  %v2223_v35 = vld [vmem:[%s2747_s23 + $0x1] sm:$0x1] }
 0x3e9   : > { %v2502_v42 = vpop.eup %2501  ;;  %2351 = vmatprep.subr.bf16.mxu0 %v2561_v1  ;;  %vm1266_vm7 = vcmp.gt.f32.partialorder %v2223_v35, 0.5 }
 0x3ea   : > { %v910_v43 = vmul.f32 %v2502_v42, %v2494_v24  ;;  %v1252_v61 = vpop.permute.xlu0 %1251  ;;  %v1255_v12 = vpop.permute.xlu1 %1254  ;;  %v1267_v38 = vsel %vm1266_vm7, -1e+30, %v2561_v1 }
 0x3eb   : > { %2342 = vmatmul.mubr.msk.bf16.vlgmr.msra.gmra.mrb[8].mxu0 %vm674_vm2, %v913_v41  ;;  %v2816_v7 = vpack.c.bf16 %v1252_v61, %v1252_v61  ;;  %v2823_v14 = vpack.c.bf16 %v1255_v12, %v1255_v12  ;;  %v1272_v41 = vrot.slane %v1267_v38, %v668_v37 }
 0x3ec   : > { %2352 = vmatpush3.bf16.msra.mxu0 %v1067_v44  ;;  %v914_v45 = vpack.c.bf16 %v910_v43, %v910_v43  ;;  %2353 = vmatprep.mubr.msk.bf16.mxu0 %vm2562_vm0, %v2561_v1 }
 0x3ed   : > { %v2504_v46 = vpop.eup %2503  ;;  %2365 = vmatprep.subr.bf16.mxu0 %v2561_v1 }
 0x3ee   : > { %v911_v47 = vmul.f32 %v2504_v46, %v2496_v26  ;;  %2348 = vmatmul.mubr.msk.bf16.vlgmr.msra.gmra.mrb[16].mxu1 %vm674_vm2, %v914_v45  ;;  %v1258_v8 = vpop.permute.xlu0 %1257 }
 0x3ef   : > { %2361 = vmatprep.mubr.msk.bf16.mxu1 %vm2562_vm0, %v2561_v1  ;;  %2358 = vmatpush3.bf16.msra.mxu1 %v2478_v53  ;;  %v2821_v13 = vpack.c.bf16 %v1258_v8, %v1258_v8 }
 0x3f0   : > { %v915_v48 = vpack.c.bf16 %v911_v47, %v911_v47  ;;  %2359 = vmatprep.subr.bf16.mxu1 %v2561_v1 }
 0x3f3   : > { %2354 = vmatmul.mubr.msk.bf16.vlgmr.msra.gmra.mrb[12].mxu0 %vm674_vm2, %v915_v48  ;;  %2360 = vmatpush3.bf16.msra.mxu1 %v2479_v54 }
 0x3f4   : > { %2367 = vmatprep.mubr.msk.bf16.mxu0 %vm2562_vm0, %v2561_v1  ;;  %2371 = vmatprep.subr.bf16.mxu1 %v2561_v1 }
 0x454   : > { %v959_v49 = vpop.f32.mrb[12].mxu1 }
 0x455   : > { %v2337_v50 = vpop.f32.mrb[13].mxu1 }
 0x456   : > { %v962_v51 = vpop.f32.mrb[14].mxu1 }
 0x457   : > { %v2338_v52 = vpop.f32.mrb[15].mxu1 }
 0x4be   : > { %v1007_v55 = vpop.f32.mrb[8].mxu0 }
 0x4bf   : > { %1110 = vrot.lane.b32.xlu1 %v1007_v55, %s2568_s20  ;;  %v2343_v56 = vpop.f32.mrb[9].mxu0 }
 0x4c0   : > { %v1010_v57 = vpop.f32.mrb[10].mxu0 }
 0x4c1   : > { %v2344_v58 = vpop.f32.mrb[11].mxu0  ;;  %v1055_v59 = vpop.f32.mrb[16].mxu1 }
 0x4c2   : > { %1114 = vrot.lane.b32.xlu0 %v1055_v59, %s2569_s25  ;;  %v2349_v60 = vpop.f32.mrb[17].mxu1 }
 0x4c3   : > { %v1058_v62 = vpop.f32.mrb[18].mxu1 }
 0x4c4   : > { %v2350_v63 = vpop.f32.mrb[19].mxu1 }
 0x4c6   : > { %v1103_v2 = vpop.f32.mrb[12].mxu0  ;;  %1275 = vrot.lane.b32.xlu0 %v2810_v0, %s2566_s18 }
 0x4c7   : > { %1118 = vrot.lane.b32.xlu1 %v1103_v2, %s2570_s26  ;;  %v2355_v4 = vpop.f32.mrb[13].mxu0 }
 0x4c8   : > { %v1106_v5 = vpop.f32.mrb[14].mxu0 }
 0x4c9   : > { %v2356_v10 = vpop.f32.mrb[15].mxu0 }
 0x4ca   : > { %1237 = vrot.lane.b32.xlu0 %v1235_v6, %s2564_s29 }
 0x4cb   : > { %1324 = vrot.lane.b32.xlu1 %v2816_v7, %s2566_s18 }
 0x4ce   : > { %1422 = vrot.lane.b32.xlu0 %v2821_v13, %s2566_s18 }
 0x4cf   : > { %1373 = vrot.lane.b32.xlu1 %v2823_v14, %s2566_s18 }
 0x4d2   : > { %1243 = vrot.lane.b32.xlu0 %v1235_v6, %s2563_s28 }
 0x4d3   : > { %1240 = vrot.lane.b32.xlu1 %v1235_v6, %s2565_s17 }
 0x531   : > { %v1111_v17 = vpop.permute.xlu1 %1110 }
 0x532   : > { %v1121_v11 = vsel %vm674_vm2, %v959_v49, %v1111_v17 }
 0x534   : > { %v1115_v9 = vpop.permute.xlu0 %1114 }
 0x535   : > { %v1123_v20 = vsel %vm1122_vm5, %v1121_v11, %v1115_v9 }
 0x538   : > { %v1276_v18 = vpop.permute.xlu0 %1275 }
 0x539   : > { %v1281_v21 = vsel %vm674_vm2, %v1276_v18, 0  ;;  %v1119_v22 = vpop.permute.xlu1 %1118 }
 0x53a   : > { %v1125_v23 = vsel %vm1124_vm6, %v1123_v20, %v1119_v22  ;;  %2366 = vmatpush3.bf16.xpose.msra.mxu0 %v1281_v21 }
 0x53b   : > { %v1126_v24 = vpack.c.bf16 %v1125_v23, %v1125_v23  ;;  %2377 = vmatprep.subr.bf16.mxu0 %v2561_v1 }
 0x53c   : > { %v1238_v25 = vpop.permute.xlu0 %1237 }
 0x53d   : > { %v1325_v26 = vpop.permute.xlu1 %1324  ;;  %2362 = vmatmul.mubr.msk.bf16.vlgmr.msra.gmra.mrb[20].mxu1 %vm588_vm1, %v1126_v24  ;;  %v1247_v15 = vpack.c.bf16 %v1238_v25, %v1238_v25 }
 0x53e   : > { %v1330_v27 = vsel %vm674_vm2, %v1325_v26, 0  ;;  %2373 = vmatprep.mubr.msk.bf16.mxu1 %vm2562_vm0, %v2561_v1 }
 0x53f   : > { %2372 = vmatpush3.bf16.xpose.msra.mxu1 %v1330_v27 }
 0x540   : > { %2383 = vmatprep.subr.bf16.mxu1 %v2561_v1  ;;  %v1423_v19 = vpop.permute.xlu0 %1422 }
 0x541   : > { %v1374_v29 = vpop.permute.xlu1 %1373  ;;  %2368 = vmatmul.mubr.msk.bf16.vlgmr.msra.gmra.mrb[16].mxu0 %vm674_vm2, %v1246_v28  ;;  %v1428_v16 = vsel %vm674_vm2, %v1423_v19, 0 }
 0x542   : > { %v1379_v30 = vsel %vm674_vm2, %v1374_v29, 0  ;;  %2379 = vmatprep.mubr.msk.bf16.mxu0 %vm2562_vm0, %v2561_v1 }
 0x543   : > { %2378 = vmatpush3.bf16.xpose.msra.mxu0 %v1379_v30 }
 0x544   : > { %2389 = vmatprep.subr.bf16.mxu0 %v2561_v1  ;;  %v1244_v33 = vpop.permute.xlu0 %1243 }
 0x545   : > { %v1241_v31 = vpop.permute.xlu1 %1240  ;;  %v1249_v34 = vpack.c.bf16 %v1244_v33, %v1244_v33 }
 0x546   : > { %2374 = vmatmul.mubr.msk.bf16.vlgmr.msra.gmra.mrb[24].mxu1 %vm674_vm2, %v1247_v15  ;;  %v1248_v32 = vpack.c.bf16 %v1241_v31, %v1241_v31 }
 0x547   : > { %2384 = vmatpush3.bf16.xpose.msra.mxu1 %v1428_v16  ;;  %2385 = vmatprep.mubr.msk.bf16.mxu1 %vm2562_vm0, %v2561_v1 }
 0x548   : > { %2395 = vmatprep.subr.bf16.mxu1 %v2561_v1 }
 0x54a   : > { %2380 = vmatmul.mubr.msk.bf16.vlgmr.msra.gmra.mrb[20].mxu0 %vm674_vm2, %v1248_v32 }
 0x54b   : > { %2391 = vmatprep.mubr.msk.bf16.mxu0 %vm2562_vm0, %v2561_v1 }
 0x54e   : > { %2386 = vmatmul.mubr.msk.bf16.vlgmr.msra.gmra.mrb[28].mxu1 %vm674_vm2, %v1249_v34 }
 0x54f   : > { %2397 = vmatprep.mubr.msk.bf16.mxu1 %vm2562_vm0, %v2561_v1 }
 0x610   : > { %v2859_v39 = vpop.f32.mrb[20].mxu1 }
 0x611   : > { %v2363_v40 = vpop.f32.mrb[21].mxu1 }
 0x612   : > { %v1190_v42 = vpop.f32.mrb[22].mxu1 }
 0x613   : > { %v2364_v43 = vpop.f32.mrb[23].mxu1 }
 0x614   : > { %v1317_v44 = vpop.f32.mrb[16].mxu0 }
 0x615   : > { %v1318_v45 = vadd.f32 %v1317_v44, %v1272_v41  ;;  %v2369_v46 = vpop.f32.mrb[17].mxu0 }
 0x616   : > { %v1320_v47 = vpop.f32.mrb[18].mxu0 }
 0x617   : > { %v2370_v48 = vpop.f32.mrb[19].mxu0  ;;  %v1470_v49 = vsel %vm674_vm2, %v1318_v45, -inf }
 0x618   : > { %1471 = vmax.xlane.f32.xlu1 %v1470_v49 }
 0x619   : > { %v1366_v50 = vpop.f32.mrb[24].mxu1 }
 0x61a   : > { %v1367_v51 = vadd.f32 %v1366_v50, %v1272_v41  ;;  %v2375_v52 = vpop.f32.mrb[25].mxu1 }
 0x61b   : > { %v1369_v53 = vpop.f32.mrb[26].mxu1  ;;  %v2481_v52 = vld [vmem:[%s2996_s4 + $0x8] sm:$0xff]  }
 0x61c   : > { %v2376_v54 = vpop.f32.mrb[27].mxu1  ;;  %v1473_v55 = vsel %vm674_vm2, %v1367_v51, -inf }
 0x61d   : > { %v1415_v56 = vpop.f32.mrb[20].mxu0  ;;  %1474 = vmax.xlane.f32.xlu0 %v1473_v55 }
 0x61e   : > { %v1416_v36 = vadd.f32 %v1415_v56, %v1272_v41  ;;  %v2381_v37 = vpop.f32.mrb[21].mxu0 }
 0x61f   : > { %v1418_v57 = vpop.f32.mrb[22].mxu0 }
 0x620   : > { %v2382_v58 = vpop.f32.mrb[23].mxu0  ;;  %v1476_v59 = vsel %vm674_vm2, %v1416_v36, -inf }
 0x621   : > { %1477 = vmax.xlane.f32.xlu0 %v1476_v59  ;;  %v1464_v60 = vpop.f32.mrb[28].mxu1 }
 0x622   : > { %v1465_v61 = vadd.f32 %v1464_v60, %v1272_v41  ;;  %v2387_v62 = vpop.f32.mrb[29].mxu1 }
 0x623   : > { %v1467_v63 = vpop.f32.mrb[30].mxu1 }
 0x624   : > { %v2388_v2 = vpop.f32.mrb[31].mxu1  ;;  %v1479_v4 = vsel %vm674_vm2, %v1465_v61, -inf }
 0x625   : > { %1480 = vmax.xlane.f32.xlu1 %v1479_v4 }
 0x636   : > { %1566 = vrot.lane.b32.xlu1 %v2816_v7, %s2567_s24 }
 0x6a5   : > { %v1472_v5 = vpop.xlane.xlu1 %1471 }
 0x6a6   : > { %v1482_v6 = vsub.f32 %v1318_v45, %v1472_v5 }
 0x6a8   : > { %v1486_v8 = vmul.f32 1.442695, %v1482_v6  ;;  %v2217_v6 = vld [vmem:[%s2997_s5] ss:$0 sm:$0xff] }
 0x6aa   : > { %2505 = vpow2.f32 %v1486_v8  ;;  %v1475_v10 = vpop.xlane.xlu0 %1474  ;;  %v1188_v8 = vadd.f32 %v2217_v6, %v2859_v39  ;;  %v563_v39 = vunpack.c.h.bf16 %v2690_v3 }
 0x6ab   : > { %v1483_v12 = vsub.f32 %v1367_v51, %v1475_v10  ;;  %v2480_v51 = vld [vmem:[%s2996_s4] sm:$0xff]   ;;  %v562_v10 = vunpack.c.l.bf16 %v2690_v3 }
 0x6ad   : > { %v1488_v9 = vmul.f32 1.442695, %v1483_v12  ;;  %v1193_v12 = vadd.f32 %v1188_v8, %v562_v10  ;;  %v2486_v8 = vld [vmem:[%s3002_s10 + $0x10] sm:$0xff]   ;;  %v2487_v10 = vld [vmem:[%s3002_s10 + $0x18] sm:$0xff]  }
 0x6ae   : > { %v1478_v17 = vpop.xlane.xlu0 %1477 }
 0x6af   : > { %2507 = vpow2.f32 %v1488_v9  ;;  %v1484_v11 = vsub.f32 %v1416_v36, %v1478_v17  ;;  %v1196_v9 = vsel %vm588_vm1, %v1193_v12, 0.0 }
 0x6b1   : > { %v1490_v18 = vmul.f32 1.442695, %v1484_v11 }
 0x6b2   : > { %v1481_v20 = vpop.xlane.xlu1 %1480 }
 0x6b3   : > { %2509 = vpow2.f32 %v1490_v18  ;;  %v1485_v21 = vsub.f32 %v1465_v61, %v1481_v20 }
 0x6b4   : > { %v2506_v22 = vpop.eup %2505 }
 0x6b5   : > { %v1492_v23 = vmul.f32 1.442695, %v1485_v21  ;;  %v1494_v24 = vsel %vm674_vm2, %v2506_v22, 0.0 }
 0x6b6   : > { %1495 = vadd.xlane.f32.xlu0 %v1494_v24  ;;  %v1567_v7 = vpop.permute.xlu1 %1566 }
 0x6b7   : > { %2511 = vpow2.f32 %v1492_v23  ;;  %v1572_v25 = vsel %vm921_vm4, %v1567_v7, 0 }
 0x6b8   : > { %2396 = vmatpush3.bf16.msra.mxu1 %v1572_v25 }
 0x6b9   : > { %v2508_v26 = vpop.eup %2507  ;;  %2407 = vmatprep.subr.bf16.mxu1 %v2561_v1 }
 0x6ba   : > { %v1497_v27 = vsel %vm674_vm2, %v2508_v26, 0.0 }
 0x6bb   : > { %1498 = vadd.xlane.f32.xlu1 %v1497_v27 }
 0x6bd   : > { %v2510_v28 = vpop.eup %2509 }
 0x6be   : > { %v1500_v29 = vsel %vm674_vm2, %v2510_v28, 0.0 }
 0x6bf   : > { %1501 = vadd.xlane.f32.xlu0 %v1500_v29 }
 0x6c1   : > { %v2512_v30 = vpop.eup %2511 }
 0x6c2   : > { %v1503_v19 = vsel %vm674_vm2, %v2512_v30, 0.0 }
 0x6c3   : > { %1504 = vadd.xlane.f32.xlu1 %v1503_v19 }
 0x6d4   : > { %1614 = vrot.lane.b32.xlu1 %v2823_v14, %s2567_s24 }
 0x6d5   : > { %1518 = vrot.lane.b32.xlu0 %v2810_v0, %s2567_s24 }
 0x6d9   : > { %1662 = vrot.lane.b32.xlu0 %v2821_v13, %s2567_s24 }
 0x743   : > { %v1496_v15 = vpop.xlane.xlu0 %1495 }
 0x744   : > { %2513 = vrcp.f32 %v1496_v15 }
 0x748   : > { %v1499_v31 = vpop.xlane.xlu1 %1498 }
 0x749   : > { %2515 = vrcp.f32 %v1499_v31 }
 0x74c   : > { %v1502_v16 = vpop.xlane.xlu0 %1501 }
 0x74d   : > { %2517 = vrcp.f32 %v1502_v16 }
 0x74e   : > { %v2514_v32 = vpop.eup %2513 }
 0x74f   : > { %v1510_v33 = vmul.f32 %v2514_v32, %v2506_v22 }
 0x750   : > { %v1519_v34 = vpop.permute.xlu0 %1518  ;;  %v1505_v35 = vpop.xlane.xlu1 %1504 }
 0x751   : > { %v1524_v38 = vsel %vm921_vm4, %v1519_v34, 0  ;;  %2519 = vrcp.f32 %v1505_v35  ;;  %v1514_v40 = vpack.c.bf16 %v1510_v33, %v1510_v33 }
 0x752   : > { %2390 = vmatpush3.bf16.msra.mxu0 %v1524_v38  ;;  %v2482_v38 = vld [vmem:[%s3000_s8] sm:$0xff]  }
 0x753   : > { %v2516_v14 = vpop.eup %2515  ;;  %2401 = vmatprep.subr.bf16.mxu0 %v2561_v1 }
 0x754   : > { %v1511_v0 = vmul.f32 %v2516_v14, %v2508_v26  ;;  %v1615_v13 = vpop.permute.xlu1 %1614  ;;  %v1663_v41 = vpop.permute.xlu0 %1662  ;;  %v2483_v14 = vld [vmem:[%s3000_s8 + $0x8] sm:$0xff]  }
 0x755   : > { %v1620_v42 = vsel %vm921_vm4, %v1615_v13, 0  ;;  %2392 = vmatmul.mubr.msk.bf16.vlgmr.msra.gmra.mrb[24].mxu0 %vm674_vm2, %v1514_v40  ;;  %v1668_v46 = vsel %vm921_vm4, %v1663_v41, 0  ;;  %v2484_v40 = vld [vmem:[%s3002_s10] sm:$0xff]  }
 0x756   : > { %2402 = vmatpush3.bf16.msra.mxu0 %v1620_v42  ;;  %v1515_v43 = vpack.c.bf16 %v1511_v0, %v1511_v0  ;;  %2403 = vmatprep.mubr.msk.bf16.mxu0 %vm2562_vm0, %v2561_v1  ;;  %v2485_v0 = vld [vmem:[%s3002_s10 + $0x8] sm:$0xff]  }
 0x757   : > { %v2518_v44 = vpop.eup %2517  ;;  %2413 = vmatprep.subr.bf16.mxu0 %v2561_v1 }
 0x758   : > { %v1512_v45 = vmul.f32 %v2518_v44, %v2510_v28  ;;  %2398 = vmatmul.mubr.msk.bf16.vlgmr.msra.gmra.mrb[32].mxu1 %vm674_vm2, %v1515_v43 }
 0x759   : > { %2408 = vmatpush3.bf16.msra.mxu1 %v1668_v46  ;;  %2409 = vmatprep.mubr.msk.bf16.mxu1 %vm2562_vm0, %v2561_v1 }
 0x75a   : > { %v1516_v47 = vpack.c.bf16 %v1512_v45, %v1512_v45  ;;  %2421 = vmatprep.subr.bf16.mxu1 %v2561_v1 }
 0x75b   : > { %v2520_v48 = vpop.eup %2519 }
 0x75c   : > { %v1513_v49 = vmul.f32 %v2520_v48, %v2512_v30 }
 0x75d   : > { %2404 = vmatmul.mubr.msk.bf16.vlgmr.msra.gmra.mrb[28].mxu0 %vm674_vm2, %v1516_v47 }
 0x75e   : > { %v1517_v50 = vpack.c.bf16 %v1513_v49, %v1513_v49  ;;  %2417 = vmatprep.mubr.msk.bf16.mxu0 %vm2562_vm0, %v2561_v1  ;;  %2414 = vmatpush3.bf16.msra.mxu0 %v2480_v51 }
 0x75f   : > { %2415 = vmatprep.subr.bf16.mxu0 %v2561_v1 }
 0x760   : > { %2410 = vmatmul.mubr.msk.bf16.vlgmr.msra.gmra.mrb[36].mxu1 %vm674_vm2, %v1517_v50 }
 0x761   : > { %2425 = vmatprep.mubr.msk.bf16.mxu1 %vm2562_vm0, %v2561_v1  ;;  %2422 = vmatpush3.bf16.msra.mxu1 %v2482_v38 }
 0x762   : > { %2416 = vmatpush3.bf16.msra.mxu0 %v2481_v52  ;;  %2423 = vmatprep.subr.bf16.mxu1 %v2561_v1 }
 0x763   : > { %2429 = vmatprep.subr.bf16.mxu0 %v2561_v1 }
 0x765   : > { %2424 = vmatpush3.bf16.msra.mxu1 %v2483_v14 }
 0x828   : > { %v1560_v53 = vpop.f32.mrb[24].mxu0 }
 0x829   : > { %v2393_v54 = vpop.f32.mrb[25].mxu0 }
 0x82a   : > { %v1563_v55 = vpop.f32.mrb[26].mxu0 }
 0x82b   : > { %v2394_v56 = vpop.f32.mrb[27].mxu0  ;;  %v1608_v36 = vpop.f32.mrb[32].mxu1 }
 0x82c   : > { %1711 = vrot.lane.b32.xlu1 %v1608_v36, %s2568_s20  ;;  %v2399_v37 = vpop.f32.mrb[33].mxu1  ;;  %v2221_v56 = vld [vmem:[%s2998_s6] ss:$0 sm:$0xff] }
 0x82d   : > { %v1611_v57 = vpop.f32.mrb[34].mxu1 }
 0x82e   : > { %v2400_v58 = vpop.f32.mrb[35].mxu1  ;;  %v2237_v57 = vld [vmem:[%s2999_s7] ss:$0 sm:$0xff] }
 0x830   : > { %v1656_v59 = vpop.f32.mrb[28].mxu0 }
 0x831   : > { %1715 = vrot.lane.b32.xlu0 %v1656_v59, %s2569_s25  ;;  %v2405_v60 = vpop.f32.mrb[29].mxu0 }
 0x832   : > { %v1659_v61 = vpop.f32.mrb[30].mxu0 }
 0x833   : > { %v2406_v62 = vpop.f32.mrb[31].mxu0  ;;  %v1704_v63 = vpop.f32.mrb[36].mxu1 }
 0x834   : > { %1719 = vrot.lane.b32.xlu1 %v1704_v63, %s2570_s26  ;;  %v2411_v2 = vpop.f32.mrb[37].mxu1  ;;  %s553_s26 = scalar_lea.vmem %s3006_s14, %s2200_s22 }
 0x835   : > { %v1707_v4 = vpop.f32.mrb[38].mxu1 }
 0x836   : > { %v2412_v5 = vpop.f32.mrb[39].mxu1 }
 0x858   : > { %1197 = vadd.xlane.f32.xlu1 %v1196_v9 }
 0x89e   : > { %v1712_v17 = vpop.permute.xlu1 %1711 }
 0x89f   : > { %v1722_v18 = vsel %vm674_vm2, %v1560_v53, %v1712_v17 }
 0x8a3   : > { %v1716_v11 = vpop.permute.xlu0 %1715 }
 0x8a4   : > { %v1723_v20 = vsel %vm1122_vm5, %v1722_v18, %v1716_v11 }
 0x8a6   : > { %v1720_v21 = vpop.permute.xlu1 %1719 }
 0x8a7   : > { %v1724_v22 = vsel %vm1124_vm6, %v1723_v20, %v1720_v21 }
 0x8a8   : > { %v1725_v23 = vpack.c.bf16 %v1724_v22, %v1724_v22 }
 0x8aa   : > { %2418 = vmatmul.mubr.msk.bf16.vlgmr.msra.gmra.mrb[32].mxu0 %vm588_vm1, %v1725_v23 }
 0x8ab   : > { %2437 = vmatprep.mubr.msk.bf16.mxu0 %vm2562_vm0, %v2561_v1  ;;  %2430 = vmatpush3.bf16.msra.mxu0 %v2484_v40 }
 0x8ac   : > { %2431 = vmatprep.subr.bf16.mxu0 %v2561_v1 }
 0x8af   : > { %2432 = vmatpush3.bf16.msra.mxu0 %v2485_v0 }
 0x8b0   : > { %2433 = vmatprep.subr.bf16.mxu0 %v2561_v1 }
 0x8b3   : > { %2434 = vmatpush3.bf16.msra.mxu0 %v2486_v8 }
 0x8b4   : > { %2435 = vmatprep.subr.bf16.mxu0 %v2561_v1  ;;  %v1909_v1 = vld [vmem:[#allocation4] sm:$0xff] }
 0x8b7   : > { %2436 = vmatpush3.bf16.msra.mxu0 %v2487_v10 }
 0x8e5   : > { %v1198_v30 = vpop.xlane.xlu1 %1197 }
 0x8e6   : > { %v1200_v19 = vmul.f32 0.03125, %v1198_v30  ;;  %v2247_v30 = vld [vmem:[%s3003_s11] ss:$0 sm:$0xff] }
 0x8e8   : > { %v1201_v16 = vsub.f32 %v1193_v12, %v1200_v19  ;;  %v2238_v12 = vld [vmem:[%s3001_s9] ss:$0 sm:$0xff] }
 0x8ea   : > { %v1202_v35 = vmul.f32 %v1201_v16, %v1201_v16  ;;  %v1220_v59 = vmul.f32 %v2221_v56, %v1201_v16 }
 0x8ec   : > { %v1203_v3 = vsel %vm588_vm1, %v1202_v35, 0.0 }
 0x97d   : > { %v1786_v24 = vpop.f32.mrb[32].mxu0 }
 0x97e   : > { %v1787_v7 = vadd.f32 %v2217_v6, %v1786_v24  ;;  %v2419_v25 = vpop.f32.mrb[33].mxu0 }
 0x97f   : > { %v1789_v26 = vpop.f32.mrb[34].mxu0 }
 0x980   : > { %v2420_v27 = vpop.f32.mrb[35].mxu0  ;;  %v1792_v28 = vadd.f32 %v1787_v7, %v563_v39  ;;  %v1910_v7 = vld [vmem:[#allocation4 + $0x8] sm:$0xff] }
 0x982   : > { %v1795_v29 = vsel %vm588_vm1, %v1792_v28, 0.0 }
 0x983   : > { %1796 = vadd.xlane.f32.xlu0 %v1795_v29 }
 0xa10   : > { %v1797_v15 = vpop.xlane.xlu0 %1796 }
 0xa11   : > { %v1798_v31 = vmul.f32 0.03125, %v1797_v15 }
 0xa13   : > { %v1799_v32 = vsub.f32 %v1792_v28, %v1798_v31 }
 0xa15   : > { %v1800_v33 = vmul.f32 %v1799_v32, %v1799_v32  ;;  %v1818_v36 = vmul.f32 %v2221_v56, %v1799_v32 }
 0xa17   : > { %v1801_v34 = vsel %vm588_vm1, %v1800_v33, 0.0 }
 0xa18   : > { %1802 = vadd.xlane.f32.xlu0 %v1801_v34 }
 0xa1c   : > { %1204 = vadd.xlane.f32.xlu0 %v1203_v3 }
 0xaa5   : > { %v1803_v13 = vpop.xlane.xlu0 %1802 }
 0xaa6   : > { %v1804_v41 = vmul.f32 0.032258064, %v1803_v13 }
 0xaa8   : > { %2521 = vrsqrt.f32 %v1804_v41  ;;  %vm1807_vm8 = vcmp.eq.f32.partialorder %v1804_v41, inf  ;;  %v1810_v46 = vand.u32 2147483648, %v1804_v41  ;;  %vm1809_vm9 = vcmp.eq.f32.partialorder %v1804_v41, 0.0 }
 0xaa9   : > { %v1205_v42 = vpop.xlane.xlu0 %1204 }
 0xaaa   : > { %v1206_v43 = vmul.f32 0.032258064, %v1205_v42 }
 0xaac   : > { %2523 = vrsqrt.f32 %v1206_v43  ;;  %vm1209_vm10 = vcmp.eq.f32.partialorder %v1206_v43, inf  ;;  %v1212_v52 = vand.u32 2147483648, %v1206_v43  ;;  %vm1211_vm11 = vcmp.eq.f32.partialorder %v1206_v43, 0.0 }
 0xab2   : > { %v2522_v44 = vpop.eup %2521 }
 0xab3   : > { %v1806_v45 = vmul.f32 %v2522_v44, %v1804_v41 }
 0xab5   : > { %v1808_v47 = vsel %vm1807_vm8, %v1804_v41, %v1806_v45 }
 0xab6   : > { %v2524_v48 = vpop.eup %2523  ;;  %v1811_v49 = vsel %vm1809_vm9, %v1810_v46, %v1808_v47 }
 0xab7   : > { %v1819_v50 = vadd.f32 1e-05, %v1811_v49  ;;  %v1208_v51 = vmul.f32 %v2524_v48, %v1206_v43 }
 0xab9   : > { %2525 = vrcp.f32 %v1819_v50  ;;  %v1210_v53 = vsel %vm1209_vm10, %v1206_v43, %v1208_v51 }
 0xaba   : > { %v1213_v54 = vsel %vm1211_vm11, %v1212_v52, %v1210_v53 }
 0xabb   : > { %v1221_v55 = vadd.f32 1e-05, %v1213_v54 }
 0xabd   : > { %2527 = vrcp.f32 %v1221_v55 }
 0xac3   : > { %v2526_v37 = vpop.eup %2525 }
 0xac4   : > { %v1821_v58 = vmul.f32 %v2526_v37, %v1818_v36 }
 0xac6   : > { %v1828_v60 = vadd.f32 %v2237_v57, %v1821_v58 }
 0xac7   : > { %v2528_v61 = vpop.eup %2527 }
 0xac8   : > { %v1830_v62 = vpack.c.bf16 %v1828_v60, %v1828_v60  ;;  %1829 = vst.msk [vmem:[#allocation2 + $0x8] sm:$0xff] %vm588_vm1, %v1828_v60  ;;  %v1223_v63 = vmul.f32 %v2528_v61, %v1220_v59  ;;  %v2248_v61 = vld [vmem:[%s3004_s12] ss:$0 sm:$0xff] }
 0xaca   : > { %v1832_v2 = vrot.slane %v1830_v62, 4  ;;  %v1230_v4 = vadd.f32 %v2237_v57, %v1223_v63 }
 0xacc   : > { %v1232_v5 = vpack.c.bf16 %v1230_v4, %v1230_v4  ;;  %1231 = vst.msk [vmem:[#allocation2] sm:$0xff] %vm588_vm1, %v1230_v4 }
 0xacd   : > { %1835 = vst.msk [vmem:[#allocation3] sm:$0xf0] %vm1834_vm12, %v1832_v2  ;;  %v2249_v2 = vld [vmem:[%s3005_s13] ss:$0 sm:$0xff] }
 0xace   : > { %1234 = vst.msk [vmem:[#allocation3] sm:$0xf] %vm1233_vm13, %v1232_v5 }
 0xacf   : > { %v2008_v34 = vld [vmem:[#allocation2 + $0x8] sm:$0xff] }
 0xad3   : > { %v2007_v31 = vld [vmem:[#allocation2] sm:$0xff] }
 0xad5   : > { %v1838_v6 = vld [vmem:[#allocation3] sm:$0xff] }
 0xad6   : > { %2426 = vmatmul.mubr.msk.bf16.vlgmr.msra.gmra.mrb[40].mxu1 %vm588_vm1, %v1838_v6 }
 0xba9   : > { %v1900_v9 = vpop.f32.mrb[40].mxu1 }
 0xbaa   : > { %v1901_v17 = vadd.f32 %v2238_v12, %v1900_v9  ;;  %v2427_v11 = vpop.f32.mrb[41].mxu1 }
 0xbab   : > { %v1903_v18 = vpop.f32.mrb[42].mxu1 }
 0xbac   : > { %v1904_v20 = vadd.f32 %v2238_v12, %v1903_v18  ;;  %v2428_v21 = vpop.f32.mrb[43].mxu1  ;;  %v1907_v22 = vmax.f32 %v1901_v17, 0.0 }
 0xbae   : > { %v1908_v23 = vmax.f32 %v1904_v20, 0.0 }
 0xbb0   : > { %v1911_v39 = vpack.c.bf16 %v1908_v23, %v1907_v22 }
 0xbb2   : > { %2438 = vmatmul.mubr.msk.bf16.vlgmr.msra.gmra.mrb[36].mxu0 %vm1944_vm14, %v1911_v39 }
 0xc85   : > { %v1982_v24 = vpop.f32.mrb[36].mxu0 }
 0xc86   : > { %v1989_v25 = vadd.f32 %v1982_v24, %v1909_v1  ;;  %v2439_v26 = vpop.f32.mrb[37].mxu0 }
 0xc87   : > { %v1985_v27 = vpop.f32.mrb[38].mxu0 }
 0xc88   : > { %1991 = vst.msk [vmem:[#allocation4] sm:$0xff] %vm588_vm1, %v1989_v25  ;;  %v1990_v28 = vadd.f32 %v1985_v27, %v1910_v7  ;;  %v2440_v29 = vpop.f32.mrb[39].mxu0 }
 0xc8a   : > { %1992 = vst.msk [vmem:[#allocation4 + $0x8] sm:$0xff] %vm588_vm1, %v1990_v28 }
 0xc8f   : > { %v1996_v19 = vld [vmem:[#allocation4] sm:$0xff] }
 0xc90   : > { %v2005_v15 = vadd.f32 %v2247_v30, %v1996_v19 }
 0xc91   : > { %v1997_v16 = vld [vmem:[#allocation4 + $0x8] sm:$0xff] }
 0xc92   : > { %v2009_v32 = vadd.f32 %v2007_v31, %v2005_v15  ;;  %v2006_v33 = vadd.f32 %v2247_v30, %v1997_v16 }
 0xc94   : > { %v2013_v35 = vsel %vm588_vm1, %v2009_v32, 0.0  ;;  %v2010_v3 = vadd.f32 %v2008_v34, %v2006_v33 }
 0xc95   : > { %2014 = vadd.xlane.f32.xlu1 %v2013_v35 }
 0xc96   : > { %v2016_v38 = vsel %vm588_vm1, %v2010_v3, 0.0 }
 0xc97   : > { %2017 = vadd.xlane.f32.xlu0 %v2016_v38 }
 0xd22   : > { %v2015_v14 = vpop.xlane.xlu1 %2014 }
 0xd23   : > { %v2020_v40 = vmul.f32 0.03125, %v2015_v14 }
 0xd24   : > { %v2018_v0 = vpop.xlane.xlu0 %2017 }
 0xd25   : > { %v2022_v13 = vsub.f32 %v2009_v32, %v2020_v40  ;;  %v2021_v41 = vmul.f32 0.03125, %v2018_v0 }
 0xd27   : > { %v2023_v42 = vsub.f32 %v2010_v3, %v2021_v41  ;;  %v2024_v43 = vmul.f32 %v2022_v13, %v2022_v13  ;;  %v2054_v62 = vmul.f32 %v2248_v61, %v2022_v13 }
 0xd29   : > { %v2026_v44 = vsel %vm588_vm1, %v2024_v43, 0.0  ;;  %v2025_v45 = vmul.f32 %v2023_v42, %v2023_v42  ;;  %v2055_v5 = vmul.f32 %v2248_v61, %v2023_v42 }
 0xd2a   : > { %2027 = vadd.xlane.f32.xlu1 %v2026_v44 }
 0xd2b   : > { %v2029_v46 = vsel %vm588_vm1, %v2025_v45, 0.0 }
 0xd2c   : > { %2030 = vadd.xlane.f32.xlu0 %v2029_v46 }
 0xdb7   : > { %v2028_v47 = vpop.xlane.xlu1 %2027 }
 0xdb8   : > { %v2032_v48 = vmul.f32 0.032258064, %v2028_v47 }
 0xdb9   : > { %v2031_v49 = vpop.xlane.xlu0 %2030 }
 0xdba   : > { %2529 = vrsqrt.f32 %v2032_v48  ;;  %v2033_v50 = vmul.f32 0.032258064, %v2031_v49  ;;  %vm2036_vm15 = vcmp.eq.f32.partialorder %v2032_v48, inf  ;;  %v2039_v53 = vand.u32 2147483648, %v2032_v48 }
 0xdbb   : > { %vm2038_vm0 = vcmp.eq.f32.partialorder %v2032_v48, 0.0 }
 0xdbc   : > { %2531 = vrsqrt.f32 %v2033_v50  ;;  %vm2043_vm2 = vcmp.eq.f32.partialorder %v2033_v50, inf  ;;  %v2046_v57 = vand.u32 2147483648, %v2033_v50  ;;  %vm2045_vm1 = vcmp.eq.f32.partialorder %v2033_v50, 0.0 }
 0xdc4   : > { %v2530_v51 = vpop.eup %2529 }
 0xdc5   : > { %v2035_v52 = vmul.f32 %v2530_v51, %v2032_v48 }
 0xdc6   : > { %v2532_v54 = vpop.eup %2531 }
 0xdc7   : > { %v2037_v55 = vsel %vm2036_vm15, %v2032_v48, %v2035_v52  ;;  %v2042_v36 = vmul.f32 %v2532_v54, %v2033_v50 }
 0xdc8   : > { %v2040_v56 = vsel %vm2038_vm0, %v2039_v53, %v2037_v55 }
 0xdc9   : > { %v2056_v37 = vadd.f32 1e-05, %v2040_v56  ;;  %v2044_v58 = vsel %vm2043_vm2, %v2033_v50, %v2042_v36 }
 0xdca   : > { %v2047_v59 = vsel %vm2045_vm1, %v2046_v57, %v2044_v58 }
 0xdcb   : > { %2533 = vrcp.f32 %v2056_v37  ;;  %v2057_v60 = vadd.f32 1e-05, %v2047_v59 }
 0xdcd   : > { %2535 = vrcp.f32 %v2057_v60 }
 0xdd5   : > { %v2534_v63 = vpop.eup %2533 }
 0xdd6   : > { %v2059_v4 = vmul.f32 %v2534_v63, %v2054_v62 }
 0xdd7   : > { %v2536_v6 = vpop.eup %2535 }
 0xdd8   : > { %v2068_v8 = vadd.f32 %v2249_v2, %v2059_v4  ;;  %v2061_v10 = vmul.f32 %v2536_v6, %v2055_v5 }
 0xdda   : > { %v2070_v12 = vpack.c.bf16 %v2068_v8, %v2068_v8  ;;  %v2069_v9 = vadd.f32 %v2249_v2, %v2061_v10 }
 0xddc   : > { %2073 = vst.msk [vmem:[%s553_s26] sm:$0xf] %vm1233_vm13, %v2070_v12  ;;  %v2071_v17 = vpack.c.bf16 %v2069_v9, %v2069_v9 }
 0xdde   : > { %2074 = vst.msk [vmem:[%s553_s26 + $0x4] sm:$0xf] %vm1233_vm13, %v2071_v17 }
 0xddf PF: > { %s24_s15 = sadd.s32 1, %s2559_s15   ;;  %s3007_s29 = smov %s2555_s30 }
 0xde0   : > { %p21_p5 = scmp.ge.s32.totalorder %s24_s15, 4   ;;  %s3008_s30 = smov %s3010_s16 }
 0xde2   :  { %23 = sbr.rel (!%p21_p5) target bundleno = 2 (0x2), region = 127 }

// kernel: tnn_forward.3
= control target key start
LH: loop header
LB: loop body
LE: loop exit
PB: predicated region body
PF: predicated region fallthrough
CT: control target
= control target key end

     0   :  { %s3181_s0 = inlined_call_operand.vmem [shape: bf16[4,8,32], index: 0, kind: input, shape index: {}]   ;;  %s3182_s1 = inlined_call_operand.vmem [shape: f32[4,1,8], index: 1, kind: input, shape index: {}]   ;;  %s3183_s2 = inlined_call_operand.vmem [shape: bf16[32,96], index: 2, kind: input, shape index: {}]   ;;  %s3184_s3 = inlined_call_operand.vmem [shape: f32[1,96], index: 3, kind: input, shape index: {}]   ;;  %s3185_s4 = inlined_call_operand.vmem [shape: bf16[32,32], index: 4, kind: input, shape index: {}]   ;;  %s3186_s5 = inlined_call_operand.vmem [shape: f32[1,32], index: 5, kind: input, shape index: {}]   ;;  %s3187_s6 = inlined_call_operand.vmem [shape: f32[1,32], index: 6, kind: input, shape index: {}]   ;;  %s3188_s7 = inlined_call_operand.vmem [shape: f32[1,32], index: 7, kind: input, shape index: {}]   ;;  %s3189_s8 = inlined_call_operand.vmem [shape: bf16[32,64], index: 8, kind: input, shape index: {}]   ;;  %s3190_s9 = inlined_call_operand.vmem [shape: f32[1,64], index: 9, kind: input, shape index: {}]   ;;  %s3191_s10 = inlined_call_operand.vmem [shape: bf16[64,32], index: 10, kind: input, shape index: {}]   ;;  %s3192_s11 = inlined_call_operand.vmem [shape: f32[1,32], index: 11, kind: input, shape index: {}]   ;;  %s3193_s12 = inlined_call_operand.vmem [shape: f32[1,32], index: 12, kind: input, shape index: {}]   ;;  %s3194_s13 = inlined_call_operand.vmem [shape: f32[1,32], index: 13, kind: input, shape index: {}]   ;;  %s3195_s14 = inlined_call_operand.hbm [shape: bf16[4,8,32], index: 14, kind: output, shape index: {}]  }
   0x1   :  { %3203 = sst [smem:[#allocation8_spill]] %s3181_s0 }
   0x2   :  { %3204 = sst [smem:[#allocation9_spill]] %s3182_s1 }
   0x3   :  { %3205 = sst [smem:[#allocation10_spill]] %s3183_s2 }
   0x4   :  { %3206 = sst [smem:[#allocation11_spill]] %s3184_s3 }
   0x5   :  { %3207 = sst [smem:[#allocation12_spill]] %s3185_s4 }
   0x6   :  { %19 = vsyncpa [#allocation6], 0 }
   0x7   :  { %21 = vsyncpa [#allocation6 + $0x1], 0  ;;  %s2756_s29 = smov 0   ;;  %s2758_s30 = smov 0  }
   0x8   :  { %s2760_s15 = smov 0   ;;  %s2762_s16 = smov 0  }
   0x9   :  { %s2764_s17 = smov 0   ;;  %s2766_s18 = smov 0  }
   0xa LB: > { %s2208_s19 = sadd.s32 4294967295, %s2667_s18   ;;  %s2209_s20 = sadd.s32 4294967294, %s2667_s18   ;;  %s2667_s18 = sphi %s2766_s18, %s27_s18   ;;  %s2663_s17 = sphi %s2764_s17, %s3224_s17   ;;  %s2659_s16 = sphi %s2762_s16, %s3223_s16   ;;  %s2655_s15 = sphi %s2760_s15, %s3222_s15   ;;  %s2651_s30 = sphi %s2758_s30, %s3221_s30   ;;  %s2647_s29 = sphi %s2756_s29, %s3220_s29  }
   0xb   : > { %s39_s21 = sadd.s32 1, %s2663_s17  ;;  %s365_s22 = sadd.s32 1, %s2655_s15 }
   0xc   : > { %p41_p0 = scmp.ge.s32.totalorder %s39_s21, 2  ;;  %p375_p1 = scmp.ne.s32.totalorder %s2655_s15, %s2651_s30 }
   0xd   : > { %p376_p2 = scmp.eq.s32.totalorder %s2208_s19, 1  ;;  %p381_p3 = scmp.ne.s32.totalorder %s2651_s30, %s2647_s29 }
   0xe   : > { %s3226_s21 = smov (%p41_p0, %s39_s21), 0  ;;  %p382_p5 = scmp.eq.s32.totalorder %s2209_s20, 1 }
   0xf   : > { %p2796_p4 = por %p376_p2, %p375_p1  ;;  %s362_s24 = ssub.s32 %s2663_s17, %s3226_s21 }
  0x10   : > { %p2215_p6 = scmp.ge.s32.totalorder %s2667_s18, 1  ;;  %p363_p7 = scmp.eq.s32.totalorder %s362_s24, 0 }
  0x11   : > { %p2803_p8 = por %p382_p5, %p381_p3  ;;  %p466_p9 = scmp.lt.s32.totalorder %s2667_s18, 3 }
  0x12   : > { %s2809_s26 = scalar_select %p363_p7, %s2655_s15, %s365_s22  }
  0x13   : > { %p467_p10 = pnand %p2215_p6, %p466_p9 }
  0x14   : > { %s3210_s2 = sld [smem:[#allocation10_spill]] (!%p467_p10)  ;;  %v2669_v1 = vmov (!%p467_p10), 0.0   ;;  %vm2670_vm0 = vmmov (!%p467_p10), 0   ;;  %s2217_s22 = sshll.u32 (!%p467_p10), %s2659_s16, 1  ;;  %vm586_vm1 = vcmask (!%p467_p10), 261120   ;;  %vm672_vm2 = vcmask (!%p467_p10), 64512  }
  0x15   : > { %470 = sbr.rel (%p467_p10) target bundleno = 3581 (0xdfd), region = 76  ;;  %2321 = vmatprep.subr.bf16.mxu1 (!%p467_p10), %v2669_v1  ;;  %2335 = vmatprep.subr.bf16.mxu0 (!%p467_p10), %v2669_v1  ;;  %p529_p11 = scmp.lt.s32.totalorder (!%p467_p10), %s2217_s22, 3  ;;  %1834 = vst.msk [vmem:[#allocation4] sm:$0xff] (!%p467_p10), %vm586_vm1, %v2669_v1  ;;  %1835 = vst.msk [vmem:[#allocation4 + $0x8] sm:$0xff] (!%p467_p10), %vm586_vm1, %v2669_v1  ;;  %v664_v34 = vlaneseq (!%p467_p10)  ;;  %vm919_vm4 = vcmask (!%p467_p10), 1043456   ;;  %vm1120_vm5 = vcmask (!%p467_p10), 130048  }
  0x16   : > { %2325 = vmatprep.mubr.msk.bf16.mxu1 (!%p467_p10), %vm2670_vm0, %v2669_v1  ;;  %2337 = vmatprep.mubr.msk.bf16.mxu0 (!%p467_p10), %vm2670_vm0, %v2669_v1  ;;  %s3211_s0 = sld [smem:[#allocation8_spill]] (!%p467_p10)  ;;  %s3212_s3 = sld [smem:[#allocation11_spill]] (!%p467_p10)  ;;  %vm1122_vm6 = vcmask (!%p467_p10), 195584   ;;  %vm1832_vm12 = vcmask (!%p467_p10), 261124   ;;  %vm1231_vm13 = vcmask (!%p467_p10), 257024   ;;  %vm1942_vm14 = vcmask (!%p467_p10), 523264  }
  0x17   : > { %s3201_s27 = smov (!%p467_p10), 104   ;;  %s3200_s28 = smov (!%p467_p10), 112   ;;  %v2896_v36 = vshrl.u32 (!%p467_p10), %v664_v34, 7 }
  0x18   : > { %s3213_s1 = sld [smem:[#allocation9_spill]] (!%p467_p10)  ;;  %s3214_s4 = sld [smem:[#allocation12_spill]] (!%p467_p10) }
  0x19   : > { %v666_v37 = vsub.s32 (!%p467_p10), 0, %v2896_v36  ;;  %s3216_s20 = smov (!%p467_p10), 104  }
  0x1a   : > { %v2527_v0 = vld [vmem:[%s3210_s2] sm:$0xff] (!%p467_p10)   ;;  %v2528_v2 = vld [vmem:[%s3210_s2 + $0x8] sm:$0xff] (!%p467_p10)   ;;  %s3196_s2 = smov (!%p467_p10), 96  }
  0x1b   : > { %2322 = vmatpush3.bf16.msra.mxu1 (!%p467_p10), %v2527_v0 }
  0x1c   : > { %2323 = vmatprep.subr.bf16.mxu1 %v2669_v1  ;;  %s3228_s22 = smov (!%p529_p11, %s2217_s22), 3  ;;  %v2221_v4 = vld [vmem:[%s3212_s3] ss:$0 sm:$0xff] }
  0x1d   : > { %s2218_s24 = sshll.u32 %s3228_s22, 2 }
  0x1e   : > { %s532_s19 = scalar_lea.vmem %s3211_s0, %s2218_s24  ;;  %s2672_s24 = smov 120  }
  0x1f   : > { %2324 = vmatpush3.bf16.msra.mxu1 %v2528_v2  ;;  %v2836_v3 = vld [vmem:[%s532_s19] sm:$0xff]   ;;  %s2677_s19 = smov 16   ;;  %s2679_s0 = smov [#allocation5]  }
  0x20   : > { %2329 = vmatprep.subr.bf16.mxu1 %v2669_v1 }
  0x22   : > { %2326 = vmatmul.mubr.msk.bf16.vlgmr.msra.gmra.mrb[0].mxu1 %vm586_vm1, %v2836_v3 }
  0x23   : > { %2331 = vmatprep.mubr.msk.bf16.mxu1 %vm2670_vm0, %v2669_v1 }
  0xf5   : > { %v624_v5 = vpop.f32.mrb[0].mxu1 }
  0xf6   : > { %v625_v6 = vadd.f32 %v2221_v4, %v624_v5  ;;  %v2327_v7 = vpop.f32.mrb[1].mxu1 }
  0xf7   : > { %v627_v8 = vpop.f32.mrb[2].mxu1 }
  0xf8   : > { %v2845_v9 = vadd.f32 %v2221_v4, %v627_v8  ;;  %653 = vrot.lane.b32.xlu1 %v625_v6, %s3201_s27  ;;  %647 = vrot.lane.b32.xlu0 %v625_v6, %s2672_s24  ;;  %v2328_v10 = vpop.f32.mrb[3].mxu1  ;;  %v2849_v11 = vpack.c.bf16 %v625_v6, %v625_v6  ;;  %v631_v12 = vmul.f32 0.35355338, %v625_v6 }
  0xfa   : > { %v642_v21 = vpack.c.bf16 %v631_v12, %v631_v12 }
  0xfc   : > { %650 = vrot.lane.b32.xlu0 %v625_v6, %s3200_s28  ;;  %670 = vrot.lane.b32.xlu1 %v2849_v11, %s3196_s2 }
 0x100   : > { %633 = vrot.lane.b32.xlu1 %v631_v12, %s2672_s24 }
 0x16a   : > { %v654_v13 = vpop.permute.xlu1 %653  ;;  %v648_v14 = vpop.permute.xlu0 %647 }
 0x16b   : > { %v2855_v15 = vpack.c.bf16 %v654_v13, %v654_v13  ;;  %v2857_v16 = vpack.c.bf16 %v648_v14, %v648_v14 }
 0x16d   : > { %720 = vrot.lane.b32.xlu0 %v2857_v16, %s3196_s2  ;;  %818 = vrot.lane.b32.xlu1 %v2855_v15, %s3196_s2 }
 0x16e   : > { %v651_v17 = vpop.permute.xlu0 %650  ;;  %v671_v18 = vpop.permute.xlu1 %670 }
 0x16f   : > { %v2863_v19 = vpack.c.bf16 %v651_v17, %v651_v17  ;;  %v677_v20 = vsel %vm672_vm2, %v671_v18, 0 }
 0x170   : > { %2330 = vmatpush3.bf16.xpose.msra.mxu1 %v677_v20 }
 0x171   : > { %769 = vrot.lane.b32.xlu0 %v2863_v19, %s3196_s2  ;;  %639 = vrot.lane.b32.xlu1 %v631_v12, %s3201_s27  ;;  %s2893_s2 = scalar_lea.vmem %s3213_s1, %s3228_s22  ;;  %s3198_s22 = smov 64  }
 0x172   : > { %2341 = vmatprep.subr.bf16.mxu1 %v2669_v1  ;;  %v634_v24 = vpop.permute.xlu1 %633  ;;  %v660_v35 = vld [vmem:[%s2893_s2] sm:$0x1]  ;;  %s2593_s1 = sshll.u32 %s2679_s0, 4  ;;  %s2594_s1 = int_to_ptr.vmem [resolvable:$false] %s2593_s1 }
 0x173   : > { %v643_v28 = vpack.c.bf16 %v634_v24, %v634_v24  ;;  %vm661_vm3 = vcmp.gt.f32.partialorder %v660_v35, 0.5 }
 0x174   : > { %v662_v38 = vsel %vm661_vm3, -1e+30, %v2669_v1 }
 0x175   : > { %636 = vrot.lane.b32.xlu0 %v631_v12, %s3200_s28  ;;  %v667_v39 = vrot.slane %v662_v38, %v666_v37 }
 0x177   : > { %2332 = vmatmul.mubr.msk.bf16.vlgmr.msra.gmra.mrb[4].mxu1 %vm672_vm2, %v642_v21 }
 0x178   : > { %2343 = vmatprep.mubr.msk.bf16.mxu1 %vm2670_vm0, %v2669_v1 }
 0x1df   : > { %v721_v22 = vpop.permute.xlu0 %720  ;;  %v819_v27 = vpop.permute.xlu1 %818 }
 0x1e0   : > { %v726_v23 = vsel %vm672_vm2, %v721_v22, 0  ;;  %v824_v30 = vsel %vm672_vm2, %v819_v27, 0 }
 0x1e1   : > { %2336 = vmatpush3.bf16.xpose.msra.mxu0 %v726_v23 }
 0x1e2   : > { %2347 = vmatprep.subr.bf16.mxu0 %v2669_v1 }
 0x1e3   : > { %v770_v25 = vpop.permute.xlu0 %769  ;;  %v640_v32 = vpop.permute.xlu1 %639 }
 0x1e4   : > { %v775_v26 = vsel %vm672_vm2, %v770_v25, 0  ;;  %v645_v33 = vpack.c.bf16 %v640_v32, %v640_v32 }
 0x1e5   : > { %2342 = vmatpush3.bf16.xpose.msra.mxu1 %v775_v26 }
 0x1e6   : > { %2353 = vmatprep.subr.bf16.mxu1 %v2669_v1 }
 0x1e7   : > { %v637_v29 = vpop.permute.xlu0 %636 }
 0x1e8   : > { %2338 = vmatmul.mubr.msk.bf16.vlgmr.msra.gmra.mrb[0].mxu0 %vm672_vm2, %v643_v28  ;;  %v644_v31 = vpack.c.bf16 %v637_v29, %v637_v29 }
 0x1e9   : > { %2348 = vmatpush3.bf16.xpose.msra.mxu0 %v824_v30  ;;  %2349 = vmatprep.mubr.msk.bf16.mxu0 %vm2670_vm0, %v2669_v1 }
 0x1ea   : > { %2359 = vmatprep.subr.bf16.mxu0 %v2669_v1 }
 0x1ec   : > { %2344 = vmatmul.mubr.msk.bf16.vlgmr.msra.gmra.mrb[8].mxu1 %vm672_vm2, %v644_v31 }
 0x1ed   : > { %2355 = vmatprep.mubr.msk.bf16.mxu1 %vm2670_vm0, %v2669_v1 }
 0x1f0   : > { %2350 = vmatmul.mubr.msk.bf16.vlgmr.msra.gmra.mrb[4].mxu0 %vm672_vm2, %v645_v33 }
 0x1f1   : > { %2361 = vmatprep.mubr.msk.bf16.mxu0 %vm2670_vm0, %v2669_v1 }
 0x24a   : > { %v713_v40 = vpop.f32.mrb[4].mxu1 }
 0x24b   : > { %v714_v41 = vadd.f32 %v713_v40, %v667_v39  ;;  %v2333_v42 = vpop.f32.mrb[5].mxu1 }
 0x24c   : > { %v716_v43 = vpop.f32.mrb[6].mxu1 }
 0x24d   : > { %v2334_v44 = vpop.f32.mrb[7].mxu1  ;;  %v866_v45 = vsel %vm672_vm2, %v714_v41, -inf }
 0x24e   : > { %867 = vmax.xlane.f32.xlu0 %v866_v45 }
 0x2bb   : > { %v762_v46 = vpop.f32.mrb[0].mxu0 }
 0x2bc   : > { %v763_v47 = vadd.f32 %v762_v46, %v667_v39  ;;  %v2339_v48 = vpop.f32.mrb[1].mxu0 }
 0x2bd   : > { %v765_v49 = vpop.f32.mrb[2].mxu0 }
 0x2be   : > { %v2340_v50 = vpop.f32.mrb[3].mxu0  ;;  %v869_v51 = vsel %vm672_vm2, %v763_v47, -inf }
 0x2bf   : > { %870 = vmax.xlane.f32.xlu1 %v869_v51  ;;  %v811_v52 = vpop.f32.mrb[8].mxu1 }
 0x2c0   : > { %v812_v53 = vadd.f32 %v811_v52, %v667_v39  ;;  %v2345_v54 = vpop.f32.mrb[9].mxu1 }
 0x2c1   : > { %v814_v55 = vpop.f32.mrb[10].mxu1  ;;  %v2531_v54 = vld [vmem:[%s3214_s4 + $0x8] sm:$0xff]  }
 0x2c2   : > { %v2346_v56 = vpop.f32.mrb[11].mxu1  ;;  %v872_v57 = vsel %vm672_vm2, %v812_v53, -inf }
 0x2c3   : > { %v860_v58 = vpop.f32.mrb[4].mxu0  ;;  %873 = vmax.xlane.f32.xlu0 %v872_v57 }
 0x2c4   : > { %v861_v59 = vadd.f32 %v860_v58, %v667_v39  ;;  %v2351_v60 = vpop.f32.mrb[5].mxu0 }
 0x2c5   : > { %v863_v61 = vpop.f32.mrb[6].mxu0 }
 0x2c6   : > { %v2352_v62 = vpop.f32.mrb[7].mxu0  ;;  %v875_v63 = vsel %vm672_vm2, %v861_v59, -inf }
 0x2c7   : > { %876 = vmax.xlane.f32.xlu0 %v875_v63 }
 0x2d0   : > { %914 = vrot.lane.b32.xlu1 %v2849_v11, %s3198_s22 }
 0x2db   : > { %v868_v0 = vpop.xlane.xlu0 %867 }
 0x2dc   : > { %v878_v2 = vsub.f32 %v714_v41, %v868_v0  ;;  %v2956_v0 = vpack.c.bf16 %v2845_v9, %v2845_v9 }
 0x2de   : > { %v882_v4 = vmul.f32 1.442695, %v878_v2 }
 0x2e0   : > { %2541 = vpow2.f32 %v882_v4 }
 0x2ea   : > { %v2542_v5 = vpop.eup %2541 }
 0x2eb   : > { %v890_v6 = vsel %vm672_vm2, %v2542_v5, 0.0 }
 0x2f4   : > { %891 = vadd.xlane.f32.xlu1 %v890_v6  ;;  %v1233_v6 = vmul.f32 0.35355338, %v2845_v9 }
 0x34c   : > { %v871_v7 = vpop.xlane.xlu1 %870 }
 0x34d   : > { %v879_v8 = vsub.f32 %v763_v47, %v871_v7 }
 0x34f   : > { %v884_v10 = vmul.f32 1.442695, %v879_v8 }
 0x350   : > { %v915_v12 = vpop.permute.xlu1 %914  ;;  %v874_v13 = vpop.xlane.xlu0 %873 }
 0x351   : > { %2543 = vpow2.f32 %v884_v10  ;;  %v921_v14 = vsel %vm919_vm4, %v915_v12, 0  ;;  %v880_v17 = vsub.f32 %v812_v53, %v874_v13  ;;  %v2530_v53 = vld [vmem:[%s3214_s4] sm:$0xff]  }
 0x352   : > { %2354 = vmatpush3.bf16.msra.mxu1 %v921_v14 }
 0x353   : > { %v886_v11 = vmul.f32 1.442695, %v880_v17  ;;  %2365 = vmatprep.subr.bf16.mxu1 %v2669_v1 }
 0x354   : > { %v877_v18 = vpop.xlane.xlu0 %876 }
 0x355   : > { %2545 = vpow2.f32 %v886_v11  ;;  %v881_v20 = vsub.f32 %v861_v59, %v877_v18 }
 0x357   : > { %v888_v21 = vmul.f32 1.442695, %v881_v20 }
 0x359   : > { %2547 = vpow2.f32 %v888_v21 }
 0x35b   : > { %v2544_v22 = vpop.eup %2543 }
 0x35c   : > { %v893_v23 = vsel %vm672_vm2, %v2544_v22, 0.0 }
 0x35d   : > { %894 = vadd.xlane.f32.xlu0 %v893_v23 }
 0x35f   : > { %v2546_v24 = vpop.eup %2545 }
 0x360   : > { %v896_v25 = vsel %vm672_vm2, %v2546_v24, 0.0 }
 0x361   : > { %897 = vadd.xlane.f32.xlu1 %v896_v25 }
 0x363   : > { %v2548_v26 = vpop.eup %2547 }
 0x364   : > { %v899_v27 = vsel %vm672_vm2, %v2548_v26, 0.0 }
 0x365   : > { %900 = vadd.xlane.f32.xlu0 %v899_v27 }
 0x372   : > { %1011 = vrot.lane.b32.xlu1 %v2863_v19, %s3198_s22 }
 0x376   : > { %1059 = vrot.lane.b32.xlu1 %v2855_v15, %s3198_s22 }
 0x37a   : > { %1252 = vrot.lane.b32.xlu1 %v2845_v9, %s3200_s28  ;;  %s3215_s28 = smov 96  }
 0x37b   : > { %963 = vrot.lane.b32.xlu0 %v2857_v16, %s3198_s22  ;;  %s3202_s22 = smov 24  }
 0x37f   : > { %1249 = vrot.lane.b32.xlu0 %v2845_v9, %s2672_s24 }
 0x381   : > { %v892_v28 = vpop.xlane.xlu1 %891 }
 0x382   : > { %2549 = vrcp.f32 %v892_v28  ;;  %v1244_v28 = vpack.c.bf16 %v1233_v6, %v1233_v6 }
 0x383   : > { %1255 = vrot.lane.b32.xlu0 %v2845_v9, %s3201_s27  ;;  %s2676_s27 = smov 8  }
 0x38c   : > { %v2550_v29 = vpop.eup %2549 }
 0x38d   : > { %v906_v30 = vmul.f32 %v2550_v29, %v2542_v5 }
 0x38f   : > { %v910_v19 = vpack.c.bf16 %v906_v30, %v906_v30 }
 0x391   : > { %2356 = vmatmul.mubr.msk.bf16.vlgmr.msra.gmra.mrb[12].mxu1 %vm672_vm2, %v910_v19 }
 0x392   : > { %2367 = vmatprep.mubr.msk.bf16.mxu1 %vm2670_vm0, %v2669_v1 }
 0x3ea   : > { %v895_v15 = vpop.xlane.xlu0 %894 }
 0x3eb   : > { %2551 = vrcp.f32 %v895_v15 }
 0x3ee   : > { %v898_v31 = vpop.xlane.xlu1 %897 }
 0x3ef   : > { %2553 = vrcp.f32 %v898_v31 }
 0x3f2   : > { %v1012_v16 = vpop.permute.xlu1 %1011  ;;  %v901_v32 = vpop.xlane.xlu0 %900 }
 0x3f3   : > { %v1017_v33 = vsel %vm919_vm4, %v1012_v16, 0  ;;  %2555 = vrcp.f32 %v901_v32 }
 0x3f4   : > { %2366 = vmatpush3.bf16.msra.mxu1 %v1017_v33 }
 0x3f5   : > { %v2552_v34 = vpop.eup %2551  ;;  %2377 = vmatprep.subr.bf16.mxu1 %v2669_v1 }
 0x3f6   : > { %v907_v35 = vmul.f32 %v2552_v34, %v2544_v22  ;;  %v964_v38 = vpop.permute.xlu0 %963  ;;  %v1060_v40 = vpop.permute.xlu1 %1059 }
 0x3f7   : > { %v969_v39 = vsel %vm919_vm4, %v964_v38, 0  ;;  %v1065_v44 = vsel %vm919_vm4, %v1060_v40, 0 }
 0x3f8   : > { %2360 = vmatpush3.bf16.msra.mxu0 %v969_v39  ;;  %v911_v41 = vpack.c.bf16 %v907_v35, %v907_v35  ;;  %v2239_v35 = vld [vmem:[%s2893_s2 + $0x1] sm:$0x1]  ;;  %s3219_s2 = smov 24  }
 0x3f9   : > { %v2554_v42 = vpop.eup %2553  ;;  %2371 = vmatprep.subr.bf16.mxu0 %v2669_v1  ;;  %vm1264_vm7 = vcmp.gt.f32.partialorder %v2239_v35, 0.5 }
 0x3fa   : > { %v908_v43 = vmul.f32 %v2554_v42, %v2546_v24  ;;  %v1250_v61 = vpop.permute.xlu0 %1249  ;;  %v1253_v12 = vpop.permute.xlu1 %1252  ;;  %v1265_v38 = vsel %vm1264_vm7, -1e+30, %v2669_v1 }
 0x3fb   : > { %2362 = vmatmul.mubr.msk.bf16.vlgmr.msra.gmra.mrb[8].mxu0 %vm672_vm2, %v911_v41  ;;  %v2962_v7 = vpack.c.bf16 %v1250_v61, %v1250_v61  ;;  %v2969_v14 = vpack.c.bf16 %v1253_v12, %v1253_v12  ;;  %v1270_v41 = vrot.slane %v1265_v38, %v666_v37 }
 0x3fc   : > { %2372 = vmatpush3.bf16.msra.mxu0 %v1065_v44  ;;  %v912_v45 = vpack.c.bf16 %v908_v43, %v908_v43  ;;  %2373 = vmatprep.mubr.msk.bf16.mxu0 %vm2670_vm0, %v2669_v1 }
 0x3fd   : > { %v2556_v46 = vpop.eup %2555  ;;  %2385 = vmatprep.subr.bf16.mxu0 %v2669_v1 }
 0x3fe   : > { %v909_v47 = vmul.f32 %v2556_v46, %v2548_v26  ;;  %2368 = vmatmul.mubr.msk.bf16.vlgmr.msra.gmra.mrb[16].mxu1 %vm672_vm2, %v912_v45  ;;  %v1256_v8 = vpop.permute.xlu0 %1255 }
 0x3ff   : > { %2381 = vmatprep.mubr.msk.bf16.mxu1 %vm2670_vm0, %v2669_v1  ;;  %2378 = vmatpush3.bf16.msra.mxu1 %v2530_v53  ;;  %v2967_v13 = vpack.c.bf16 %v1256_v8, %v1256_v8 }
 0x400   : > { %v913_v48 = vpack.c.bf16 %v909_v47, %v909_v47  ;;  %2379 = vmatprep.subr.bf16.mxu1 %v2669_v1 }
 0x403   : > { %2374 = vmatmul.mubr.msk.bf16.vlgmr.msra.gmra.mrb[12].mxu0 %vm672_vm2, %v913_v48  ;;  %2380 = vmatpush3.bf16.msra.mxu1 %v2531_v54 }
 0x404   : > { %2387 = vmatprep.mubr.msk.bf16.mxu0 %vm2670_vm0, %v2669_v1  ;;  %2391 = vmatprep.subr.bf16.mxu1 %v2669_v1 }
 0x464   : > { %v957_v49 = vpop.f32.mrb[12].mxu1 }
 0x465   : > { %v2357_v50 = vpop.f32.mrb[13].mxu1 }
 0x466   : > { %v960_v51 = vpop.f32.mrb[14].mxu1 }
 0x467   : > { %v2358_v52 = vpop.f32.mrb[15].mxu1 }
 0x4ce   : > { %v1005_v55 = vpop.f32.mrb[8].mxu0 }
 0x4cf   : > { %1108 = vrot.lane.b32.xlu1 %v1005_v55, %s2676_s27  ;;  %v2363_v56 = vpop.f32.mrb[9].mxu0 }
 0x4d0   : > { %v1008_v57 = vpop.f32.mrb[10].mxu0 }
 0x4d1   : > { %v2364_v58 = vpop.f32.mrb[11].mxu0  ;;  %v1053_v59 = vpop.f32.mrb[16].mxu1 }
 0x4d2   : > { %1112 = vrot.lane.b32.xlu0 %v1053_v59, %s2677_s19  ;;  %v2369_v60 = vpop.f32.mrb[17].mxu1 }
 0x4d3   : > { %v1056_v62 = vpop.f32.mrb[18].mxu1 }
 0x4d4   : > { %v2370_v63 = vpop.f32.mrb[19].mxu1 }
 0x4d6   : > { %v1101_v2 = vpop.f32.mrb[12].mxu0  ;;  %1273 = vrot.lane.b32.xlu0 %v2956_v0, %s3215_s28 }
 0x4d7   : > { %1116 = vrot.lane.b32.xlu1 %v1101_v2, %s3202_s22  ;;  %v2375_v4 = vpop.f32.mrb[13].mxu0  ;;  %s3217_s22 = smov 112  }
 0x4d8   : > { %v1104_v5 = vpop.f32.mrb[14].mxu0 }
 0x4d9   : > { %v2376_v10 = vpop.f32.mrb[15].mxu0 }
 0x4da   : > { %1235 = vrot.lane.b32.xlu0 %v1233_v6, %s2672_s24  ;;  %s3218_s24 = smov 64  }
 0x4db   : > { %1322 = vrot.lane.b32.xlu1 %v2962_v7, %s3215_s28 }
 0x4de   : > { %1420 = vrot.lane.b32.xlu0 %v2967_v13, %s3215_s28 }
 0x4df   : > { %1371 = vrot.lane.b32.xlu1 %v2969_v14, %s3215_s28  ;;  %s525_s28 = sand.u32 1, %s2651_s30  }
 0x4e2   : > { %1241 = vrot.lane.b32.xlu0 %v1233_v6, %s3216_s20 }
 0x4e3   : > { %1238 = vrot.lane.b32.xlu1 %v1233_v6, %s3217_s22  ;;  %s2216_s22 = sshll.u32 %s525_s28, 3 }
 0x541   : > { %v1109_v17 = vpop.permute.xlu1 %1108 }
 0x542   : > { %v1119_v11 = vsel %vm672_vm2, %v957_v49, %v1109_v17 }
 0x544   : > { %v1113_v9 = vpop.permute.xlu0 %1112 }
 0x545   : > { %v1121_v20 = vsel %vm1120_vm5, %v1119_v11, %v1113_v9 }
 0x548   : > { %v1274_v18 = vpop.permute.xlu0 %1273 }
 0x549   : > { %v1279_v21 = vsel %vm672_vm2, %v1274_v18, 0  ;;  %v1117_v22 = vpop.permute.xlu1 %1116 }
 0x54a   : > { %v1123_v23 = vsel %vm1122_vm6, %v1121_v20, %v1117_v22  ;;  %2386 = vmatpush3.bf16.xpose.msra.mxu0 %v1279_v21 }
 0x54b   : > { %v1124_v24 = vpack.c.bf16 %v1123_v23, %v1123_v23  ;;  %2397 = vmatprep.subr.bf16.mxu0 %v2669_v1 }
 0x54c   : > { %v1236_v25 = vpop.permute.xlu0 %1235 }
 0x54d   : > { %v1323_v26 = vpop.permute.xlu1 %1322  ;;  %2382 = vmatmul.mubr.msk.bf16.vlgmr.msra.gmra.mrb[20].mxu1 %vm586_vm1, %v1124_v24  ;;  %v1245_v15 = vpack.c.bf16 %v1236_v25, %v1236_v25 }
 0x54e   : > { %v1328_v27 = vsel %vm672_vm2, %v1323_v26, 0  ;;  %2393 = vmatprep.mubr.msk.bf16.mxu1 %vm2670_vm0, %v2669_v1 }
 0x54f   : > { %2392 = vmatpush3.bf16.xpose.msra.mxu1 %v1328_v27 }
 0x550   : > { %2403 = vmatprep.subr.bf16.mxu1 %v2669_v1  ;;  %v1421_v19 = vpop.permute.xlu0 %1420 }
 0x551   : > { %v1372_v29 = vpop.permute.xlu1 %1371  ;;  %2388 = vmatmul.mubr.msk.bf16.vlgmr.msra.gmra.mrb[16].mxu0 %vm672_vm2, %v1244_v28  ;;  %v1426_v16 = vsel %vm672_vm2, %v1421_v19, 0 }
 0x552   : > { %v1377_v30 = vsel %vm672_vm2, %v1372_v29, 0  ;;  %2399 = vmatprep.mubr.msk.bf16.mxu0 %vm2670_vm0, %v2669_v1 }
 0x553   : > { %2398 = vmatpush3.bf16.xpose.msra.mxu0 %v1377_v30 }
 0x554   : > { %2409 = vmatprep.subr.bf16.mxu0 %v2669_v1  ;;  %v1242_v33 = vpop.permute.xlu0 %1241 }
 0x555   : > { %v1239_v31 = vpop.permute.xlu1 %1238  ;;  %v1247_v34 = vpack.c.bf16 %v1242_v33, %v1242_v33 }
 0x556   : > { %2394 = vmatmul.mubr.msk.bf16.vlgmr.msra.gmra.mrb[24].mxu1 %vm672_vm2, %v1245_v15  ;;  %v1246_v32 = vpack.c.bf16 %v1239_v31, %v1239_v31 }
 0x557   : > { %2404 = vmatpush3.bf16.xpose.msra.mxu1 %v1426_v16  ;;  %2405 = vmatprep.mubr.msk.bf16.mxu1 %vm2670_vm0, %v2669_v1 }
 0x558   : > { %2415 = vmatprep.subr.bf16.mxu1 %v2669_v1 }
 0x55a   : > { %2400 = vmatmul.mubr.msk.bf16.vlgmr.msra.gmra.mrb[20].mxu0 %vm672_vm2, %v1246_v32 }
 0x55b   : > { %2411 = vmatprep.mubr.msk.bf16.mxu0 %vm2670_vm0, %v2669_v1 }
 0x55e   : > { %2406 = vmatmul.mubr.msk.bf16.vlgmr.msra.gmra.mrb[28].mxu1 %vm672_vm2, %v1247_v34 }
 0x55f   : > { %2417 = vmatprep.mubr.msk.bf16.mxu1 %vm2670_vm0, %v2669_v1 }
 0x620   : > { %v3005_v39 = vpop.f32.mrb[20].mxu1 }
 0x621   : > { %v2383_v40 = vpop.f32.mrb[21].mxu1 }
 0x622   : > { %v1188_v42 = vpop.f32.mrb[22].mxu1 }
 0x623   : > { %v2384_v43 = vpop.f32.mrb[23].mxu1 }
 0x624   : > { %v1315_v44 = vpop.f32.mrb[16].mxu0 }
 0x625   : > { %v1316_v45 = vadd.f32 %v1315_v44, %v1270_v41  ;;  %v2389_v46 = vpop.f32.mrb[17].mxu0 }
 0x626   : > { %v1318_v47 = vpop.f32.mrb[18].mxu0 }
 0x627   : > { %v2390_v48 = vpop.f32.mrb[19].mxu0  ;;  %v1468_v49 = vsel %vm672_vm2, %v1316_v45, -inf }
 0x628   : > { %1469 = vmax.xlane.f32.xlu1 %v1468_v49 }
 0x629   : > { %v1364_v50 = vpop.f32.mrb[24].mxu1 }
 0x62a   : > { %v1365_v51 = vadd.f32 %v1364_v50, %v1270_v41  ;;  %v2395_v52 = vpop.f32.mrb[25].mxu1 }
 0x62b   : > { %v1367_v53 = vpop.f32.mrb[26].mxu1  ;;  %v2533_v52 = vld [vmem:[%s3214_s4 + $0x8] sm:$0xff]  }
 0x62c   : > { %v2396_v54 = vpop.f32.mrb[27].mxu1  ;;  %v1471_v55 = vsel %vm672_vm2, %v1365_v51, -inf }
 0x62d   : > { %v1413_v56 = vpop.f32.mrb[20].mxu0  ;;  %1472 = vmax.xlane.f32.xlu0 %v1471_v55 }
 0x62e   : > { %v1414_v36 = vadd.f32 %v1413_v56, %v1270_v41  ;;  %v2401_v37 = vpop.f32.mrb[21].mxu0 }
 0x62f   : > { %v1416_v57 = vpop.f32.mrb[22].mxu0 }
 0x630   : > { %v2402_v58 = vpop.f32.mrb[23].mxu0  ;;  %v1474_v59 = vsel %vm672_vm2, %v1414_v36, -inf }
 0x631   : > { %1475 = vmax.xlane.f32.xlu0 %v1474_v59  ;;  %v1462_v60 = vpop.f32.mrb[28].mxu1 }
 0x632   : > { %v1463_v61 = vadd.f32 %v1462_v60, %v1270_v41  ;;  %v2407_v62 = vpop.f32.mrb[29].mxu1 }
 0x633   : > { %v1465_v63 = vpop.f32.mrb[30].mxu1 }
 0x634   : > { %v2408_v2 = vpop.f32.mrb[31].mxu1  ;;  %v1477_v4 = vsel %vm672_vm2, %v1463_v61, -inf }
 0x635   : > { %1478 = vmax.xlane.f32.xlu1 %v1477_v4 }
 0x646   : > { %1564 = vrot.lane.b32.xlu1 %v2962_v7, %s3218_s24 }
 0x6b5   : > { %v1470_v5 = vpop.xlane.xlu1 %1469 }
 0x6b6   : > { %v1480_v6 = vsub.f32 %v1316_v45, %v1470_v5 }
 0x6b8   : > { %v1484_v8 = vmul.f32 1.442695, %v1480_v6  ;;  %v2233_v6 = vld [vmem:[%s3186_s5] ss:$0 sm:$0xff] }
 0x6ba   : > { %2557 = vpow2.f32 %v1484_v8  ;;  %v1473_v10 = vpop.xlane.xlu0 %1472  ;;  %v1186_v8 = vadd.f32 %v2233_v6, %v3005_v39  ;;  %v561_v39 = vunpack.c.h.bf16 %v2836_v3 }
 0x6bb   : > { %v1481_v12 = vsub.f32 %v1365_v51, %v1473_v10  ;;  %v2532_v51 = vld [vmem:[%s3214_s4] sm:$0xff]   ;;  %v560_v10 = vunpack.c.l.bf16 %v2836_v3 }
 0x6bd   : > { %v1486_v9 = vmul.f32 1.442695, %v1481_v12  ;;  %v1191_v12 = vadd.f32 %v1186_v8, %v560_v10  ;;  %v2538_v8 = vld [vmem:[%s3191_s10 + $0x10] sm:$0xff]   ;;  %v2539_v10 = vld [vmem:[%s3191_s10 + $0x18] sm:$0xff]  }
 0x6be   : > { %v1476_v17 = vpop.xlane.xlu0 %1475 }
 0x6bf   : > { %2559 = vpow2.f32 %v1486_v9  ;;  %v1482_v11 = vsub.f32 %v1414_v36, %v1476_v17  ;;  %v1194_v9 = vsel %vm586_vm1, %v1191_v12, 0.0 }
 0x6c1   : > { %v1488_v18 = vmul.f32 1.442695, %v1482_v11 }
 0x6c2   : > { %v1479_v20 = vpop.xlane.xlu1 %1478 }
 0x6c3   : > { %2561 = vpow2.f32 %v1488_v18  ;;  %v1483_v21 = vsub.f32 %v1463_v61, %v1479_v20 }
 0x6c4   : > { %v2558_v22 = vpop.eup %2557 }
 0x6c5   : > { %v1490_v23 = vmul.f32 1.442695, %v1483_v21  ;;  %v1492_v24 = vsel %vm672_vm2, %v2558_v22, 0.0 }
 0x6c6   : > { %1493 = vadd.xlane.f32.xlu0 %v1492_v24  ;;  %v1565_v7 = vpop.permute.xlu1 %1564 }
 0x6c7   : > { %2563 = vpow2.f32 %v1490_v23  ;;  %v1570_v25 = vsel %vm919_vm4, %v1565_v7, 0 }
 0x6c8   : > { %2416 = vmatpush3.bf16.msra.mxu1 %v1570_v25 }
 0x6c9   : > { %v2560_v26 = vpop.eup %2559  ;;  %2427 = vmatprep.subr.bf16.mxu1 %v2669_v1 }
 0x6ca   : > { %v1495_v27 = vsel %vm672_vm2, %v2560_v26, 0.0 }
 0x6cb   : > { %1496 = vadd.xlane.f32.xlu1 %v1495_v27 }
 0x6cd   : > { %v2562_v28 = vpop.eup %2561 }
 0x6ce   : > { %v1498_v29 = vsel %vm672_vm2, %v2562_v28, 0.0 }
 0x6cf   : > { %1499 = vadd.xlane.f32.xlu0 %v1498_v29 }
 0x6d1   : > { %v2564_v30 = vpop.eup %2563 }
 0x6d2   : > { %v1501_v19 = vsel %vm672_vm2, %v2564_v30, 0.0 }
 0x6d3   : > { %1502 = vadd.xlane.f32.xlu1 %v1501_v19 }
 0x6e4   : > { %1612 = vrot.lane.b32.xlu1 %v2969_v14, %s3218_s24 }
 0x6e5   : > { %1516 = vrot.lane.b32.xlu0 %v2956_v0, %s3218_s24 }
 0x6e9   : > { %1660 = vrot.lane.b32.xlu0 %v2967_v13, %s3218_s24 }
 0x753   : > { %v1494_v15 = vpop.xlane.xlu0 %1493 }
 0x754   : > { %2565 = vrcp.f32 %v1494_v15 }
 0x758   : > { %v1497_v31 = vpop.xlane.xlu1 %1496 }
 0x759   : > { %2567 = vrcp.f32 %v1497_v31 }
 0x75c   : > { %v1500_v16 = vpop.xlane.xlu0 %1499 }
 0x75d   : > { %2569 = vrcp.f32 %v1500_v16 }
 0x75e   : > { %v2566_v32 = vpop.eup %2565 }
 0x75f   : > { %v1508_v33 = vmul.f32 %v2566_v32, %v2558_v22 }
 0x760   : > { %v1517_v34 = vpop.permute.xlu0 %1516  ;;  %v1503_v35 = vpop.xlane.xlu1 %1502 }
 0x761   : > { %v1522_v38 = vsel %vm919_vm4, %v1517_v34, 0  ;;  %2571 = vrcp.f32 %v1503_v35  ;;  %v1512_v40 = vpack.c.bf16 %v1508_v33, %v1508_v33 }
 0x762   : > { %2410 = vmatpush3.bf16.msra.mxu0 %v1522_v38  ;;  %v2534_v38 = vld [vmem:[%s3189_s8] sm:$0xff]  }
 0x763   : > { %v2568_v14 = vpop.eup %2567  ;;  %2421 = vmatprep.subr.bf16.mxu0 %v2669_v1 }
 0x764   : > { %v1509_v0 = vmul.f32 %v2568_v14, %v2560_v26  ;;  %v1613_v13 = vpop.permute.xlu1 %1612  ;;  %v1661_v41 = vpop.permute.xlu0 %1660  ;;  %v2535_v14 = vld [vmem:[%s3189_s8 + $0x8] sm:$0xff]  }
 0x765   : > { %v1618_v42 = vsel %vm919_vm4, %v1613_v13, 0  ;;  %2412 = vmatmul.mubr.msk.bf16.vlgmr.msra.gmra.mrb[24].mxu0 %vm672_vm2, %v1512_v40  ;;  %v1666_v46 = vsel %vm919_vm4, %v1661_v41, 0  ;;  %v2536_v40 = vld [vmem:[%s3191_s10] sm:$0xff]  }
 0x766   : > { %2422 = vmatpush3.bf16.msra.mxu0 %v1618_v42  ;;  %v1513_v43 = vpack.c.bf16 %v1509_v0, %v1509_v0  ;;  %2423 = vmatprep.mubr.msk.bf16.mxu0 %vm2670_vm0, %v2669_v1  ;;  %v2537_v0 = vld [vmem:[%s3191_s10 + $0x8] sm:$0xff]  }
 0x767   : > { %v2570_v44 = vpop.eup %2569  ;;  %2433 = vmatprep.subr.bf16.mxu0 %v2669_v1 }
 0x768   : > { %v1510_v45 = vmul.f32 %v2570_v44, %v2562_v28  ;;  %2418 = vmatmul.mubr.msk.bf16.vlgmr.msra.gmra.mrb[32].mxu1 %vm672_vm2, %v1513_v43 }
 0x769   : > { %2428 = vmatpush3.bf16.msra.mxu1 %v1666_v46  ;;  %2429 = vmatprep.mubr.msk.bf16.mxu1 %vm2670_vm0, %v2669_v1 }
 0x76a   : > { %v1514_v47 = vpack.c.bf16 %v1510_v45, %v1510_v45  ;;  %2441 = vmatprep.subr.bf16.mxu1 %v2669_v1 }
 0x76b   : > { %v2572_v48 = vpop.eup %2571 }
 0x76c   : > { %v1511_v49 = vmul.f32 %v2572_v48, %v2564_v30 }
 0x76d   : > { %2424 = vmatmul.mubr.msk.bf16.vlgmr.msra.gmra.mrb[28].mxu0 %vm672_vm2, %v1514_v47 }
 0x76e   : > { %v1515_v50 = vpack.c.bf16 %v1511_v49, %v1511_v49  ;;  %2437 = vmatprep.mubr.msk.bf16.mxu0 %vm2670_vm0, %v2669_v1  ;;  %2434 = vmatpush3.bf16.msra.mxu0 %v2532_v51 }
 0x76f   : > { %2435 = vmatprep.subr.bf16.mxu0 %v2669_v1 }
 0x770   : > { %2430 = vmatmul.mubr.msk.bf16.vlgmr.msra.gmra.mrb[36].mxu1 %vm672_vm2, %v1515_v50 }
 0x771   : > { %2445 = vmatprep.mubr.msk.bf16.mxu1 %vm2670_vm0, %v2669_v1  ;;  %2442 = vmatpush3.bf16.msra.mxu1 %v2534_v38 }
 0x772   : > { %2436 = vmatpush3.bf16.msra.mxu0 %v2533_v52  ;;  %2443 = vmatprep.subr.bf16.mxu1 %v2669_v1 }
 0x773   : > { %2449 = vmatprep.subr.bf16.mxu0 %v2669_v1 }
 0x775   : > { %2444 = vmatpush3.bf16.msra.mxu1 %v2535_v14 }
 0x838   : > { %v1558_v53 = vpop.f32.mrb[24].mxu0 }
 0x839   : > { %v2413_v54 = vpop.f32.mrb[25].mxu0 }
 0x83a   : > { %v1561_v55 = vpop.f32.mrb[26].mxu0 }
 0x83b   : > { %v2414_v56 = vpop.f32.mrb[27].mxu0  ;;  %v1606_v36 = vpop.f32.mrb[32].mxu1 }
 0x83c   : > { %1709 = vrot.lane.b32.xlu1 %v1606_v36, %s2676_s27  ;;  %v2419_v37 = vpop.f32.mrb[33].mxu1  ;;  %v2237_v56 = vld [vmem:[%s3187_s6] ss:$0 sm:$0xff]  ;;  %s2271_s27 = sshll.u32 %s2659_s16, 7  ;;  %s3133_s16 = scalar_lea.sflag [#allocation6], %s525_s28 }
 0x83d   : > { %v1609_v57 = vpop.f32.mrb[34].mxu1  ;;  %s3128_s4 = scalar_lea.hbm %s3195_s14, %s2271_s27  ;;  %s2595_s27 = scalar_lea.vmem %s2594_s1, 256 }
 0x83e   : > { %v2420_v58 = vpop.f32.mrb[35].mxu1  ;;  %v2253_v57 = vld [vmem:[%s3188_s7] ss:$0 sm:$0xff] }
 0x840   : > { %v1654_v59 = vpop.f32.mrb[28].mxu0 }
 0x841   : > { %1713 = vrot.lane.b32.xlu0 %v1654_v59, %s2677_s19  ;;  %v2425_v60 = vpop.f32.mrb[29].mxu0  ;;  %s527_s19 = scalar_lea.vmem [#allocation5], %s2216_s22 }
 0x842   : > { %v1657_v61 = vpop.f32.mrb[30].mxu0  ;;  %s2087_s3 = sshll.u32 %s527_s19, 4  ;;  %s3130_s3 = int_to_ptr.vmem [resolvable:$true] %s2087_s3 }
 0x843   : > { %v2426_v62 = vpop.f32.mrb[31].mxu0  ;;  %v1702_v63 = vpop.f32.mrb[36].mxu1  ;;  %s2589_s22 = scalar_lea.vmem %s3130_s3, 128  ;;  %p2596_p1 = scmp.lt.s32.totalorder %s3130_s3, %s2594_s1 }
 0x844   : > { %1717 = vrot.lane.b32.xlu1 %v1702_v63, %s3219_s2  ;;  %v2431_v2 = vpop.f32.mrb[37].mxu1  ;;  %p2590_p12 = scmp.ne.s32.totalorder %s3130_s3, %s2589_s22  ;;  %p2597_p2 = scmp.lt.s32.totalorder %s2595_s27, %s2589_s22 }
 0x845   : > { %v1705_v4 = vpop.f32.mrb[38].mxu1 }
 0x846   : > { %v2432_v5 = vpop.f32.mrb[39].mxu1  ;;  %p2591_p13 = pnand %p2590_p12, %p2796_p4  ;;  %p2598_p3 = por %p2597_p2, %p2596_p1 }
 0x848   : > { %p2592_p0 = pneg %p2591_p13 }
 0x84a   : > { %p2599_p5 = pnand %p2598_p3, %p2592_p0 }
 0x868   : > { %1195 = vadd.xlane.f32.xlu1 %v1194_v9 }
 0x8ae   : > { %v1710_v17 = vpop.permute.xlu1 %1709 }
 0x8af   : > { %v1720_v18 = vsel %vm672_vm2, %v1558_v53, %v1710_v17 }
 0x8b3   : > { %v1714_v11 = vpop.permute.xlu0 %1713 }
 0x8b4   : > { %v1721_v20 = vsel %vm1120_vm5, %v1720_v18, %v1714_v11 }
 0x8b6   : > { %v1718_v21 = vpop.permute.xlu1 %1717 }
 0x8b7   : > { %v1722_v22 = vsel %vm1122_vm6, %v1721_v20, %v1718_v21 }
 0x8b8   : > { %v1723_v23 = vpack.c.bf16 %v1722_v22, %v1722_v22 }
 0x8ba   : > { %2438 = vmatmul.mubr.msk.bf16.vlgmr.msra.gmra.mrb[32].mxu0 %vm586_vm1, %v1723_v23 }
 0x8bb   : > { %2457 = vmatprep.mubr.msk.bf16.mxu0 %vm2670_vm0, %v2669_v1  ;;  %2450 = vmatpush3.bf16.msra.mxu0 %v2536_v40 }
 0x8bc   : > { %2451 = vmatprep.subr.bf16.mxu0 %v2669_v1 }
 0x8bf   : > { %2452 = vmatpush3.bf16.msra.mxu0 %v2537_v0 }
 0x8c0   : > { %2453 = vmatprep.subr.bf16.mxu0 %v2669_v1 }
 0x8c3   : > { %2454 = vmatpush3.bf16.msra.mxu0 %v2538_v8 }
 0x8c4   : > { %2455 = vmatprep.subr.bf16.mxu0 %v2669_v1  ;;  %v1907_v1 = vld [vmem:[#allocation4] sm:$0xff] }
 0x8c7   : > { %2456 = vmatpush3.bf16.msra.mxu0 %v2539_v10 }
 0x8f5   : > { %v1196_v30 = vpop.xlane.xlu1 %1195 }
 0x8f6   : > { %v1198_v19 = vmul.f32 0.03125, %v1196_v30  ;;  %v2263_v30 = vld [vmem:[%s3192_s11] ss:$0 sm:$0xff] }
 0x8f8   : > { %v1199_v16 = vsub.f32 %v1191_v12, %v1198_v19  ;;  %v2254_v12 = vld [vmem:[%s3190_s9] ss:$0 sm:$0xff] }
 0x8fa   : > { %v1200_v35 = vmul.f32 %v1199_v16, %v1199_v16  ;;  %v1218_v59 = vmul.f32 %v2237_v56, %v1199_v16 }
 0x8fc   : > { %v1201_v3 = vsel %vm586_vm1, %v1200_v35, 0.0 }
 0x98d   : > { %v1784_v24 = vpop.f32.mrb[32].mxu0 }
 0x98e   : > { %v1785_v7 = vadd.f32 %v2233_v6, %v1784_v24  ;;  %v2439_v25 = vpop.f32.mrb[33].mxu0 }
 0x98f   : > { %v1787_v26 = vpop.f32.mrb[34].mxu0 }
 0x990   : > { %v2440_v27 = vpop.f32.mrb[35].mxu0  ;;  %v1790_v28 = vadd.f32 %v1785_v7, %v561_v39  ;;  %v1908_v7 = vld [vmem:[#allocation4 + $0x8] sm:$0xff] }
 0x992   : > { %v1793_v29 = vsel %vm586_vm1, %v1790_v28, 0.0 }
 0x993   : > { %1794 = vadd.xlane.f32.xlu0 %v1793_v29 }
 0xa20   : > { %v1795_v15 = vpop.xlane.xlu0 %1794 }
 0xa21   : > { %v1796_v31 = vmul.f32 0.03125, %v1795_v15 }
 0xa23   : > { %v1797_v32 = vsub.f32 %v1790_v28, %v1796_v31 }
 0xa25   : > { %v1798_v33 = vmul.f32 %v1797_v32, %v1797_v32  ;;  %v1816_v36 = vmul.f32 %v2237_v56, %v1797_v32 }
 0xa27   : > { %v1799_v34 = vsel %vm586_vm1, %v1798_v33, 0.0 }
 0xa28   : > { %1800 = vadd.xlane.f32.xlu0 %v1799_v34 }
 0xa2c   : > { %1202 = vadd.xlane.f32.xlu0 %v1201_v3 }
 0xab5   : > { %v1801_v13 = vpop.xlane.xlu0 %1800 }
 0xab6   : > { %v1802_v41 = vmul.f32 0.032258064, %v1801_v13 }
 0xab8   : > { %2573 = vrsqrt.f32 %v1802_v41  ;;  %vm1805_vm8 = vcmp.eq.f32.partialorder %v1802_v41, inf  ;;  %v1808_v46 = vand.u32 2147483648, %v1802_v41  ;;  %vm1807_vm9 = vcmp.eq.f32.partialorder %v1802_v41, 0.0 }
 0xab9   : > { %v1203_v42 = vpop.xlane.xlu0 %1202 }
 0xaba   : > { %v1204_v43 = vmul.f32 0.032258064, %v1203_v42 }
 0xabc   : > { %2575 = vrsqrt.f32 %v1204_v43  ;;  %vm1207_vm10 = vcmp.eq.f32.partialorder %v1204_v43, inf  ;;  %v1210_v52 = vand.u32 2147483648, %v1204_v43  ;;  %vm1209_vm11 = vcmp.eq.f32.partialorder %v1204_v43, 0.0 }
 0xac2   : > { %v2574_v44 = vpop.eup %2573 }
 0xac3   : > { %v1804_v45 = vmul.f32 %v2574_v44, %v1802_v41 }
 0xac5   : > { %v1806_v47 = vsel %vm1805_vm8, %v1802_v41, %v1804_v45 }
 0xac6   : > { %v2576_v48 = vpop.eup %2575  ;;  %v1809_v49 = vsel %vm1807_vm9, %v1808_v46, %v1806_v47 }
 0xac7   : > { %v1817_v50 = vadd.f32 1e-05, %v1809_v49  ;;  %v1206_v51 = vmul.f32 %v2576_v48, %v1204_v43 }
 0xac9   : > { %2577 = vrcp.f32 %v1817_v50  ;;  %v1208_v53 = vsel %vm1207_vm10, %v1204_v43, %v1206_v51 }
 0xaca   : > { %v1211_v54 = vsel %vm1209_vm11, %v1210_v52, %v1208_v53 }
 0xacb   : > { %v1219_v55 = vadd.f32 1e-05, %v1211_v54 }
 0xacd   : > { %2579 = vrcp.f32 %v1219_v55 }
 0xad3   : > { %v2578_v37 = vpop.eup %2577 }
 0xad4   : > { %v1819_v58 = vmul.f32 %v2578_v37, %v1816_v36 }
 0xad6   : > { %v1826_v60 = vadd.f32 %v2253_v57, %v1819_v58 }
 0xad7   : > { %v2580_v61 = vpop.eup %2579 }
 0xad8   : > { %v1828_v62 = vpack.c.bf16 %v1826_v60, %v1826_v60  ;;  %1827 = vst.msk [vmem:[#allocation2 + $0x8] sm:$0xff] %vm586_vm1, %v1826_v60  ;;  %v1221_v63 = vmul.f32 %v2580_v61, %v1218_v59  ;;  %v2264_v61 = vld [vmem:[%s3193_s12] ss:$0 sm:$0xff] }
 0xada   : > { %v1830_v2 = vrot.slane %v1828_v62, 4  ;;  %v1228_v4 = vadd.f32 %v2253_v57, %v1221_v63 }
 0xadc   : > { %v1230_v5 = vpack.c.bf16 %v1228_v4, %v1228_v4  ;;  %1229 = vst.msk [vmem:[#allocation2] sm:$0xff] %vm586_vm1, %v1228_v4 }
 0xadd   : > { %1833 = vst.msk [vmem:[#allocation3] sm:$0xf0] %vm1832_vm12, %v1830_v2  ;;  %v2265_v2 = vld [vmem:[%s3194_s13] ss:$0 sm:$0xff] }
 0xade   : > { %1232 = vst.msk [vmem:[#allocation3] sm:$0xf] %vm1231_vm13, %v1230_v5 }
 0xadf   : > { %v2006_v34 = vld [vmem:[#allocation2 + $0x8] sm:$0xff] }
 0xae3   : > { %v2005_v31 = vld [vmem:[#allocation2] sm:$0xff] }
 0xae5   : > { %v1836_v6 = vld [vmem:[#allocation3] sm:$0xff] }
 0xae6   : > { %2446 = vmatmul.mubr.msk.bf16.vlgmr.msra.gmra.mrb[40].mxu1 %vm586_vm1, %v1836_v6 }
 0xbb9   : > { %v1898_v9 = vpop.f32.mrb[40].mxu1 }
 0xbba   : > { %v1899_v17 = vadd.f32 %v2254_v12, %v1898_v9  ;;  %v2447_v11 = vpop.f32.mrb[41].mxu1 }
 0xbbb   : > { %v1901_v18 = vpop.f32.mrb[42].mxu1 }
 0xbbc   : > { %v1902_v20 = vadd.f32 %v2254_v12, %v1901_v18  ;;  %v2448_v21 = vpop.f32.mrb[43].mxu1  ;;  %v1905_v22 = vmax.f32 %v1899_v17, 0.0 }
 0xbbe   : > { %v1906_v23 = vmax.f32 %v1902_v20, 0.0 }
 0xbc0   : > { %v1909_v39 = vpack.c.bf16 %v1906_v23, %v1905_v22 }
 0xbc2   : > { %2458 = vmatmul.mubr.msk.bf16.vlgmr.msra.gmra.mrb[36].mxu0 %vm1942_vm14, %v1909_v39 }
 0xc95   : > { %v1980_v24 = vpop.f32.mrb[36].mxu0 }
 0xc96   : > { %v1987_v25 = vadd.f32 %v1980_v24, %v1907_v1  ;;  %v2459_v26 = vpop.f32.mrb[37].mxu0 }
 0xc97   : > { %v1983_v27 = vpop.f32.mrb[38].mxu0 }
 0xc98   : > { %1989 = vst.msk [vmem:[#allocation4] sm:$0xff] %vm586_vm1, %v1987_v25  ;;  %v1988_v28 = vadd.f32 %v1983_v27, %v1908_v7  ;;  %v2460_v29 = vpop.f32.mrb[39].mxu0 }
 0xc9a   : > { %1990 = vst.msk [vmem:[#allocation4 + $0x8] sm:$0xff] %vm586_vm1, %v1988_v28 }
 0xc9f   : > { %v1994_v19 = vld [vmem:[#allocation4] sm:$0xff] }
 0xca0   : > { %v2003_v15 = vadd.f32 %v2263_v30, %v1994_v19 }
 0xca1   : > { %v1995_v16 = vld [vmem:[#allocation4 + $0x8] sm:$0xff] }
 0xca2   : > { %v2007_v32 = vadd.f32 %v2005_v31, %v2003_v15  ;;  %v2004_v33 = vadd.f32 %v2263_v30, %v1995_v16 }
 0xca4   : > { %v2011_v35 = vsel %vm586_vm1, %v2007_v32, 0.0  ;;  %v2008_v3 = vadd.f32 %v2006_v34, %v2004_v33 }
 0xca5   : > { %2012 = vadd.xlane.f32.xlu1 %v2011_v35 }
 0xca6   : > { %v2014_v38 = vsel %vm586_vm1, %v2008_v3, 0.0 }
 0xca7   : > { %2015 = vadd.xlane.f32.xlu0 %v2014_v38 }
 0xd32   : > { %v2013_v14 = vpop.xlane.xlu1 %2012 }
 0xd33   : > { %v2018_v40 = vmul.f32 0.03125, %v2013_v14 }
 0xd34   : > { %v2016_v0 = vpop.xlane.xlu0 %2015 }
 0xd35   : > { %v2020_v13 = vsub.f32 %v2007_v32, %v2018_v40  ;;  %v2019_v41 = vmul.f32 0.03125, %v2016_v0 }
 0xd37   : > { %v2021_v42 = vsub.f32 %v2008_v3, %v2019_v41  ;;  %v2022_v43 = vmul.f32 %v2020_v13, %v2020_v13  ;;  %v2052_v62 = vmul.f32 %v2264_v61, %v2020_v13 }
 0xd39   : > { %v2024_v44 = vsel %vm586_vm1, %v2022_v43, 0.0  ;;  %v2023_v45 = vmul.f32 %v2021_v42, %v2021_v42  ;;  %v2053_v5 = vmul.f32 %v2264_v61, %v2021_v42 }
 0xd3a   : > { %2025 = vadd.xlane.f32.xlu1 %v2024_v44 }
 0xd3b   : > { %v2027_v46 = vsel %vm586_vm1, %v2023_v45, 0.0 }
 0xd3c   : > { %2028 = vadd.xlane.f32.xlu0 %v2027_v46 }
 0xdc7   : > { %v2026_v47 = vpop.xlane.xlu1 %2025 }
 0xdc8   : > { %v2030_v48 = vmul.f32 0.032258064, %v2026_v47 }
 0xdc9   : > { %v2029_v49 = vpop.xlane.xlu0 %2028 }
 0xdca   : > { %2581 = vrsqrt.f32 %v2030_v48  ;;  %v2031_v50 = vmul.f32 0.032258064, %v2029_v49  ;;  %vm2034_vm15 = vcmp.eq.f32.partialorder %v2030_v48, inf  ;;  %v2037_v53 = vand.u32 2147483648, %v2030_v48 }
 0xdcb   : > { %vm2036_vm0 = vcmp.eq.f32.partialorder %v2030_v48, 0.0 }
 0xdcc   : > { %2583 = vrsqrt.f32 %v2031_v50  ;;  %vm2041_vm2 = vcmp.eq.f32.partialorder %v2031_v50, inf  ;;  %v2044_v57 = vand.u32 2147483648, %v2031_v50  ;;  %vm2043_vm1 = vcmp.eq.f32.partialorder %v2031_v50, 0.0 }
 0xdd4   : > { %v2582_v51 = vpop.eup %2581 }
 0xdd5   : > { %v2033_v52 = vmul.f32 %v2582_v51, %v2030_v48 }
 0xdd6   : > { %v2584_v54 = vpop.eup %2583 }
 0xdd7   : > { %v2035_v55 = vsel %vm2034_vm15, %v2030_v48, %v2033_v52  ;;  %v2040_v36 = vmul.f32 %v2584_v54, %v2031_v50 }
 0xdd8   : > { %v2038_v56 = vsel %vm2036_vm0, %v2037_v53, %v2035_v55 }
 0xdd9   : > { %v2054_v37 = vadd.f32 1e-05, %v2038_v56  ;;  %v2042_v58 = vsel %vm2041_vm2, %v2031_v50, %v2040_v36 }
 0xdda   : > { %v2045_v59 = vsel %vm2043_vm1, %v2044_v57, %v2042_v58 }
 0xddb   : > { %2585 = vrcp.f32 %v2054_v37  ;;  %v2055_v60 = vadd.f32 1e-05, %v2045_v59 }
 0xddd   : > { %2587 = vrcp.f32 %v2055_v60 }
 0xde5   : > { %v2586_v63 = vpop.eup %2585 }
 0xde6   : > { %v2057_v4 = vmul.f32 %v2586_v63, %v2052_v62 }
 0xde7   : > { %v2588_v6 = vpop.eup %2587 }
 0xde8   : > { %v2066_v8 = vadd.f32 %v2265_v2, %v2057_v4  ;;  %v2059_v10 = vmul.f32 %v2588_v6, %v2053_v5 }
 0xdea   : > { %v2068_v12 = vpack.c.bf16 %v2066_v8, %v2066_v8  ;;  %v2067_v9 = vadd.f32 %v2265_v2, %v2059_v10 }
 0xdec   : > { %2071 = vst.msk [vmem:[%s527_s19] sm:$0xf] %vm1231_vm13, %v2068_v12  ;;  %v2069_v17 = vpack.c.bf16 %v2067_v9, %v2067_v9 }
 0xdee   : > { %2072 = vst.msk [vmem:[%s527_s19 + $0x4] sm:$0xf] %vm1231_vm13, %v2069_v17 }
 0xdef   : > { %2602 = shalt.err (!%p2599_p5)
}
 0xdf0   : > { %s2603_s28 = scalar_lea.hbm %s3128_s4, 128  ;;  %s2607_s2 = scalar_lea.hbm %s3195_s14, 256 }
 0xdf1   : > { %p2604_p6 = scmp.ne.s32.totalorder %s3128_s4, %s2603_s28  ;;  %p2608_p10 = scmp.lt.u32.totalorder %s3128_s4, %s3195_s14 }
 0xdf2   : > { %p2609_p11 = scmp.lt.u32.totalorder %s2607_s2, %s2603_s28  ;;  %p2611_p13 = scmp.lt.u32.totalorder %s2603_s28, %s3128_s4 }
 0xdf3   : > { %p2605_p7 = pnand %p2604_p6, %p2796_p4 }
 0xdf4   : > { %p2610_p12 = por %p2609_p11, %p2608_p10 }
 0xdf5   : > { %p2606_p9 = pneg %p2605_p7 }
 0xdf6   : > { %p2612_p0 = por %p2611_p13, %p2610_p12 }
 0xdf8   : > { %p2613_p1 = pnand %p2612_p0, %p2606_p9 }
 0xdfa   : > { %2616 = shalt.err (!%p2613_p1)
}
 0xdfb   : > { %s2680_s22 = smov 4  }
 0xdfc   : > { %2461 = dma.vmem_to_hbm [thread:$0]  (%p2796_p4), %s3130_s3, 128, %s3128_s4, %s3133_s16, %s3218_s24, %s3218_s24, %s2680_s22  }
 0xdfd PF: > { %p2467_p2 = scmp.ge.s32.totalorder %s2667_s18, 2  ;;  %s2102_s27 = sand.u32 1, %s2647_s29  }
 0xdfe   : > { %s2103_s28 = scalar_lea.sflag [#allocation6], %s2102_s27 }
 0xdff   : > { %p2464_p3 = pnand %p2467_p2, %p2803_p8 }
 0xe01   : > { %2642 = dma.done.wait (!%p2464_p3), %s2103_s28, 128  }
 0xe02   : > { %2644 = vsyncadd (!%p2464_p3), %s2103_s28, 4294967168  ;;  %s27_s18 = sadd.s32 1, %s2667_s18   ;;  %s3220_s29 = smov %s2651_s30 }
 0xe03   : > { %p24_p5 = scmp.ge.s32.totalorder %s27_s18, 4   ;;  %s3221_s30 = smov %s2655_s15 }
 0xe04   : > { %s3222_s15 = smov %s2809_s26  ;;  %s3223_s16 = smov %s2663_s17 }
 0xe05   : > { %s3224_s17 = smov %s3226_s21  ;;  %26 = sbr.rel (!%p24_p5) target bundleno = 10 (0xa), region = 132 }
 0xe0c   :  { %2108 = vsyncpa [#allocation6], 1 }
 0xe0d   :  { %2110 = vsyncpa [#allocation6 + $0x1], 1 }

</bundles_post_ra>
